<compile_context>
chip_gen: v7x
topology: tpu7x:2x2x1
jax: 0.10.0
libtpu: 0.0.40
codegen_flags: <defaults>
</compile_context>

<pallas_src>
import math

import numpy as np
import jax
import jax.numpy as jnp
from jax import lax
from jax.experimental import pallas as pl
from jax.experimental.pallas import tpu as pltpu

# ---------------------------------------------------------------------------
# Problem sizes (small; N_visual / N_ground must be perfect squares).
# ---------------------------------------------------------------------------
B = 2
QUERY_DIM = 32        # channel dim of x
CONTEXT_DIM = 16      # channel dim of objs
N_VIS = 64            # visual tokens    -> size_v = 8
N_GRD = 16            # grounding tokens -> size_g = 4
SIZE_V = 8
SIZE_G = 4
N_TOT = N_VIS + N_GRD

# The module builds CrossAttention WITHOUT forwarding n_heads, so the attention
# uses the default heads=8; dim_head = d_head.  Reproduced exactly.
HEADS = 8
D_HEAD = 8
INNER = HEADS * D_HEAD            # 64
ATTN_SCALE = D_HEAD ** -0.5

FF_MULT = 4
FF_INNER = QUERY_DIM * FF_MULT    # 128 (GEGLU inner dim)

LN_EPS = 1e-5

SLAB_COLS = 128
HEADS_PER_BLK = SLAB_COLS // QUERY_DIM      # 4 heads lane-packed per block
N_HEAD_BLK = HEADS // HEADS_PER_BLK         # 2 blocks


# ---------------------------------------------------------------------------
# Bicubic resampling operator (matches torch.nn.functional.interpolate
# mode='bicubic', align_corners=False, antialias=False) folded into a matrix.
# ---------------------------------------------------------------------------
def _bicubic_resize_matrix(in_size, out_size, a=-0.75):
    w = np.zeros((out_size, in_size), dtype=np.float64)
    scale = in_size / out_size
    for i in range(out_size):
        real = (i + 0.5) * scale - 0.5
        x0 = int(np.floor(real))
        t = real - x0
        c = [
            a * (t + 1) ** 3 - 5 * a * (t + 1) ** 2 + 8 * a * (t + 1) - 4 * a,
            (a + 2) * t ** 3 - (a + 3) * t ** 2 + 1,
            (a + 2) * (1 - t) ** 3 - (a + 3) * (1 - t) ** 2 + 1,
            a * (2 - t) ** 3 - 5 * a * (2 - t) ** 2 + 8 * a * (2 - t) - 4 * a,
        ]
        for m in range(4):
            idx = min(max(x0 - 1 + m, 0), in_size - 1)
            w[i, idx] += c[m]
    return w


def make_interp_matrix():
    w1d = _bicubic_resize_matrix(SIZE_G, SIZE_V)          # (size_v, size_g)
    return jnp.asarray(np.kron(w1d, w1d), jnp.float32)    # (N_VIS, N_GRD)


# ---------------------------------------------------------------------------
# Weight slab layout: every parameter lives in one (384, 128) f32 array.
# Offsets are Python constants known at trace time -> static ref slices.
# ---------------------------------------------------------------------------
def _make_layout():
    layout = {}
    cur = 0

    def add(name, rows):
        nonlocal cur
        cur = ((cur + 7) // 8) * 8          # sublane-align every block
        layout[name] = cur
        cur += rows

    add("w_lin", CONTEXT_DIM)               # (16, 32)
    add("m0", QUERY_DIM)                    # (32,128)  scale*Wq_h Wk_h^T, heads 0-3 lane-packed
    add("m1", QUERY_DIM)                    # (32,128)  heads 4-7
    add("vot0", QUERY_DIM)                  # (32,128)  (Wv_h Wo_h)^T, heads 0-3 lane-packed
    add("vot1", QUERY_DIM)                  # (32,128)  heads 4-7
    add("interp_bd", B * N_VIS)             # (128, 32) batch-block-diag bicubic, tanh(alpha_attn)-scaled
    add("w1_val", QUERY_DIM)                # (32,128)  GEGLU value proj
    add("w1_gate", QUERY_DIM)               # (32,128)  GEGLU gate proj
    add("w2t", QUERY_DIM)                   # (32,128)  ff_w2^T, tanh(alpha_dense)-scaled
    add("bias", 16)                         # nine 1-row vectors packed consecutively
    cur = ((cur + 7) // 8) * 8
    return layout, cur


LAYOUT, SLAB_ROWS = _make_layout()          # SLAB_ROWS == 384  (~192 KiB)

BIAS_ROW = {"b_lin": 0, "ln1_g": 1, "ln1_b": 2, "b_o": 3,
            "ln2_g": 4, "ln2_b": 5, "b1_val": 6, "b1_gate": 7, "b2": 8}


def pack_params(p):
    """Host-side: fold gates/head weights and pack everything into one slab."""
    slab = np.zeros((SLAB_ROWS, SLAB_COLS), np.float64)

    def put(name, arr):
        arr = np.asarray(arr, np.float64)
        r = LAYOUT[name]
        slab[r:r + arr.shape[0], :arr.shape[1]] = arr

    def put_bias(name, arr):
        arr = np.asarray(arr, np.float64).reshape(1, -1)
        r = LAYOUT["bias"] + BIAS_ROW[name]
        slab[r:r + 1, :arr.shape[1]] = arr

    t_attn = float(np.tanh(float(np.asarray(p["alpha_attn"]).reshape(-1)[0])))
    t_dense = float(np.tanh(float(np.asarray(p["alpha_dense"]).reshape(-1)[0])))

    wq = np.asarray(p["w_q"], np.float64)
    wk = np.asarray(p["w_k"], np.float64)
    wv = np.asarray(p["w_v"], np.float64)
    wo = np.asarray(p["w_o"], np.float64)

    m_h, vot_h = [], []
    for h in range(HEADS):
        lo, hi = h * D_HEAD, (h + 1) * D_HEAD
        m_h.append((wq[:, lo:hi] @ wk[:, lo:hi].T) * ATTN_SCALE)   # (32, 32)
        vot_h.append((wv[:, lo:hi] @ wo[lo:hi, :]).T)              # (32, 32) = (Wv_h Wo_h)^T
    for blk in range(N_HEAD_BLK):
        hs = slice(blk * HEADS_PER_BLK, (blk + 1) * HEADS_PER_BLK)
        put(f"m{blk}", np.concatenate(m_h[hs], axis=1))            # (32, 128)
        put(f"vot{blk}", np.concatenate(vot_h[hs], axis=1))        # (32, 128)

    put("w_lin", p["w_lin"])

    interp_s = t_attn * np.asarray(p["interp"], np.float64)        # (64, 16)
    bd = np.zeros((B * N_VIS, B * N_GRD), np.float64)
    for b in range(B):
        bd[b * N_VIS:(b + 1) * N_VIS, b * N_GRD:(b + 1) * N_GRD] = interp_s
    put("interp_bd", bd)

    w1 = np.asarray(p["ff_w1"], np.float64)
    b1 = np.asarray(p["ff_b1"], np.float64)
    put("w1_val", w1[:, :FF_INNER])
    put("w1_gate", w1[:, FF_INNER:])
    put("w2t", (t_dense * np.asarray(p["ff_w2"], np.float64)).T)   # (32, 128)

    put_bias("b_lin", p["b_lin"])
    put_bias("ln1_g", p["ln1_g"])
    put_bias("ln1_b", p["ln1_b"])
    put_bias("b_o", p["b_o"])
    put_bias("ln2_g", p["ln2_g"])
    put_bias("ln2_b", p["ln2_b"])
    put_bias("b1_val", b1[:, :FF_INNER])
    put_bias("b1_gate", b1[:, FF_INNER:])
    put_bias("b2", t_dense * np.asarray(p["ff_b2"], np.float64))
    return jnp.asarray(slab, jnp.float32)


# ---------------------------------------------------------------------------
# Pallas kernel: whole batch in one grid step, fully fused.
# ---------------------------------------------------------------------------
def _gated_kernel(x_ref, objs_ref, slab_ref, out_ref,
                  cat_ref, qsc_ref, aw_ref, acc_ref):
    f32 = jnp.float32
    C = QUERY_DIM
    NT = (((1,), (1,)), ((), ()))          # A @ B^T contraction

    def blk(name, rows, cols=SLAB_COLS):
        r = LAYOUT[name]
        return slab_ref[r:r + rows, :cols]

    def vec(name, cols=C):
        r = LAYOUT["bias"] + BIAS_ROW[name]
        return slab_ref[r:r + 1, :cols]

    x_all = x_ref[...]                     # (B*N_VIS, C) = (128, 32)
    objs_all = objs_ref[...]               # (B*N_GRD, CTX) = (32, 16)

    # objs = self.linear(objs)
    objs_p = jnp.dot(objs_all, blk("w_lin", CONTEXT_DIM, C),
                     preferred_element_type=f32) + vec("b_lin")       # (32, 32)

    # cat([x_b, objs_b]) written once into a sublane-aligned VMEM scratch
    # (no jnp.concatenate); LayerNorm is per-row so one pass over all 160 rows.
    for b in range(B):
        cat_ref[b * N_TOT:b * N_TOT + N_VIS, :] = x_all[b * N_VIS:(b + 1) * N_VIS, :]
        cat_ref[b * N_TOT + N_VIS:(b + 1) * N_TOT, :] = objs_p[b * N_GRD:(b + 1) * N_GRD, :]

    cat = cat_ref[...]                                                # (160, 32)
    mu = jnp.mean(cat, axis=-1, keepdims=True)
    var = jnp.mean(jnp.square(cat - mu), axis=-1, keepdims=True)
    h1 = (cat - mu) * lax.rsqrt(var + LN_EPS) * vec("ln1_g") + vec("ln1_b")

    m_blk = [blk("m0", C), blk("m1", C)]         # (32,128) each, 4 heads per block
    vot_blk = [blk("vot0", C), blk("vot1", C)]   # (32,128) each

    # Only the grounding-token query rows are computed (the module discards the
    # visual-row attention outputs).  Per batch: 2 full-lane query matmuls,
    # ONE 128-row sim, ONE softmax chain, ONE p@K matmul, 2 head-combine matmuls.
    for b in range(B):
        k_b = h1[b * N_TOT:(b + 1) * N_TOT, :]             # (80, 32) keys == values source
        hg_b = h1[b * N_TOT + N_VIS:(b + 1) * N_TOT, :]    # (16, 32) grounding queries

        # queries for all 8 heads -> head-row-stacked (128, 32) scratch
        for half in range(N_HEAD_BLK):
            qw = jnp.dot(hg_b, m_blk[half], preferred_element_type=f32)   # (16, 128)
            for j in range(HEADS_PER_BLK):
                h = half * HEADS_PER_BLK + j
                qsc_ref[h * N_GRD:(h + 1) * N_GRD, :] = qw[:, j * C:(j + 1) * C]
        qs = qsc_ref[...]                                                  # (128, 32)

        sim = lax.dot_general(qs, k_b, NT, preferred_element_type=f32)    # (128, 80)
        sim = sim - jnp.max(sim, axis=-1, keepdims=True)
        e = jnp.exp(sim)
        p = e * pl.reciprocal(jnp.sum(e, axis=-1, keepdims=True), approx=True)

        a = jnp.dot(p, k_b, preferred_element_type=f32)    # (128, 32): rows 16h..: p_h @ K_b

        # repack heads onto lanes so the (Wv_h Wo_h) head-sum is 2 full-lane matmuls
        for h in range(HEADS):
            aw_ref[:, h * C:(h + 1) * C] = a[h * N_GRD:(h + 1) * N_GRD, :]
        aw = aw_ref[...]                                   # (16, 256)
        acc_b = (lax.dot_general(aw[:, :SLAB_COLS], vot_blk[0], NT,
                                 preferred_element_type=f32) +
                 lax.dot_general(aw[:, SLAB_COLS:], vot_blk[1], NT,
                                 preferred_element_type=f32))              # (16, 32)
        acc_ref[b * N_GRD:(b + 1) * N_GRD, :] = acc_b

    # bicubic resample back onto the visual grid: batch-block-diagonal matrix
    # (tanh(alpha_attn) folded in) -> a single matmul for the whole batch.
    acc_all = acc_ref[...] + vec("b_o")                    # (32, 32)
    residual = jnp.dot(blk("interp_bd", B * N_VIS, B * N_GRD), acc_all,
                       preferred_element_type=f32)         # (128, 32)
    x1 = x_all + residual

    # norm2 + GEGLU feed-forward; tanh(alpha_dense) folded into w2t/b2.
    mu2 = jnp.mean(x1, axis=-1, keepdims=True)
    var2 = jnp.mean(jnp.square(x1 - mu2), axis=-1, keepdims=True)
    h2 = (x1 - mu2) * lax.rsqrt(var2 + LN_EPS) * vec("ln2_g") + vec("ln2_b")

    val = jnp.dot(h2, blk("w1_val", C),
                  preferred_element_type=f32) + vec("b1_val", FF_INNER)
    gate = jnp.dot(h2, blk("w1_gate", C),
                   preferred_element_type=f32) + vec("b1_gate", FF_INNER)
    gelu_gate = 0.5 * gate * (1.0 + lax.erf(gate * (1.0 / math.sqrt(2.0))))   # exact GELU
    ff = lax.dot_general(val * gelu_gate, blk("w2t", C), NT,
                         preferred_element_type=f32) + vec("b2")

    out_ref[...] = (x1 + ff).astype(out_ref.dtype)


# ---------------------------------------------------------------------------
# Wrapper: single grid step (whole batch folded), constant-index slab DMA.
# ---------------------------------------------------------------------------
def _cost_estimate():
    mm = 0
    mm += B * N_GRD * CONTEXT_DIM * QUERY_DIM                       # linear
    mm += B * N_HEAD_BLK * N_GRD * QUERY_DIM * SLAB_COLS            # q projections
    mm += B * HEADS * N_GRD * QUERY_DIM * N_TOT                     # sims
    mm += B * HEADS * N_GRD * N_TOT * QUERY_DIM                     # p @ K
    mm += B * N_HEAD_BLK * N_GRD * SLAB_COLS * QUERY_DIM            # head combine
    mm += (B * N_VIS) * (B * N_GRD) * QUERY_DIM                     # bicubic resample
    mm += 2 * (B * N_VIS) * QUERY_DIM * FF_INNER                    # GEGLU projections
    mm += (B * N_VIS) * FF_INNER * QUERY_DIM                        # FF output
    flops = 2 * mm
    trans = B * HEADS * N_GRD * N_TOT + B * N_VIS * FF_INNER        # exp + erf
    bytes_accessed = 4 * (2 * B * N_VIS * QUERY_DIM
                          + B * N_GRD * CONTEXT_DIM
                          + SLAB_ROWS * SLAB_COLS)
    return pl.CostEstimate(flops=flops, transcendentals=trans,
                           bytes_accessed=bytes_accessed)


def gated_self_attention_dense2(x, objs, slab):
    x2 = x.reshape(B * N_VIS, QUERY_DIM)
    objs2 = objs.reshape(B * N_GRD, CONTEXT_DIM)
    out2 = pl.pallas_call(
        _gated_kernel,
        out_shape=jax.ShapeDtypeStruct((B * N_VIS, QUERY_DIM), jnp.float32),
        grid=(1,),
        in_specs=[
            pl.BlockSpec((B * N_VIS, QUERY_DIM), lambda i: (0, 0)),
            pl.BlockSpec((B * N_GRD, CONTEXT_DIM), lambda i: (0, 0)),
            pl.BlockSpec((SLAB_ROWS, SLAB_COLS), lambda i: (0, 0)),   # one slab DMA
        ],
        out_specs=pl.BlockSpec((B * N_VIS, QUERY_DIM), lambda i: (0, 0)),
        scratch_shapes=[
            pltpu.VMEM((B * N_TOT, QUERY_DIM), jnp.float32),       # per-batch [x;objs] cat
            pltpu.VMEM((HEADS * N_GRD, QUERY_DIM), jnp.float32),   # head-row query stack
            pltpu.VMEM((N_GRD, HEADS * QUERY_DIM), jnp.float32),   # head-lane p@K stack
            pltpu.VMEM((B * N_GRD, QUERY_DIM), jnp.float32),       # attention output
        ],
        compiler_params=pltpu.CompilerParams(dimension_semantics=("arbitrary",)),
        cost_estimate=_cost_estimate(),
    )(x2, objs2, slab)
    return out2.reshape(B, N_VIS, QUERY_DIM)


# ---------------------------------------------------------------------------
# Deterministic parameter init (shapes from the module __init__).
# ---------------------------------------------------------------------------
def init_params(key):
    ks = jax.random.split(key, 11)
    s = 0.1
    nrm = lambda k, shape: jax.random.normal(k, shape, jnp.float32) * s
    return dict(
        w_lin=nrm(ks[0], (CONTEXT_DIM, QUERY_DIM)),
        b_lin=nrm(ks[1], (1, QUERY_DIM)),
        ln1_g=jnp.ones((1, QUERY_DIM), jnp.float32),
        ln1_b=jnp.zeros((1, QUERY_DIM), jnp.float32),
        w_q=nrm(ks[2], (QUERY_DIM, INNER)),
        w_k=nrm(ks[3], (QUERY_DIM, INNER)),
        w_v=nrm(ks[4], (QUERY_DIM, INNER)),
        w_o=nrm(ks[5], (INNER, QUERY_DIM)),
        b_o=nrm(ks[6], (1, QUERY_DIM)),
        ln2_g=jnp.ones((1, QUERY_DIM), jnp.float32),
        ln2_b=jnp.zeros((1, QUERY_DIM), jnp.float32),
        ff_w1=nrm(ks[7], (QUERY_DIM, 2 * FF_INNER)),
        ff_b1=nrm(ks[8], (1, 2 * FF_INNER)),
        ff_w2=nrm(ks[9], (FF_INNER, QUERY_DIM)),
        ff_b2=nrm(ks[10], (1, QUERY_DIM)),
        # Module __init__ sets alpha_attn/alpha_dense = 0.0 (gates tanh(0)=0).
        # Use nonzero deterministic values so the gated paths are exercised.
        alpha_attn=jnp.full((1, 1), 0.5, jnp.float32),
        alpha_dense=jnp.full((1, 1), -0.3, jnp.float32),
        interp=make_interp_matrix(),
    )


# ---------------------------------------------------------------------------
# Pure-JAX reference (unfolded weights, same math) for a sanity check.
# ---------------------------------------------------------------------------
def reference(x, objs, p):
    def ln(t, g, b):
        mu = jnp.mean(t, -1, keepdims=True)
        var = jnp.mean((t - mu) ** 2, -1, keepdims=True)
        return (t - mu) / jnp.sqrt(var + LN_EPS) * g + b

    with jax.default_matmul_precision("highest"):
        objs_p = objs @ p["w_lin"] + p["b_lin"]
        cat = jnp.concatenate([x, objs_p], axis=1)
        h1 = ln(cat, p["ln1_g"], p["ln1_b"])
        q, k, v = h1 @ p["w_q"], h1 @ p["w_k"], h1 @ p["w_v"]
        n = cat.shape[1]
        sh = lambda t: t.reshape(B, n, HEADS, D_HEAD).transpose(0, 2, 1, 3)
        qh, kh, vh = sh(q), sh(k), sh(v)
        sim = jnp.einsum("bhid,bhjd->bhij", qh, kh) * ATTN_SCALE
        attn = jax.nn.softmax(sim, axis=-1)
        o = jnp.einsum("bhij,bhjd->bhid", attn, vh)
        o = o.transpose(0, 2, 1, 3).reshape(B, n, INNER)
        attn_out = o @ p["w_o"] + p["b_o"]
        residual = jnp.einsum("vg,bgc->bvc", p["interp"], attn_out[:, N_VIS:, :])
        x1 = x + jnp.tanh(p["alpha_attn"][0, 0]) * residual
        h2 = ln(x1, p["ln2_g"], p["ln2_b"])
        proj = h2 @ p["ff_w1"] + p["ff_b1"]
        val, gate = proj[..., :FF_INNER], proj[..., FF_INNER:]
        ff = (val * jax.nn.gelu(gate, approximate=False)) @ p["ff_w2"] + p["ff_b2"]
        return x1 + jnp.tanh(p["alpha_dense"][0, 0]) * ff


if __name__ == "__main__":
    key = jax.random.PRNGKey(0)
    kx, ko, kp = jax.random.split(key, 3)
    x = jax.random.normal(kx, (B, N_VIS, QUERY_DIM), jnp.float32)
    objs = jax.random.normal(ko, (B, N_GRD, CONTEXT_DIM), jnp.float32)
    params = init_params(kp)
    slab = pack_params(params)

    out = jax.block_until_ready(gated_self_attention_dense2(x, objs, slab))
    ref = jax.block_until_ready(reference(x, objs, params))

    assert out.shape == (B, N_VIS, QUERY_DIM) and out.dtype == jnp.float32
    assert bool(jnp.all(jnp.isfinite(out)))
    assert bool(jnp.allclose(out, ref, rtol=3e-2, atol=3e-2))
    print("KERNEL_OK")
</pallas_src>

<mosaic_0001>
module attributes {stable_mosaic.version = 11 : i64} {
  func.func @_gated_kernel(%arg0: i32, %arg1: memref<128x32xf32, #tpu.memory_space<vmem>>, %arg2: memref<32x16xf32, #tpu.memory_space<vmem>>, %arg3: memref<384x128xf32, #tpu.memory_space<vmem>>, %arg4: memref<128x32xf32, #tpu.memory_space<vmem>>, %arg5: memref<160x32xf32, #tpu.memory_space<vmem>>, %arg6: memref<128x32xf32, #tpu.memory_space<vmem>>, %arg7: memref<16x256xf32, #tpu.memory_space<vmem>>, %arg8: memref<32x32xf32, #tpu.memory_space<vmem>>) attributes {dimension_semantics = [#tpu.dimension_semantics<arbitrary>], iteration_bounds = array<i64: 1>, scalar_prefetch = 0 : i64, scratch_operands = 4 : i64, tpu.core_type = #tpu.core_type<tc>, window_params = [{pipeline_mode = #tpu.pipeline_mode<synchronous>, transform_indices = @transform_0, window_bounds = array<i64: 128, 32>}, {pipeline_mode = #tpu.pipeline_mode<synchronous>, transform_indices = @transform_1, window_bounds = array<i64: 32, 16>}, {pipeline_mode = #tpu.pipeline_mode<synchronous>, transform_indices = @transform_2, window_bounds = array<i64: 384, 128>}, {pipeline_mode = #tpu.pipeline_mode<synchronous>, transform_indices = @transform_3, window_bounds = array<i64: 128, 32>}]} {
    %c0 = arith.constant 0 : index
    %c0_0 = arith.constant 0 : index
    %0 = vector.load %arg1[%c0, %c0_0] : memref<128x32xf32, #tpu.memory_space<vmem>>, vector<128x32xf32>
    %c0_1 = arith.constant 0 : index
    %c0_2 = arith.constant 0 : index
    %1 = vector.load %arg2[%c0_1, %c0_2] : memref<32x16xf32, #tpu.memory_space<vmem>>, vector<32x16xf32>
    %c0_3 = arith.constant 0 : index
    %c0_4 = arith.constant 0 : index
    %2 = vector.load %arg3[%c0_3, %c0_4] : memref<384x128xf32, #tpu.memory_space<vmem>>, vector<16x32xf32>
    %cst = arith.constant dense<0.000000e+00> : vector<32x32xf32>
    %3 = tpu.matmul %1, %2, %cst {dimension_numbers = #tpu.dot_dimension_numbers<[1], [0], [0], [1], [0, 0, 1, 1], [], []>} : vector<32x16xf32>, vector<16x32xf32>, vector<32x32xf32> -> vector<32x32xf32>
    %c368 = arith.constant 368 : index
    %c0_5 = arith.constant 0 : index
    %4 = vector.load %arg3[%c368, %c0_5] : memref<384x128xf32, #tpu.memory_space<vmem>>, vector<1x32xf32>
    %5 = vector.broadcast %4 : vector<1x32xf32> to vector<32x32xf32>
    %6 = arith.addf %3, %5 : vector<32x32xf32>
    %7 = vector.extract_strided_slice %0 {offsets = [0, 0], sizes = [64, 32], strides = [1, 1]} : vector<128x32xf32> to vector<64x32xf32>
    %c0_6 = arith.constant 0 : index
    %c0_7 = arith.constant 0 : index
    %8 = vector.load %arg5[%c0_6, %c0_7] : memref<160x32xf32, #tpu.memory_space<vmem>>, vector<64x32xf32>
    tpu.vector_store %arg5[%c0_6, %c0_7], %7 {strides = array<i32>} : memref<160x32xf32, #tpu.memory_space<vmem>>, vector<64x32xf32>,
    %9 = vector.extract_strided_slice %6 {offsets = [0, 0], sizes = [16, 32], strides = [1, 1]} : vector<32x32xf32> to vector<16x32xf32>
    %c64 = arith.constant 64 : index
    %c0_8 = arith.constant 0 : index
    %10 = vector.load %arg5[%c64, %c0_8] : memref<160x32xf32, #tpu.memory_space<vmem>>, vector<16x32xf32>
    tpu.vector_store %arg5[%c64, %c0_8], %9 {strides = array<i32>} : memref<160x32xf32, #tpu.memory_space<vmem>>, vector<16x32xf32>,
    %11 = vector.extract_strided_slice %0 {offsets = [64, 0], sizes = [64, 32], strides = [1, 1]} : vector<128x32xf32> to vector<64x32xf32>
    %c80 = arith.constant 80 : index
    %c0_9 = arith.constant 0 : index
    %12 = vector.load %arg5[%c80, %c0_9] : memref<160x32xf32, #tpu.memory_space<vmem>>, vector<64x32xf32>
    tpu.vector_store %arg5[%c80, %c0_9], %11 {strides = array<i32>} : memref<160x32xf32, #tpu.memory_space<vmem>>, vector<64x32xf32>,
    %13 = vector.extract_strided_slice %6 {offsets = [16, 0], sizes = [16, 32], strides = [1, 1]} : vector<32x32xf32> to vector<16x32xf32>
    %c144 = arith.constant 144 : index
    %c0_10 = arith.constant 0 : index
    %14 = vector.load %arg5[%c144, %c0_10] : memref<160x32xf32, #tpu.memory_space<vmem>>, vector<16x32xf32>
    tpu.vector_store %arg5[%c144, %c0_10], %13 {strides = array<i32>} : memref<160x32xf32, #tpu.memory_space<vmem>>, vector<16x32xf32>,
    %c0_11 = arith.constant 0 : index
    %c0_12 = arith.constant 0 : index
    %15 = vector.load %arg5[%c0_11, %c0_12] : memref<160x32xf32, #tpu.memory_space<vmem>>, vector<160x32xf32>
    %cst_13 = arith.constant dense<0.000000e+00> : vector<160xf32>
    %16 = vector.multi_reduction <add>, %15, %cst_13 [1] : vector<160x32xf32> to vector<160xf32>
    %17 = vector.shape_cast %16 : vector<160xf32> to vector<160x1xf32>
    %cst_14 = arith.constant 3.200000e+01 : f32
    %18 = vector.broadcast %cst_14 : f32 to vector<160x1xf32>
    %19 = arith.divf %17, %18 : vector<160x1xf32>
    %20 = vector.broadcast %19 : vector<160x1xf32> to vector<160x32xf32>
    %21 = arith.subf %15, %20 : vector<160x32xf32>
    %22 = arith.mulf %21, %21 : vector<160x32xf32>
    %cst_15 = arith.constant dense<0.000000e+00> : vector<160xf32>
    %23 = vector.multi_reduction <add>, %22, %cst_15 [1] : vector<160x32xf32> to vector<160xf32>
    %24 = vector.shape_cast %23 : vector<160xf32> to vector<160x1xf32>
    %cst_16 = arith.constant 3.200000e+01 : f32
    %25 = vector.broadcast %cst_16 : f32 to vector<160x1xf32>
    %26 = arith.divf %24, %25 : vector<160x1xf32>
    %27 = vector.broadcast %19 : vector<160x1xf32> to vector<160x32xf32>
    %28 = arith.subf %15, %27 : vector<160x32xf32>
    %cst_17 = arith.constant 9.99999974E-6 : f32
    %29 = vector.broadcast %cst_17 : f32 to vector<160x1xf32>
    %30 = arith.addf %26, %29 : vector<160x1xf32>
    %31 = math.rsqrt %30 : vector<160x1xf32>
    %32 = vector.broadcast %31 : vector<160x1xf32> to vector<160x32xf32>
    %33 = arith.mulf %28, %32 : vector<160x32xf32>
    %c369 = arith.constant 369 : index
    %c0_18 = arith.constant 0 : index
    %34 = vector.load %arg3[%c369, %c0_18] : memref<384x128xf32, #tpu.memory_space<vmem>>, vector<1x32xf32>
    %35 = vector.broadcast %34 : vector<1x32xf32> to vector<160x32xf32>
    %36 = arith.mulf %33, %35 : vector<160x32xf32>
    %c370 = arith.constant 370 : index
    %c0_19 = arith.constant 0 : index
    %37 = vector.load %arg3[%c370, %c0_19] : memref<384x128xf32, #tpu.memory_space<vmem>>, vector<1x32xf32>
    %38 = vector.broadcast %37 : vector<1x32xf32> to vector<160x32xf32>
    %39 = arith.addf %36, %38 : vector<160x32xf32>
    %c16 = arith.constant 16 : index
    %c0_20 = arith.constant 0 : index
    %40 = vector.load %arg3[%c16, %c0_20] : memref<384x128xf32, #tpu.memory_space<vmem>>, vector<32x128xf32>
    %c48 = arith.constant 48 : index
    %c0_21 = arith.constant 0 : index
    %41 = vector.load %arg3[%c48, %c0_21] : memref<384x128xf32, #tpu.memory_space<vmem>>, vector<32x128xf32>
    %c80_22 = arith.constant 80 : index
    %c0_23 = arith.constant 0 : index
    %42 = vector.load %arg3[%c80_22, %c0_23] : memref<384x128xf32, #tpu.memory_space<vmem>>, vector<32x128xf32>
    %c112 = arith.constant 112 : index
    %c0_24 = arith.constant 0 : index
    %43 = vector.load %arg3[%c112, %c0_24] : memref<384x128xf32, #tpu.memory_space<vmem>>, vector<32x128xf32>
    %44 = vector.extract_strided_slice %39 {offsets = [0, 0], sizes = [80, 32], strides = [1, 1]} : vector<160x32xf32> to vector<80x32xf32>
    %45 = vector.extract_strided_slice %39 {offsets = [64, 0], sizes = [16, 32], strides = [1, 1]} : vector<160x32xf32> to vector<16x32xf32>
    %cst_25 = arith.constant dense<0.000000e+00> : vector<16x128xf32>
    %46 = tpu.matmul %45, %40, %cst_25 {dimension_numbers = #tpu.dot_dimension_numbers<[1], [0], [0], [1], [0, 0, 1, 1], [], []>} : vector<16x32xf32>, vector<32x128xf32>, vector<16x128xf32> -> vector<16x128xf32>
    %47 = vector.extract_strided_slice %46 {offsets = [0, 0], sizes = [16, 32], strides = [1, 1]} : vector<16x128xf32> to vector<16x32xf32>
    %c0_26 = arith.constant 0 : index
    %c0_27 = arith.constant 0 : index
    %48 = vector.load %arg6[%c0_26, %c0_27] : memref<128x32xf32, #tpu.memory_space<vmem>>, vector<16x32xf32>
    tpu.vector_store %arg6[%c0_26, %c0_27], %47 {strides = array<i32>} : memref<128x32xf32, #tpu.memory_space<vmem>>, vector<16x32xf32>,
    %49 = vector.extract_strided_slice %46 {offsets = [0, 32], sizes = [16, 32], strides = [1, 1]} : vector<16x128xf32> to vector<16x32xf32>
    %c16_28 = arith.constant 16 : index
    %c0_29 = arith.constant 0 : index
    %50 = vector.load %arg6[%c16_28, %c0_29] : memref<128x32xf32, #tpu.memory_space<vmem>>, vector<16x32xf32>
    tpu.vector_store %arg6[%c16_28, %c0_29], %49 {strides = array<i32>} : memref<128x32xf32, #tpu.memory_space<vmem>>, vector<16x32xf32>,
    %51 = vector.extract_strided_slice %46 {offsets = [0, 64], sizes = [16, 32], strides = [1, 1]} : vector<16x128xf32> to vector<16x32xf32>
    %c32 = arith.constant 32 : index
    %c0_30 = arith.constant 0 : index
    %52 = vector.load %arg6[%c32, %c0_30] : memref<128x32xf32, #tpu.memory_space<vmem>>, vector<16x32xf32>
    tpu.vector_store %arg6[%c32, %c0_30], %51 {strides = array<i32>} : memref<128x32xf32, #tpu.memory_space<vmem>>, vector<16x32xf32>,
    %53 = vector.extract_strided_slice %46 {offsets = [0, 96], sizes = [16, 32], strides = [1, 1]} : vector<16x128xf32> to vector<16x32xf32>
    %c48_31 = arith.constant 48 : index
    %c0_32 = arith.constant 0 : index
    %54 = vector.load %arg6[%c48_31, %c0_32] : memref<128x32xf32, #tpu.memory_space<vmem>>, vector<16x32xf32>
    tpu.vector_store %arg6[%c48_31, %c0_32], %53 {strides = array<i32>} : memref<128x32xf32, #tpu.memory_space<vmem>>, vector<16x32xf32>,
    %cst_33 = arith.constant dense<0.000000e+00> : vector<16x128xf32>
    %55 = tpu.matmul %45, %41, %cst_33 {dimension_numbers = #tpu.dot_dimension_numbers<[1], [0], [0], [1], [0, 0, 1, 1], [], []>} : vector<16x32xf32>, vector<32x128xf32>, vector<16x128xf32> -> vector<16x128xf32>
    %56 = vector.extract_strided_slice %55 {offsets = [0, 0], sizes = [16, 32], strides = [1, 1]} : vector<16x128xf32> to vector<16x32xf32>
    %c64_34 = arith.constant 64 : index
    %c0_35 = arith.constant 0 : index
    %57 = vector.load %arg6[%c64_34, %c0_35] : memref<128x32xf32, #tpu.memory_space<vmem>>, vector<16x32xf32>
    tpu.vector_store %arg6[%c64_34, %c0_35], %56 {strides = array<i32>} : memref<128x32xf32, #tpu.memory_space<vmem>>, vector<16x32xf32>,
    %58 = vector.extract_strided_slice %55 {offsets = [0, 32], sizes = [16, 32], strides = [1, 1]} : vector<16x128xf32> to vector<16x32xf32>
    %c80_36 = arith.constant 80 : index
    %c0_37 = arith.constant 0 : index
    %59 = vector.load %arg6[%c80_36, %c0_37] : memref<128x32xf32, #tpu.memory_space<vmem>>, vector<16x32xf32>
    tpu.vector_store %arg6[%c80_36, %c0_37], %58 {strides = array<i32>} : memref<128x32xf32, #tpu.memory_space<vmem>>, vector<16x32xf32>,
    %60 = vector.extract_strided_slice %55 {offsets = [0, 64], sizes = [16, 32], strides = [1, 1]} : vector<16x128xf32> to vector<16x32xf32>
    %c96 = arith.constant 96 : index
    %c0_38 = arith.constant 0 : index
    %61 = vector.load %arg6[%c96, %c0_38] : memref<128x32xf32, #tpu.memory_space<vmem>>, vector<16x32xf32>
    tpu.vector_store %arg6[%c96, %c0_38], %60 {strides = array<i32>} : memref<128x32xf32, #tpu.memory_space<vmem>>, vector<16x32xf32>,
    %62 = vector.extract_strided_slice %55 {offsets = [0, 96], sizes = [16, 32], strides = [1, 1]} : vector<16x128xf32> to vector<16x32xf32>
    %c112_39 = arith.constant 112 : index
    %c0_40 = arith.constant 0 : index
    %63 = vector.load %arg6[%c112_39, %c0_40] : memref<128x32xf32, #tpu.memory_space<vmem>>, vector<16x32xf32>
    tpu.vector_store %arg6[%c112_39, %c0_40], %62 {strides = array<i32>} : memref<128x32xf32, #tpu.memory_space<vmem>>, vector<16x32xf32>,
    %c0_41 = arith.constant 0 : index
    %c0_42 = arith.constant 0 : index
    %64 = vector.load %arg6[%c0_41, %c0_42] : memref<128x32xf32, #tpu.memory_space<vmem>>, vector<128x32xf32>
    %cst_43 = arith.constant dense<0.000000e+00> : vector<128x80xf32>
    %65 = tpu.matmul %64, %44, %cst_43 {dimension_numbers = #tpu.dot_dimension_numbers<[1], [1], [0], [0], [0, 0, 1, 0], [], []>} : vector<128x32xf32>, vector<80x32xf32>, vector<128x80xf32> -> vector<128x80xf32>
    %cst_44 = arith.constant dense<0xFF800000> : vector<128xf32>
    %66 = vector.multi_reduction <maximumf>, %65, %cst_44 [1] : vector<128x80xf32> to vector<128xf32>
    %67 = vector.shape_cast %66 : vector<128xf32> to vector<128x1xf32>
    %68 = vector.broadcast %67 : vector<128x1xf32> to vector<128x80xf32>
    %69 = arith.subf %65, %68 : vector<128x80xf32>
    %70 = math.exp %69 : vector<128x80xf32>
    %cst_45 = arith.constant dense<0.000000e+00> : vector<128xf32>
    %71 = vector.multi_reduction <add>, %70, %cst_45 [1] : vector<128x80xf32> to vector<128xf32>
    %72 = vector.shape_cast %71 : vector<128xf32> to vector<128x1xf32>
    %73 = tpu.reciprocal %72 {approx = true} : vector<128x1xf32> -> vector<128x1xf32>
    %74 = vector.broadcast %73 : vector<128x1xf32> to vector<128x80xf32>
    %75 = arith.mulf %70, %74 : vector<128x80xf32>
    %cst_46 = arith.constant dense<0.000000e+00> : vector<128x32xf32>
    %76 = tpu.matmul %75, %44, %cst_46 {dimension_numbers = #tpu.dot_dimension_numbers<[1], [0], [0], [1], [0, 0, 1, 1], [], []>} : vector<128x80xf32>, vector<80x32xf32>, vector<128x32xf32> -> vector<128x32xf32>
    %77 = vector.extract_strided_slice %76 {offsets = [0, 0], sizes = [16, 32], strides = [1, 1]} : vector<128x32xf32> to vector<16x32xf32>
    %c0_47 = arith.constant 0 : index
    %c0_48 = arith.constant 0 : index
    %78 = vector.load %arg7[%c0_47, %c0_48] : memref<16x256xf32, #tpu.memory_space<vmem>>, vector<16x32xf32>
    tpu.vector_store %arg7[%c0_47, %c0_48], %77 {strides = array<i32>} : memref<16x256xf32, #tpu.memory_space<vmem>>, vector<16x32xf32>,
    %79 = vector.extract_strided_slice %76 {offsets = [16, 0], sizes = [16, 32], strides = [1, 1]} : vector<128x32xf32> to vector<16x32xf32>
    %c0_49 = arith.constant 0 : index
    %c32_50 = arith.constant 32 : index
    %80 = vector.load %arg7[%c0_49, %c32_50] : memref<16x256xf32, #tpu.memory_space<vmem>>, vector<16x32xf32>
    tpu.vector_store %arg7[%c0_49, %c32_50], %79 {strides = array<i32>} : memref<16x256xf32, #tpu.memory_space<vmem>>, vector<16x32xf32>,
    %81 = vector.extract_strided_slice %76 {offsets = [32, 0], sizes = [16, 32], strides = [1, 1]} : vector<128x32xf32> to vector<16x32xf32>
    %c0_51 = arith.constant 0 : index
    %c64_52 = arith.constant 64 : index
    %82 = vector.load %arg7[%c0_51, %c64_52] : memref<16x256xf32, #tpu.memory_space<vmem>>, vector<16x32xf32>
    tpu.vector_store %arg7[%c0_51, %c64_52], %81 {strides = array<i32>} : memref<16x256xf32, #tpu.memory_space<vmem>>, vector<16x32xf32>,
    %83 = vector.extract_strided_slice %76 {offsets = [48, 0], sizes = [16, 32], strides = [1, 1]} : vector<128x32xf32> to vector<16x32xf32>
    %c0_53 = arith.constant 0 : index
    %c96_54 = arith.constant 96 : index
    %84 = vector.load %arg7[%c0_53, %c96_54] : memref<16x256xf32, #tpu.memory_space<vmem>>, vector<16x32xf32>
    tpu.vector_store %arg7[%c0_53, %c96_54], %83 {strides = array<i32>} : memref<16x256xf32, #tpu.memory_space<vmem>>, vector<16x32xf32>,
    %85 = vector.extract_strided_slice %76 {offsets = [64, 0], sizes = [16, 32], strides = [1, 1]} : vector<128x32xf32> to vector<16x32xf32>
    %c0_55 = arith.constant 0 : index
    %c128 = arith.constant 128 : index
    %86 = vector.load %arg7[%c0_55, %c128] : memref<16x256xf32, #tpu.memory_space<vmem>>, vector<16x32xf32>
    tpu.vector_store %arg7[%c0_55, %c128], %85 {strides = array<i32>} : memref<16x256xf32, #tpu.memory_space<vmem>>, vector<16x32xf32>,
    %87 = vector.extract_strided_slice %76 {offsets = [80, 0], sizes = [16, 32], strides = [1, 1]} : vector<128x32xf32> to vector<16x32xf32>
    %c0_56 = arith.constant 0 : index
    %c160 = arith.constant 160 : index
    %88 = vector.load %arg7[%c0_56, %c160] : memref<16x256xf32, #tpu.memory_space<vmem>>, vector<16x32xf32>
    tpu.vector_store %arg7[%c0_56, %c160], %87 {strides = array<i32>} : memref<16x256xf32, #tpu.memory_space<vmem>>, vector<16x32xf32>,
    %89 = vector.extract_strided_slice %76 {offsets = [96, 0], sizes = [16, 32], strides = [1, 1]} : vector<128x32xf32> to vector<16x32xf32>
    %c0_57 = arith.constant 0 : index
    %c192 = arith.constant 192 : index
    %90 = vector.load %arg7[%c0_57, %c192] : memref<16x256xf32, #tpu.memory_space<vmem>>, vector<16x32xf32>
    tpu.vector_store %arg7[%c0_57, %c192], %89 {strides = array<i32>} : memref<16x256xf32, #tpu.memory_space<vmem>>, vector<16x32xf32>,
    %91 = vector.extract_strided_slice %76 {offsets = [112, 0], sizes = [16, 32], strides = [1, 1]} : vector<128x32xf32> to vector<16x32xf32>
    %c0_58 = arith.constant 0 : index
    %c224 = arith.constant 224 : index
    %92 = vector.load %arg7[%c0_58, %c224] : memref<16x256xf32, #tpu.memory_space<vmem>>, vector<16x32xf32>
    tpu.vector_store %arg7[%c0_58, %c224], %91 {strides = array<i32>} : memref<16x256xf32, #tpu.memory_space<vmem>>, vector<16x32xf32>,
    %c0_59 = arith.constant 0 : index
    %c0_60 = arith.constant 0 : index
    %93 = vector.load %arg7[%c0_59, %c0_60] : memref<16x256xf32, #tpu.memory_space<vmem>>, vector<16x256xf32>
    %94 = vector.extract_strided_slice %93 {offsets = [0, 0], sizes = [16, 128], strides = [1, 1]} : vector<16x256xf32> to vector<16x128xf32>
    %cst_61 = arith.constant dense<0.000000e+00> : vector<16x32xf32>
    %95 = tpu.matmul %94, %42, %cst_61 {dimension_numbers = #tpu.dot_dimension_numbers<[1], [1], [0], [0], [0, 0, 1, 0], [], []>} : vector<16x128xf32>, vector<32x128xf32>, vector<16x32xf32> -> vector<16x32xf32>
    %96 = vector.extract_strided_slice %93 {offsets = [0, 128], sizes = [16, 128], strides = [1, 1]} : vector<16x256xf32> to vector<16x128xf32>
    %cst_62 = arith.constant dense<0.000000e+00> : vector<16x32xf32>
    %97 = tpu.matmul %96, %43, %cst_62 {dimension_numbers = #tpu.dot_dimension_numbers<[1], [1], [0], [0], [0, 0, 1, 0], [], []>} : vector<16x128xf32>, vector<32x128xf32>, vector<16x32xf32> -> vector<16x32xf32>
    %98 = arith.addf %95, %97 : vector<16x32xf32>
    %c0_63 = arith.constant 0 : index
    %c0_64 = arith.constant 0 : index
    %99 = vector.load %arg8[%c0_63, %c0_64] : memref<32x32xf32, #tpu.memory_space<vmem>>, vector<16x32xf32>
    tpu.vector_store %arg8[%c0_63, %c0_64], %98 {strides = array<i32>} : memref<32x32xf32, #tpu.memory_space<vmem>>, vector<16x32xf32>,
    %100 = vector.extract_strided_slice %39 {offsets = [80, 0], sizes = [80, 32], strides = [1, 1]} : vector<160x32xf32> to vector<80x32xf32>
    %101 = vector.extract_strided_slice %39 {offsets = [144, 0], sizes = [16, 32], strides = [1, 1]} : vector<160x32xf32> to vector<16x32xf32>
    %cst_65 = arith.constant dense<0.000000e+00> : vector<16x128xf32>
    %102 = tpu.matmul %101, %40, %cst_65 {dimension_numbers = #tpu.dot_dimension_numbers<[1], [0], [0], [1], [0, 0, 1, 1], [], []>} : vector<16x32xf32>, vector<32x128xf32>, vector<16x128xf32> -> vector<16x128xf32>
    %103 = vector.extract_strided_slice %102 {offsets = [0, 0], sizes = [16, 32], strides = [1, 1]} : vector<16x128xf32> to vector<16x32xf32>
    %c0_66 = arith.constant 0 : index
    %c0_67 = arith.constant 0 : index
    %104 = vector.load %arg6[%c0_66, %c0_67] : memref<128x32xf32, #tpu.memory_space<vmem>>, vector<16x32xf32>
    tpu.vector_store %arg6[%c0_66, %c0_67], %103 {strides = array<i32>} : memref<128x32xf32, #tpu.memory_space<vmem>>, vector<16x32xf32>,
    %105 = vector.extract_strided_slice %102 {offsets = [0, 32], sizes = [16, 32], strides = [1, 1]} : vector<16x128xf32> to vector<16x32xf32>
    %c16_68 = arith.constant 16 : index
    %c0_69 = arith.constant 0 : index
    %106 = vector.load %arg6[%c16_68, %c0_69] : memref<128x32xf32, #tpu.memory_space<vmem>>, vector<16x32xf32>
    tpu.vector_store %arg6[%c16_68, %c0_69], %105 {strides = array<i32>} : memref<128x32xf32, #tpu.memory_space<vmem>>, vector<16x32xf32>,
    %107 = vector.extract_strided_slice %102 {offsets = [0, 64], sizes = [16, 32], strides = [1, 1]} : vector<16x128xf32> to vector<16x32xf32>
    %c32_70 = arith.constant 32 : index
    %c0_71 = arith.constant 0 : index
    %108 = vector.load %arg6[%c32_70, %c0_71] : memref<128x32xf32, #tpu.memory_space<vmem>>, vector<16x32xf32>
    tpu.vector_store %arg6[%c32_70, %c0_71], %107 {strides = array<i32>} : memref<128x32xf32, #tpu.memory_space<vmem>>, vector<16x32xf32>,
    %109 = vector.extract_strided_slice %102 {offsets = [0, 96], sizes = [16, 32], strides = [1, 1]} : vector<16x128xf32> to vector<16x32xf32>
    %c48_72 = arith.constant 48 : index
    %c0_73 = arith.constant 0 : index
    %110 = vector.load %arg6[%c48_72, %c0_73] : memref<128x32xf32, #tpu.memory_space<vmem>>, vector<16x32xf32>
    tpu.vector_store %arg6[%c48_72, %c0_73], %109 {strides = array<i32>} : memref<128x32xf32, #tpu.memory_space<vmem>>, vector<16x32xf32>,
    %cst_74 = arith.constant dense<0.000000e+00> : vector<16x128xf32>
    %111 = tpu.matmul %101, %41, %cst_74 {dimension_numbers = #tpu.dot_dimension_numbers<[1], [0], [0], [1], [0, 0, 1, 1], [], []>} : vector<16x32xf32>, vector<32x128xf32>, vector<16x128xf32> -> vector<16x128xf32>
    %112 = vector.extract_strided_slice %111 {offsets = [0, 0], sizes = [16, 32], strides = [1, 1]} : vector<16x128xf32> to vector<16x32xf32>
    %c64_75 = arith.constant 64 : index
    %c0_76 = arith.constant 0 : index
    %113 = vector.load %arg6[%c64_75, %c0_76] : memref<128x32xf32, #tpu.memory_space<vmem>>, vector<16x32xf32>
    tpu.vector_store %arg6[%c64_75, %c0_76], %112 {strides = array<i32>} : memref<128x32xf32, #tpu.memory_space<vmem>>, vector<16x32xf32>,
    %114 = vector.extract_strided_slice %111 {offsets = [0, 32], sizes = [16, 32], strides = [1, 1]} : vector<16x128xf32> to vector<16x32xf32>
    %c80_77 = arith.constant 80 : index
    %c0_78 = arith.constant 0 : index
    %115 = vector.load %arg6[%c80_77, %c0_78] : memref<128x32xf32, #tpu.memory_space<vmem>>, vector<16x32xf32>
    tpu.vector_store %arg6[%c80_77, %c0_78], %114 {strides = array<i32>} : memref<128x32xf32, #tpu.memory_space<vmem>>, vector<16x32xf32>,
    %116 = vector.extract_strided_slice %111 {offsets = [0, 64], sizes = [16, 32], strides = [1, 1]} : vector<16x128xf32> to vector<16x32xf32>
    %c96_79 = arith.constant 96 : index
    %c0_80 = arith.constant 0 : index
    %117 = vector.load %arg6[%c96_79, %c0_80] : memref<128x32xf32, #tpu.memory_space<vmem>>, vector<16x32xf32>
    tpu.vector_store %arg6[%c96_79, %c0_80], %116 {strides = array<i32>} : memref<128x32xf32, #tpu.memory_space<vmem>>, vector<16x32xf32>,
    %118 = vector.extract_strided_slice %111 {offsets = [0, 96], sizes = [16, 32], strides = [1, 1]} : vector<16x128xf32> to vector<16x32xf32>
    %c112_81 = arith.constant 112 : index
    %c0_82 = arith.constant 0 : index
    %119 = vector.load %arg6[%c112_81, %c0_82] : memref<128x32xf32, #tpu.memory_space<vmem>>, vector<16x32xf32>
    tpu.vector_store %arg6[%c112_81, %c0_82], %118 {strides = array<i32>} : memref<128x32xf32, #tpu.memory_space<vmem>>, vector<16x32xf32>,
    %c0_83 = arith.constant 0 : index
    %c0_84 = arith.constant 0 : index
    %120 = vector.load %arg6[%c0_83, %c0_84] : memref<128x32xf32, #tpu.memory_space<vmem>>, vector<128x32xf32>
    %cst_85 = arith.constant dense<0.000000e+00> : vector<128x80xf32>
    %121 = tpu.matmul %120, %100, %cst_85 {dimension_numbers = #tpu.dot_dimension_numbers<[1], [1], [0], [0], [0, 0, 1, 0], [], []>} : vector<128x32xf32>, vector<80x32xf32>, vector<128x80xf32> -> vector<128x80xf32>
    %cst_86 = arith.constant dense<0xFF800000> : vector<128xf32>
    %122 = vector.multi_reduction <maximumf>, %121, %cst_86 [1] : vector<128x80xf32> to vector<128xf32>
    %123 = vector.shape_cast %122 : vector<128xf32> to vector<128x1xf32>
    %124 = vector.broadcast %123 : vector<128x1xf32> to vector<128x80xf32>
    %125 = arith.subf %121, %124 : vector<128x80xf32>
    %126 = math.exp %125 : vector<128x80xf32>
    %cst_87 = arith.constant dense<0.000000e+00> : vector<128xf32>
    %127 = vector.multi_reduction <add>, %126, %cst_87 [1] : vector<128x80xf32> to vector<128xf32>
    %128 = vector.shape_cast %127 : vector<128xf32> to vector<128x1xf32>
    %129 = tpu.reciprocal %128 {approx = true} : vector<128x1xf32> -> vector<128x1xf32>
    %130 = vector.broadcast %129 : vector<128x1xf32> to vector<128x80xf32>
    %131 = arith.mulf %126, %130 : vector<128x80xf32>
    %cst_88 = arith.constant dense<0.000000e+00> : vector<128x32xf32>
    %132 = tpu.matmul %131, %100, %cst_88 {dimension_numbers = #tpu.dot_dimension_numbers<[1], [0], [0], [1], [0, 0, 1, 1], [], []>} : vector<128x80xf32>, vector<80x32xf32>, vector<128x32xf32> -> vector<128x32xf32>
    %133 = vector.extract_strided_slice %132 {offsets = [0, 0], sizes = [16, 32], strides = [1, 1]} : vector<128x32xf32> to vector<16x32xf32>
    %c0_89 = arith.constant 0 : index
    %c0_90 = arith.constant 0 : index
    %134 = vector.load %arg7[%c0_89, %c0_90] : memref<16x256xf32, #tpu.memory_space<vmem>>, vector<16x32xf32>
    tpu.vector_store %arg7[%c0_89, %c0_90], %133 {strides = array<i32>} : memref<16x256xf32, #tpu.memory_space<vmem>>, vector<16x32xf32>,
    %135 = vector.extract_strided_slice %132 {offsets = [16, 0], sizes = [16, 32], strides = [1, 1]} : vector<128x32xf32> to vector<16x32xf32>
    %c0_91 = arith.constant 0 : index
    %c32_92 = arith.constant 32 : index
    %136 = vector.load %arg7[%c0_91, %c32_92] : memref<16x256xf32, #tpu.memory_space<vmem>>, vector<16x32xf32>
    tpu.vector_store %arg7[%c0_91, %c32_92], %135 {strides = array<i32>} : memref<16x256xf32, #tpu.memory_space<vmem>>, vector<16x32xf32>,
    %137 = vector.extract_strided_slice %132 {offsets = [32, 0], sizes = [16, 32], strides = [1, 1]} : vector<128x32xf32> to vector<16x32xf32>
    %c0_93 = arith.constant 0 : index
    %c64_94 = arith.constant 64 : index
    %138 = vector.load %arg7[%c0_93, %c64_94] : memref<16x256xf32, #tpu.memory_space<vmem>>, vector<16x32xf32>
    tpu.vector_store %arg7[%c0_93, %c64_94], %137 {strides = array<i32>} : memref<16x256xf32, #tpu.memory_space<vmem>>, vector<16x32xf32>,
    %139 = vector.extract_strided_slice %132 {offsets = [48, 0], sizes = [16, 32], strides = [1, 1]} : vector<128x32xf32> to vector<16x32xf32>
    %c0_95 = arith.constant 0 : index
    %c96_96 = arith.constant 96 : index
    %140 = vector.load %arg7[%c0_95, %c96_96] : memref<16x256xf32, #tpu.memory_space<vmem>>, vector<16x32xf32>
    tpu.vector_store %arg7[%c0_95, %c96_96], %139 {strides = array<i32>} : memref<16x256xf32, #tpu.memory_space<vmem>>, vector<16x32xf32>,
    %141 = vector.extract_strided_slice %132 {offsets = [64, 0], sizes = [16, 32], strides = [1, 1]} : vector<128x32xf32> to vector<16x32xf32>
    %c0_97 = arith.constant 0 : index
    %c128_98 = arith.constant 128 : index
    %142 = vector.load %arg7[%c0_97, %c128_98] : memref<16x256xf32, #tpu.memory_space<vmem>>, vector<16x32xf32>
    tpu.vector_store %arg7[%c0_97, %c128_98], %141 {strides = array<i32>} : memref<16x256xf32, #tpu.memory_space<vmem>>, vector<16x32xf32>,
    %143 = vector.extract_strided_slice %132 {offsets = [80, 0], sizes = [16, 32], strides = [1, 1]} : vector<128x32xf32> to vector<16x32xf32>
    %c0_99 = arith.constant 0 : index
    %c160_100 = arith.constant 160 : index
    %144 = vector.load %arg7[%c0_99, %c160_100] : memref<16x256xf32, #tpu.memory_space<vmem>>, vector<16x32xf32>
    tpu.vector_store %arg7[%c0_99, %c160_100], %143 {strides = array<i32>} : memref<16x256xf32, #tpu.memory_space<vmem>>, vector<16x32xf32>,
    %145 = vector.extract_strided_slice %132 {offsets = [96, 0], sizes = [16, 32], strides = [1, 1]} : vector<128x32xf32> to vector<16x32xf32>
    %c0_101 = arith.constant 0 : index
    %c192_102 = arith.constant 192 : index
    %146 = vector.load %arg7[%c0_101, %c192_102] : memref<16x256xf32, #tpu.memory_space<vmem>>, vector<16x32xf32>
    tpu.vector_store %arg7[%c0_101, %c192_102], %145 {strides = array<i32>} : memref<16x256xf32, #tpu.memory_space<vmem>>, vector<16x32xf32>,
    %147 = vector.extract_strided_slice %132 {offsets = [112, 0], sizes = [16, 32], strides = [1, 1]} : vector<128x32xf32> to vector<16x32xf32>
    %c0_103 = arith.constant 0 : index
    %c224_104 = arith.constant 224 : index
    %148 = vector.load %arg7[%c0_103, %c224_104] : memref<16x256xf32, #tpu.memory_space<vmem>>, vector<16x32xf32>
    tpu.vector_store %arg7[%c0_103, %c224_104], %147 {strides = array<i32>} : memref<16x256xf32, #tpu.memory_space<vmem>>, vector<16x32xf32>,
    %c0_105 = arith.constant 0 : index
    %c0_106 = arith.constant 0 : index
    %149 = vector.load %arg7[%c0_105, %c0_106] : memref<16x256xf32, #tpu.memory_space<vmem>>, vector<16x256xf32>
    %150 = vector.extract_strided_slice %149 {offsets = [0, 0], sizes = [16, 128], strides = [1, 1]} : vector<16x256xf32> to vector<16x128xf32>
    %cst_107 = arith.constant dense<0.000000e+00> : vector<16x32xf32>
    %151 = tpu.matmul %150, %42, %cst_107 {dimension_numbers = #tpu.dot_dimension_numbers<[1], [1], [0], [0], [0, 0, 1, 0], [], []>} : vector<16x128xf32>, vector<32x128xf32>, vector<16x32xf32> -> vector<16x32xf32>
    %152 = vector.extract_strided_slice %149 {offsets = [0, 128], sizes = [16, 128], strides = [1, 1]} : vector<16x256xf32> to vector<16x128xf32>
    %cst_108 = arith.constant dense<0.000000e+00> : vector<16x32xf32>
    %153 = tpu.matmul %152, %43, %cst_108 {dimension_numbers = #tpu.dot_dimension_numbers<[1], [1], [0], [0], [0, 0, 1, 0], [], []>} : vector<16x128xf32>, vector<32x128xf32>, vector<16x32xf32> -> vector<16x32xf32>
    %154 = arith.addf %151, %153 : vector<16x32xf32>
    %c16_109 = arith.constant 16 : index
    %c0_110 = arith.constant 0 : index
    %155 = vector.load %arg8[%c16_109, %c0_110] : memref<32x32xf32, #tpu.memory_space<vmem>>, vector<16x32xf32>
    tpu.vector_store %arg8[%c16_109, %c0_110], %154 {strides = array<i32>} : memref<32x32xf32, #tpu.memory_space<vmem>>, vector<16x32xf32>,
    %c0_111 = arith.constant 0 : index
    %c0_112 = arith.constant 0 : index
    %156 = vector.load %arg8[%c0_111, %c0_112] : memref<32x32xf32, #tpu.memory_space<vmem>>, vector<32x32xf32>
    %c371 = arith.constant 371 : index
    %c0_113 = arith.constant 0 : index
    %157 = vector.load %arg3[%c371, %c0_113] : memref<384x128xf32, #tpu.memory_space<vmem>>, vector<1x32xf32>
    %158 = vector.broadcast %157 : vector<1x32xf32> to vector<32x32xf32>
    %159 = arith.addf %156, %158 : vector<32x32xf32>
    %c144_114 = arith.constant 144 : index
    %c0_115 = arith.constant 0 : index
    %160 = vector.load %arg3[%c144_114, %c0_115] : memref<384x128xf32, #tpu.memory_space<vmem>>, vector<128x32xf32>
    %cst_116 = arith.constant dense<0.000000e+00> : vector<128x32xf32>
    %161 = tpu.matmul %160, %159, %cst_116 {dimension_numbers = #tpu.dot_dimension_numbers<[1], [0], [0], [1], [0, 0, 1, 1], [], []>} : vector<128x32xf32>, vector<32x32xf32>, vector<128x32xf32> -> vector<128x32xf32>
    %162 = arith.addf %0, %161 : vector<128x32xf32>
    %cst_117 = arith.constant dense<0.000000e+00> : vector<128xf32>
    %163 = vector.multi_reduction <add>, %162, %cst_117 [1] : vector<128x32xf32> to vector<128xf32>
    %164 = vector.shape_cast %163 : vector<128xf32> to vector<128x1xf32>
    %cst_118 = arith.constant 3.200000e+01 : f32
    %165 = vector.broadcast %cst_118 : f32 to vector<128x1xf32>
    %166 = arith.divf %164, %165 : vector<128x1xf32>
    %167 = vector.broadcast %166 : vector<128x1xf32> to vector<128x32xf32>
    %168 = arith.subf %162, %167 : vector<128x32xf32>
    %169 = arith.mulf %168, %168 : vector<128x32xf32>
    %cst_119 = arith.constant dense<0.000000e+00> : vector<128xf32>
    %170 = vector.multi_reduction <add>, %169, %cst_119 [1] : vector<128x32xf32> to vector<128xf32>
    %171 = vector.shape_cast %170 : vector<128xf32> to vector<128x1xf32>
    %cst_120 = arith.constant 3.200000e+01 : f32
    %172 = vector.broadcast %cst_120 : f32 to vector<128x1xf32>
    %173 = arith.divf %171, %172 : vector<128x1xf32>
    %174 = vector.broadcast %166 : vector<128x1xf32> to vector<128x32xf32>
    %175 = arith.subf %162, %174 : vector<128x32xf32>
    %cst_121 = arith.constant 9.99999974E-6 : f32
    %176 = vector.broadcast %cst_121 : f32 to vector<128x1xf32>
    %177 = arith.addf %173, %176 : vector<128x1xf32>
    %178 = math.rsqrt %177 : vector<128x1xf32>
    %179 = vector.broadcast %178 : vector<128x1xf32> to vector<128x32xf32>
    %180 = arith.mulf %175, %179 : vector<128x32xf32>
    %c372 = arith.constant 372 : index
    %c0_122 = arith.constant 0 : index
    %181 = vector.load %arg3[%c372, %c0_122] : memref<384x128xf32, #tpu.memory_space<vmem>>, vector<1x32xf32>
    %182 = vector.broadcast %181 : vector<1x32xf32> to vector<128x32xf32>
    %183 = arith.mulf %180, %182 : vector<128x32xf32>
    %c373 = arith.constant 373 : index
    %c0_123 = arith.constant 0 : index
    %184 = vector.load %arg3[%c373, %c0_123] : memref<384x128xf32, #tpu.memory_space<vmem>>, vector<1x32xf32>
    %185 = vector.broadcast %184 : vector<1x32xf32> to vector<128x32xf32>
    %186 = arith.addf %183, %185 : vector<128x32xf32>
    %c272 = arith.constant 272 : index
    %c0_124 = arith.constant 0 : index
    %187 = vector.load %arg3[%c272, %c0_124] : memref<384x128xf32, #tpu.memory_space<vmem>>, vector<32x128xf32>
    %cst_125 = arith.constant dense<0.000000e+00> : vector<128x128xf32>
    %188 = tpu.matmul %186, %187, %cst_125 {dimension_numbers = #tpu.dot_dimension_numbers<[1], [0], [0], [1], [0, 0, 1, 1], [], []>} : vector<128x32xf32>, vector<32x128xf32>, vector<128x128xf32> -> vector<128x128xf32>
    %c374 = arith.constant 374 : index
    %c0_126 = arith.constant 0 : index
    %189 = vector.load %arg3[%c374, %c0_126] : memref<384x128xf32, #tpu.memory_space<vmem>>, vector<1x128xf32>
    %190 = vector.broadcast %189 : vector<1x128xf32> to vector<128x128xf32>
    %191 = arith.addf %188, %190 : vector<128x128xf32>
    %c304 = arith.constant 304 : index
    %c0_127 = arith.constant 0 : index
    %192 = vector.load %arg3[%c304, %c0_127] : memref<384x128xf32, #tpu.memory_space<vmem>>, vector<32x128xf32>
    %cst_128 = arith.constant dense<0.000000e+00> : vector<128x128xf32>
    %193 = tpu.matmul %186, %192, %cst_128 {dimension_numbers = #tpu.dot_dimension_numbers<[1], [0], [0], [1], [0, 0, 1, 1], [], []>} : vector<128x32xf32>, vector<32x128xf32>, vector<128x128xf32> -> vector<128x128xf32>
    %c375 = arith.constant 375 : index
    %c0_129 = arith.constant 0 : index
    %194 = vector.load %arg3[%c375, %c0_129] : memref<384x128xf32, #tpu.memory_space<vmem>>, vector<1x128xf32>
    %195 = vector.broadcast %194 : vector<1x128xf32> to vector<128x128xf32>
    %196 = arith.addf %193, %195 : vector<128x128xf32>
    %cst_130 = arith.constant 5.000000e-01 : f32
    %197 = vector.broadcast %cst_130 : f32 to vector<128x128xf32>
    %198 = arith.mulf %197, %196 : vector<128x128xf32>
    %cst_131 = arith.constant 0.707106769 : f32
    %199 = vector.broadcast %cst_131 : f32 to vector<128x128xf32>
    %200 = arith.mulf %196, %199 : vector<128x128xf32>
    %201 = math.erf %200 : vector<128x128xf32>
    %cst_132 = arith.constant 1.000000e+00 : f32
    %202 = vector.broadcast %cst_132 : f32 to vector<128x128xf32>
    %203 = arith.addf %202, %201 : vector<128x128xf32>
    %204 = arith.mulf %198, %203 : vector<128x128xf32>
    %205 = arith.mulf %191, %204 : vector<128x128xf32>
    %c336 = arith.constant 336 : index
    %c0_133 = arith.constant 0 : index
    %206 = vector.load %arg3[%c336, %c0_133] : memref<384x128xf32, #tpu.memory_space<vmem>>, vector<32x128xf32>
    %cst_134 = arith.constant dense<0.000000e+00> : vector<128x32xf32>
    %207 = tpu.matmul %205, %206, %cst_134 {dimension_numbers = #tpu.dot_dimension_numbers<[1], [1], [0], [0], [0, 0, 1, 0], [], []>} : vector<128x128xf32>, vector<32x128xf32>, vector<128x32xf32> -> vector<128x32xf32>
    %c376 = arith.constant 376 : index
    %c0_135 = arith.constant 0 : index
    %208 = vector.load %arg3[%c376, %c0_135] : memref<384x128xf32, #tpu.memory_space<vmem>>, vector<1x32xf32>
    %209 = vector.broadcast %208 : vector<1x32xf32> to vector<128x32xf32>
    %210 = arith.addf %207, %209 : vector<128x32xf32>
    %211 = arith.addf %162, %210 : vector<128x32xf32>
    %c0_136 = arith.constant 0 : index
    %c0_137 = arith.constant 0 : index
    %212 = vector.load %arg4[%c0_136, %c0_137] : memref<128x32xf32, #tpu.memory_space<vmem>>, vector<128x32xf32>
    tpu.vector_store %arg4[%c0_136, %c0_137], %211 {strides = array<i32>} : memref<128x32xf32, #tpu.memory_space<vmem>>, vector<128x32xf32>,
    return
  }
  func.func @transform_0(%arg0: i32) -> (i32, i32) {
    %c0_i32 = arith.constant 0 : i32
    %c0_i32_0 = arith.constant 0 : i32
    %c0_i32_1 = arith.constant 0 : i32
    return %c0_i32, %c0_i32_0 : i32, i32
  }
  func.func @transform_1(%arg0: i32) -> (i32, i32) {
    %c0_i32 = arith.constant 0 : i32
    %c0_i32_0 = arith.constant 0 : i32
    %c0_i32_1 = arith.constant 0 : i32
    return %c0_i32, %c0_i32_0 : i32, i32
  }
  func.func @transform_2(%arg0: i32) -> (i32, i32) {
    %c0_i32 = arith.constant 0 : i32
    %c0_i32_0 = arith.constant 0 : i32
    %c0_i32_1 = arith.constant 0 : i32
    return %c0_i32, %c0_i32_0 : i32, i32
  }
  func.func @transform_3(%arg0: i32) -> (i32, i32) {
    %c0_i32 = arith.constant 0 : i32
    %c0_i32_0 = arith.constant 0 : i32
    %c0_i32_1 = arith.constant 0 : i32
    return %c0_i32, %c0_i32_0 : i32, i32
  }
}

</mosaic_0001>

<bundles_post_ra>
// kernel: tpu_custom_call.1
= control target key start
LH: loop header
LB: loop body
LE: loop exit
PB: predicated region body
PF: predicated region fallthrough
CT: control target
= control target key end

     0   :  { %8 = vsyncpa [#allocation7], 0  ;;  %s4985_s12 = smov [#allocation6]   ;;  %s6418_s0 = inlined_call_operand.vmem [shape: f32[128,32], index: 0, kind: input, shape index: {}]   ;;  %s6419_s1 = inlined_call_operand.vmem [shape: f32[32,16], index: 1, kind: input, shape index: {}]   ;;  %s6420_s2 = inlined_call_operand.hbm [shape: f32[384,128], index: 2, kind: input, shape index: {}]   ;;  %s6421_s3 = inlined_call_operand.vmem [shape: f32[128,32], index: 3, kind: output, shape index: {}]  }
   0x1   :  { %s18_s13 = sshll.u32 %s4985_s12, 4  ;;  %s4961_s16 = scalar_lea.hbm %s6420_s2, 6144  ;;  %s19_s13 = int_to_ptr.vmem [resolvable:$true] %s18_s13 }
   0x2   :  { %p4962_p0 = scmp.ne.s32.totalorder %s6420_s2, %s4961_s16  ;;  %p4965_p1 = scmp.lt.u32.totalorder %s4961_s16, %s6420_s2 }
   0x4   :  { %p4967_p2 = pnand %p4965_p1, %p4962_p0 }
   0x6   :  { %4970 = shalt.err (!%p4967_p2)
}
   0x7   :  { %s4971_s21 = scalar_lea.vmem %s19_s13, 6144  ;;  %p4976_p4 = scmp.lt.s32.totalorder %s19_s13, %s19_s13 }
   0x8   :  { %p4972_p3 = scmp.ne.s32.totalorder %s19_s13, %s4971_s21  ;;  %p4977_p5 = scmp.lt.s32.totalorder %s4971_s21, %s4971_s21 }
   0xa   :  { %p4978_p6 = por %p4977_p5, %p4976_p4 }
   0xc   :  { %p4979_p7 = pnand %p4978_p6, %p4972_p3 }
   0xe   :  { %4982 = shalt.err (!%p4979_p7)
}
   0xf   :  { %s4986_s22 = smov 128   ;;  %s4987_s23 = smov 8  }
  0x10   :  { %24 = dma.hbm_to_vmem [thread:$0]  %s6420_s2, 6144, %s19_s13, [#allocation7], %s4986_s22, %s4986_s22, %s4987_s23  }
  0x11   :  { %4983 = dma.done.wait [#allocation7], 6144  }
  0x12   :  { %4984 = vsyncadd [#allocation7], 4294961152  ;;  %vm55_vm0 = vcmask 130048   ;;  %v48_v0 = vld [vmem:[#allocation6] sm:$0xff]  ;;  %v49_v1 = vld [vmem:[#allocation6 + $0x8] sm:$0xff]  ;;  %vm153_vm1 = vcmask 261120  }
  0x13   :  { %v44_v2 = vld [vmem:[%s6419_s1] sm:$0xff]  ;;  %v4517_v3 = vpack.c.bf16 %v49_v1, %v48_v0  ;;  %v45_v4 = vld [vmem:[%s6419_s1 + $0x8] sm:$0xff]  ;;  %v5038_v6 = vld [vmem:[#allocation6 + $0x170] ss:$0 sm:$0xff]  ;;  %s4989_s22 = smov 64   ;;  %s4990_s23 = smov 32  }
  0x14   :  { %4119 = vmatprep.mubr.msk.f32.mxu1 %vm55_vm0, %v44_v2  ;;  %v5034_v5 = vld [vmem:[%s6418_s0] sm:$0xff]  ;;  %v5049_v16 = vld [vmem:[%s6418_s0 + $0x10] sm:$0xff]  ;;  %v5065_v21 = vld [vmem:[%s6418_s0 + $0x8] sm:$0xff]  ;;  %vm966_vm3 = vcmask 654336   ;;  %vm1346_vm4 = vcmask 523520   ;;  %vm1357_vm5 = vcmask 785920  }
  0x15   :  { %4518 = vmatprep.subr.bf16.mxu1 %v4517_v3  ;;  %154 = vst.msk [vmem:[#allocation2] sm:$0xff] %vm153_vm1, %v5034_v5  ;;  %156 = vst.msk [vmem:[#allocation2 + $0x10] sm:$0xff] %vm153_vm1, %v5049_v16  ;;  %v5057_v19 = vld [vmem:[%s6418_s0 + $0x20] sm:$0xff]  ;;  %v5072_v23 = vld [vmem:[%s6418_s0 + $0x30] sm:$0xff]  ;;  %vm1368_vm6 = vcmask 1048320  }
  0x16   :  { %4520 = vmatpush3.bf16.msra.mxu1 %v4517_v3  ;;  %158 = vst.msk [vmem:[#allocation2 + $0x20] sm:$0xff] %vm153_vm1, %v5057_v19  ;;  %155 = vst.msk [vmem:[#allocation2 + $0x8] sm:$0xff] %vm153_vm1, %v5065_v21  ;;  %v5080_v25 = vld [vmem:[%s6418_s0 + $0x18] sm:$0xff]  ;;  %v5087_v26 = vld [vmem:[%s6418_s0 + $0x28] sm:$0xff] }
  0x17   :  { %160 = vst.msk [vmem:[#allocation2 + $0x30] sm:$0xff] %vm153_vm1, %v5072_v23  ;;  %157 = vst.msk [vmem:[#allocation2 + $0x18] sm:$0xff] %vm153_vm1, %v5080_v25  ;;  %v5095_v29 = vld [vmem:[%s6418_s0 + $0x38] sm:$0xff]  ;;  %v505_v3 = vld [vmem:[#allocation6 + $0x10] sm:$0xff] }
  0x18   :  { %159 = vst.msk [vmem:[#allocation2 + $0x28] sm:$0xff] %vm153_vm1, %v5087_v26  ;;  %161 = vst.msk [vmem:[#allocation2 + $0x38] sm:$0xff] %vm153_vm1, %v5095_v29 }
  0x19   :  { %4120 = vmatmul.mubr.msk.f32.vlgmr.msra.gmra.mrb[0].mxu1 %vm55_vm0, %v45_v4  ;;  %v506_v4 = vld [vmem:[#allocation6 + $0x18] sm:$0xff]  ;;  %vm5225_vm2 = vmpackc.low %vm153_vm1, %vm153_vm1 }
  0x1c   :  { %v174_v14 = vld [vmem:[#allocation2] sm:$0xff]  ;;  %v176_v18 = vld [vmem:[#allocation2 + $0x10] sm:$0xff] }
  0x1d   :  { %v194_v17 = vsel %vm153_vm1, %v174_v14, 0.0  ;;  %v200_v20 = vsel %vm153_vm1, %v176_v18, 0.0  ;;  %v178_v22 = vld [vmem:[#allocation2 + $0x20] sm:$0xff]  ;;  %v5108_v41 = vld [vmem:[#allocation2 + $0x8] sm:$0xff] }
  0x1e   :  { %v206_v24 = vsel %vm153_vm1, %v178_v22, 0.0  ;;  %v180_v27 = vld [vmem:[#allocation2 + $0x30] sm:$0xff]  ;;  %v197_v44 = vsel %vm153_vm1, %v5108_v41, 0.0  ;;  %v5117_v46 = vld [vmem:[#allocation2 + $0x18] sm:$0xff] }
  0x1f   :  { %v212_v28 = vsel %vm153_vm1, %v180_v27, 0.0  ;;  %v203_v50 = vsel %vm153_vm1, %v5117_v46, 0.0  ;;  %v5124_v52 = vld [vmem:[#allocation2 + $0x28] sm:$0xff]  ;;  %v5131_v56 = vld [vmem:[#allocation2 + $0x38] sm:$0xff] }
  0x20   :  { %v209_v54 = vsel %vm153_vm1, %v5124_v52, 0.0  ;;  %v215_v59 = vsel %vm153_vm1, %v5131_v56, 0.0 }
  0xec   :  { %v4121_v7 = vpop.f32.mrb[0].mxu1 }
  0xed   :  { %v140_v8 = vadd.f32 %v4121_v7, %v5038_v6  ;;  %v134_v9 = vpop.f32.mrb[1].mxu1  ;;  %v509_v7 = vld [vmem:[#allocation6 + $0x30] sm:$0xff] }
  0xee   :  { %v135_v10 = vadd.f32 %v5038_v6, %v134_v9  ;;  %v5145_v9 = vpack.c.bf16 %v506_v4, %v505_v3 }
  0xef   :  { %163 = vst.msk [vmem:[#allocation2 + $0x48] sm:$0xff] %vm153_vm1, %v140_v8 }
  0xf0   :  { %162 = vst.msk [vmem:[#allocation2 + $0x40] sm:$0xff] %vm153_vm1, %v135_v10  ;;  %v510_v10 = vld [vmem:[#allocation6 + $0x38] sm:$0xff]  ;;  %4522 = vmatprep.subr.bf16.mxu1 %v5145_v9 }
  0xf1   :  { %4524 = vmatpush3.bf16.msra.mxu1 %v5145_v9 }
  0xf6   :  { %v183_v13 = vld [vmem:[#allocation2 + $0x48] sm:$0xff] }
  0xf7   :  { %v182_v11 = vld [vmem:[#allocation2 + $0x40] sm:$0xff]  ;;  %v221_v15 = vsel %vm153_vm1, %v183_v13, 0.0 }
  0xf8   :  { %v218_v12 = vsel %vm153_vm1, %v182_v11, 0.0 }
  0xf9   :  { %219 = vadd.xlane.f32.xlu0 %v218_v12  ;;  %v46_v12 = vld [vmem:[%s6419_s1 + $0x10] sm:$0xff] }
  0xfa   :  { %4122 = vmatprep.mubr.msk.f32.mxu1 %vm55_vm0, %v46_v12 }
  0xfd   :  { %222 = vadd.xlane.f32.xlu0 %v221_v15  ;;  %v47_v15 = vld [vmem:[%s6419_s1 + $0x18] sm:$0xff]  ;;  %s4988_s1 = smov 96  }
  0xfe   :  { %4123 = vmatmul.mubr.msk.f32.gmra.mrb[2].mxu1 %vm55_vm0, %v47_v15 }
 0x101   :  { %195 = vadd.xlane.f32.xlu0 %v194_v17 }
 0x105   :  { %201 = vadd.xlane.f32.xlu0 %v200_v20  ;;  %v512_v20 = vld [vmem:[#allocation6 + $0x48] sm:$0xff] }
 0x109   :  { %207 = vadd.xlane.f32.xlu0 %v206_v24 }
 0x10d   :  { %213 = vadd.xlane.f32.xlu0 %v212_v28 }
 0x186   :  { %v220_v30 = vpop.xlane.xlu0 %219 }
 0x187   :  { %v263_v31 = vmul.f32 0.03125, %v220_v30 }
 0x189   :  { %v5099_v32 = vsub.f32 %v182_v11, %v263_v31  ;;  %v5147_v11 = vpack.c.bf16 %v510_v10, %v509_v7 }
 0x18a   :  { %v223_v33 = vpop.xlane.xlu0 %222 }
 0x18b   :  { %v264_v34 = vmul.f32 0.03125, %v223_v33  ;;  %v303_v35 = vmul.f32 %v5099_v32, %v5099_v32  ;;  %4530 = vmatprep.subr.bf16.mxu0 %v5147_v11 }
 0x18c   :  { %4532 = vmatpush3.bf16.msra.mxu0 %v5147_v11 }
 0x18d   :  { %v5103_v36 = vsub.f32 %v183_v13, %v264_v34  ;;  %v339_v37 = vsel %vm153_vm1, %v303_v35, 0.0  ;;  %v507_v13 = vld [vmem:[#allocation6 + $0x20] sm:$0xff] }
 0x18e   :  { %340 = vadd.xlane.f32.xlu1 %v339_v37  ;;  %v196_v38 = vpop.xlane.xlu0 %195 }
 0x18f   :  { %v304_v39 = vmul.f32 %v5103_v36, %v5103_v36  ;;  %v255_v40 = vmul.f32 0.03125, %v196_v38 }
 0x191   :  { %v342_v42 = vsel %vm153_vm1, %v304_v39, 0.0  ;;  %v5111_v43 = vsub.f32 %v174_v14, %v255_v40  ;;  %v508_v14 = vld [vmem:[#allocation6 + $0x28] sm:$0xff] }
 0x192   :  { %343 = vadd.xlane.f32.xlu1 %v342_v42  ;;  %v202_v47 = vpop.xlane.xlu0 %201  ;;  %v5160_v17 = vpack.c.bf16 %v508_v14, %v507_v13 }
 0x193   :  { %v295_v45 = vmul.f32 %v5111_v43, %v5111_v43  ;;  %v257_v49 = vmul.f32 0.03125, %v202_v47 }
 0x194   :  { %4526 = vmatprep.subr.bf16.mxu1 %v5160_v17 }
 0x195   :  { %v315_v48 = vsel %vm153_vm1, %v295_v45, 0.0  ;;  %v5122_v51 = vsub.f32 %v176_v18, %v257_v49  ;;  %v511_v18 = vld [vmem:[#allocation6 + $0x40] sm:$0xff]  ;;  %4528 = vmatpush3.bf16.msra.mxu1 %v5160_v17 }
 0x196   :  { %198 = vadd.xlane.f32.xlu1 %v197_v44  ;;  %316 = vadd.xlane.f32.xlu0 %v315_v48  ;;  %v208_v57 = vpop.xlane.xlu0 %207  ;;  %v5174_v44 = vld [vmem:[#allocation6 + $0x171] ss:$0 sm:$0xff] }
 0x197   :  { %v297_v53 = vmul.f32 %v5122_v51, %v5122_v51  ;;  %v259_v58 = vmul.f32 0.03125, %v208_v57 }
 0x199   :  { %v321_v55 = vsel %vm153_vm1, %v297_v53, 0.0  ;;  %v5135_v60 = vsub.f32 %v178_v22, %v259_v58  ;;  %v5164_v22 = vpack.c.bf16 %v512_v20, %v511_v18  ;;  %v5183_v53 = vld [vmem:[#allocation6 + $0x172] ss:$0 sm:$0xff] }
 0x19a   :  { %204 = vadd.xlane.f32.xlu1 %v203_v50  ;;  %322 = vadd.xlane.f32.xlu0 %v321_v55  ;;  %v214_v63 = vpop.xlane.xlu0 %213 }
 0x19b   :  { %v299_v61 = vmul.f32 %v5135_v60, %v5135_v60  ;;  %v261_v0 = vmul.f32 0.03125, %v214_v63  ;;  %4534 = vmatprep.subr.bf16.mxu0 %v5164_v22 }
 0x19c   :  { %4536 = vmatpush3.bf16.msra.mxu0 %v5164_v22 }
 0x19d   :  { %v327_v62 = vsel %vm153_vm1, %v299_v61, 0.0  ;;  %v5140_v1 = vsub.f32 %v180_v27, %v261_v0 }
 0x19e   :  { %210 = vadd.xlane.f32.xlu1 %v209_v54  ;;  %328 = vadd.xlane.f32.xlu0 %v327_v62 }
 0x19f   :  { %v301_v2 = vmul.f32 %v5140_v1, %v5140_v1 }
 0x1a1   :  { %v333_v8 = vsel %vm153_vm1, %v301_v2, 0.0 }
 0x1a2   :  { %216 = vadd.xlane.f32.xlu1 %v215_v59  ;;  %334 = vadd.xlane.f32.xlu0 %v333_v8 }
 0x1d1   :  { %v4124_v7 = vpop.f32.mrb[2].mxu1 }
 0x1d2   :  { %v144_v8 = vpop.f32.mrb[3].mxu1 }
 0x1d3   :  { %v145_v10 = vadd.f32 %v5038_v6, %v144_v8 }
 0x1d5   :  { %172 = vst.msk [vmem:[#allocation2 + $0x90] sm:$0xff] %vm153_vm1, %v145_v10 }
 0x21b   :  { %v341_v24 = vpop.xlane.xlu1 %340 }
 0x21c   :  { %v383_v27 = vmul.f32 0.03125, %v341_v24 }
 0x21e   :  { %v403_v28 = vadd.f32 1e-05, %v383_v27 }
 0x21f   :  { %v344_v30 = vpop.xlane.xlu1 %343 }
 0x220   :  { %4727 = vrsqrt.f32 %v403_v28  ;;  %v384_v31 = vmul.f32 0.03125, %v344_v30 }
 0x222   :  { %v404_v33 = vadd.f32 1e-05, %v384_v31 }
 0x223   :  { %v199_v34 = vpop.xlane.xlu1 %198  ;;  %v317_v12 = vpop.xlane.xlu0 %316 }
 0x224   :  { %4729 = vrsqrt.f32 %v404_v33  ;;  %v256_v35 = vmul.f32 0.03125, %v199_v34  ;;  %v375_v13 = vmul.f32 0.03125, %v317_v12 }
 0x226   :  { %v5170_v37 = vsub.f32 %v5108_v41, %v256_v35  ;;  %v395_v18 = vadd.f32 1e-05, %v375_v13 }
 0x227   :  { %v205_v38 = vpop.xlane.xlu1 %204  ;;  %v323_v14 = vpop.xlane.xlu0 %322 }
 0x228   :  { %v258_v39 = vmul.f32 0.03125, %v205_v38  ;;  %v296_v40 = vmul.f32 %v5170_v37, %v5170_v37  ;;  %v377_v15 = vmul.f32 0.03125, %v323_v14  ;;  %4731 = vrsqrt.f32 %v395_v18 }
 0x22a   :  { %v4728_v42 = vpop.eup %4727  ;;  %v5177_v45 = vsub.f32 %v5117_v46, %v258_v39  ;;  %v318_v47 = vsel %vm153_vm1, %v296_v40, 0.0  ;;  %v397_v24 = vadd.f32 1e-05, %v377_v15 }
 0x22b   :  { %319 = vadd.xlane.f32.xlu1 %v318_v47  ;;  %v211_v48 = vpop.xlane.xlu1 %210  ;;  %v443_v49 = vmul.f32 %v4728_v42, %v5099_v32  ;;  %v329_v20 = vpop.xlane.xlu0 %328 }
 0x22c   :  { %v260_v50 = vmul.f32 0.03125, %v211_v48  ;;  %v298_v41 = vmul.f32 %v5177_v45, %v5177_v45  ;;  %v379_v27 = vmul.f32 0.03125, %v329_v20  ;;  %4733 = vrsqrt.f32 %v397_v24 }
 0x22d   :  { %v468_v54 = vmul.f32 %v5174_v44, %v443_v49 }
 0x22e   :  { %v4730_v55 = vpop.eup %4729  ;;  %v5187_v57 = vsub.f32 %v5124_v52, %v260_v50  ;;  %v324_v46 = vsel %vm153_vm1, %v298_v41, 0.0  ;;  %v399_v33 = vadd.f32 1e-05, %v379_v27 }
 0x22f   :  { %v444_v58 = vmul.f32 %v4730_v55, %v5103_v36  ;;  %325 = vadd.xlane.f32.xlu1 %v324_v46  ;;  %v217_v59 = vpop.xlane.xlu1 %216  ;;  %v493_v32 = vadd.f32 %v5183_v53, %v468_v54  ;;  %v335_v30 = vpop.xlane.xlu0 %334 }
 0x230   :  { %v262_v61 = vmul.f32 0.03125, %v217_v59  ;;  %v300_v62 = vmul.f32 %v5187_v57, %v5187_v57 }
 0x231   :  { %v469_v63 = vmul.f32 %v5174_v44, %v444_v58  ;;  %4133 = vmatprep.mubr.msk.f32.mxu1 %vm153_vm1, %v493_v32  ;;  %4144 = vmatprep.mubr.msk.f32.mxu0 %vm153_vm1, %v493_v32 }
 0x232   :  { %v5198_v52 = vsub.f32 %v5131_v56, %v262_v61  ;;  %v330_v0 = vsel %vm153_vm1, %v300_v62, 0.0  ;;  %v150_v56 = vadd.f32 %v4124_v7, %v5038_v6  ;;  %v381_v6 = vmul.f32 0.03125, %v335_v30  ;;  %v4732_v47 = vpop.eup %4731 }
 0x233   :  { %331 = vadd.xlane.f32.xlu1 %v330_v0  ;;  %v494_v36 = vadd.f32 %v5183_v53, %v469_v63  ;;  %v435_v54 = vmul.f32 %v4732_v47, %v5111_v43 }
 0x234   :  { %v302_v2 = vmul.f32 %v5198_v52, %v5198_v52  ;;  %173 = vst.msk [vmem:[#allocation2 + $0x98] sm:$0xff] %vm153_vm1, %v150_v56  ;;  %v401_v39 = vadd.f32 1e-05, %v381_v6 }
 0x235   :  { %4134 = vmatmul.mubr.msk.f32.vlgmr.msra.gmra.mrb[4].mxu1 %vm153_vm1, %v494_v36  ;;  %4145 = vmatmul.mubr.msk.f32.vlgmr.msra.gmra.mrb[0].mxu0 %vm153_vm1, %v494_v36  ;;  %v5206_v3 = vpack.c.bf16 %v494_v36, %v493_v32  ;;  %v460_v62 = vmul.f32 %v5174_v44, %v435_v54 }
 0x236   :  { %v336_v4 = vsel %vm153_vm1, %v302_v2, 0.0  ;;  %v4734_v50 = vpop.eup %4733 }
 0x237   :  { %337 = vadd.xlane.f32.xlu1 %v336_v4  ;;  %v437_v59 = vmul.f32 %v4734_v50, %v5122_v51  ;;  %v485_v43 = vadd.f32 %v5183_v53, %v460_v62 }
 0x239   :  { %v462_v36 = vmul.f32 %v5174_v44, %v437_v59 }
 0x23b   :  { %v487_v12 = vadd.f32 %v5183_v53, %v462_v36 }
 0x2b8   :  { %v320_v28 = vpop.xlane.xlu1 %319 }
 0x2b9   :  { %v376_v31 = vmul.f32 0.03125, %v320_v28 }
 0x2bb   :  { %v396_v34 = vadd.f32 1e-05, %v376_v31 }
 0x2bc   :  { %v326_v35 = vpop.xlane.xlu1 %325 }
 0x2bd   :  { %4735 = vrsqrt.f32 %v396_v34  ;;  %v378_v38 = vmul.f32 0.03125, %v326_v35 }
 0x2be   :  { %4737 = vrsqrt.f32 %v399_v33 }
 0x2bf   :  { %v398_v40 = vadd.f32 1e-05, %v378_v38 }
 0x2c0   :  { %v332_v42 = vpop.xlane.xlu1 %331 }
 0x2c1   :  { %4739 = vrsqrt.f32 %v398_v40  ;;  %v380_v48 = vmul.f32 0.03125, %v332_v42 }
 0x2c2   :  { %4741 = vrsqrt.f32 %v401_v39 }
 0x2c3   :  { %v400_v49 = vadd.f32 1e-05, %v380_v48 }
 0x2c4   :  { %v338_v41 = vpop.xlane.xlu1 %337 }
 0x2c5   :  { %4743 = vrsqrt.f32 %v400_v49  ;;  %v382_v55 = vmul.f32 0.03125, %v338_v41 }
 0x2c7   :  { %v4736_v46 = vpop.eup %4735  ;;  %v402_v58 = vadd.f32 1e-05, %v382_v55 }
 0x2c8   :  { %v4738_v32 = vpop.eup %4737  ;;  %v436_v61 = vmul.f32 %v4736_v46, %v5170_v37 }
 0x2c9   :  { %4745 = vrsqrt.f32 %v402_v58  ;;  %v439_v2 = vmul.f32 %v4738_v32, %v5135_v60 }
 0x2ca   :  { %v461_v63 = vmul.f32 %v5174_v44, %v436_v61 }
 0x2cb   :  { %v4740_v0 = vpop.eup %4739  ;;  %v464_v60 = vmul.f32 %v5174_v44, %v439_v2 }
 0x2cc   :  { %v486_v4 = vadd.f32 %v5183_v53, %v461_v63  ;;  %v438_v7 = vmul.f32 %v4740_v0, %v5177_v45  ;;  %v4742_v51 = vpop.eup %4741 }
 0x2cd   :  { %v441_v14 = vmul.f32 %v4742_v51, %v5140_v1  ;;  %v489_v24 = vadd.f32 %v5183_v53, %v464_v60 }
 0x2ce   :  { %v4537_v56 = vpack.c.bf16 %v486_v4, %v485_v43  ;;  %v463_v8 = vmul.f32 %v5174_v44, %v438_v7 }
 0x2cf   :  { %v4744_v10 = vpop.eup %4743  ;;  %v466_v1 = vmul.f32 %v5174_v44, %v441_v14 }
 0x2d0   :  { %4539 = vmatprep.subr.msk.bf16.mxu1 %vm5225_vm2, %v4537_v56  ;;  %4568 = vmatprep.subr.bf16.mxu0 %v4537_v56  ;;  %v488_v45 = vadd.f32 %v5183_v53, %v463_v8  ;;  %v440_v13 = vmul.f32 %v4744_v10, %v5187_v57 }
 0x2d1   :  { %4542 = vmatpush3.bf16.xpose.msk.msra.mxu1 %vm5225_vm2, %v4537_v56  ;;  %4570 = vmatpush3.bf16.msra.mxu0 %v4537_v56  ;;  %v491_v31 = vadd.f32 %v5183_v53, %v466_v1 }
 0x2d2   :  { %v4543_v15 = vpack.c.bf16 %v488_v45, %v487_v12  ;;  %v465_v18 = vmul.f32 %v5174_v44, %v440_v13 }
 0x2d3   :  { %v4746_v20 = vpop.eup %4745 }
 0x2d4   :  { %4545 = vmatprep.subr.msk.bf16.mxu1 %vm5225_vm2, %v4543_v15  ;;  %4572 = vmatprep.subr.bf16.mxu0 %v4543_v15  ;;  %v490_v27 = vadd.f32 %v5183_v53, %v465_v18  ;;  %v442_v57 = vmul.f32 %v4746_v20, %v5198_v52 }
 0x2d5   :  { %4574 = vmatpush3.bf16.msra.mxu0 %v4543_v15 }
 0x2d6   :  { %v4549_v28 = vpack.c.bf16 %v490_v27, %v489_v24  ;;  %v467_v30 = vmul.f32 %v5174_v44, %v442_v57 }
 0x2d8   :  { %4576 = vmatprep.subr.bf16.mxu0 %v4549_v28  ;;  %v492_v33 = vadd.f32 %v5183_v53, %v467_v30 }
 0x2d9   :  { %4548 = vmatpush3.bf16.xpose.msk.msra.mxu1 %vm5225_vm2, %v4543_v15  ;;  %4578 = vmatpush3.bf16.msra.mxu0 %v4549_v28 }
 0x2da   :  { %4551 = vmatprep.subr.msk.bf16.mxu1 %vm5225_vm2, %v4549_v28  ;;  %v4555_v34 = vpack.c.bf16 %v492_v33, %v491_v31 }
 0x2dc   :  { %4580 = vmatprep.subr.bf16.mxu0 %v4555_v34 }
 0x2dd   :  { %4582 = vmatpush3.bf16.msra.mxu0 %v4555_v34 }
 0x2de   :  { %4584 = vmatprep.subr.bf16.mxu0 %v5206_v3 }
 0x2e1   :  { %4554 = vmatpush3.bf16.xpose.msk.msra.mxu1 %vm5225_vm2, %v4549_v28  ;;  %4586 = vmatpush3.bf16.msra.mxu0 %v5206_v3 }
 0x2e2   :  { %4557 = vmatprep.subr.msk.bf16.mxu1 %vm5225_vm2, %v4555_v34 }
 0x2e9   :  { %4560 = vmatpush3.bf16.xpose.msk.msra.mxu1 %vm5225_vm2, %v4555_v34 }
 0x2ea   :  { %4563 = vmatprep.subr.msk.bf16.mxu1 %vm5225_vm2, %v5206_v3 }
 0x2f1   :  { %4566 = vmatpush3.bf16.xpose.msk.msra.mxu1 %vm5225_vm2, %v5206_v3 }
 0x2f2   :  { %4604 = vmatprep.subr.bf16.mxu1 %v5145_v9 }
 0x308   :  { %v4135_v52 = vpop.f32.mrb[4].mxu1  ;;  %v4146_v6 = vpop.f32.mrb[0].mxu0 }
 0x309   :  { %603 = vst.msk [vmem:[#allocation3 + $0x8] sm:$0xff] %vm153_vm1, %v4135_v52  ;;  %706 = vst.msk [vmem:[#allocation3 + $0x48] sm:$0xff] %vm153_vm1, %v4146_v6  ;;  %v593_v35 = vpop.f32.mrb[5].mxu1  ;;  %v696_v38 = vpop.f32.mrb[1].mxu0  ;;  %608 = vrot.lane.b32.xlu1 %v4135_v52, %s4988_s1 }
 0x30a   :  { %602 = vst.msk [vmem:[#allocation3] sm:$0xff] %vm153_vm1, %v593_v35  ;;  %705 = vst.msk [vmem:[#allocation3 + $0x40] sm:$0xff] %vm153_vm1, %v696_v38  ;;  %606 = vrot.lane.b32.xlu0 %v593_v35, %s4988_s1 }
 0x30d   :  { %614 = vrot.lane.b32.xlu1 %v593_v35, %s4989_s22 }
 0x30e   :  { %622 = vrot.lane.b32.xlu0 %v593_v35, %s4990_s23 }
 0x310   :  { %v734_v39 = vld [vmem:[#allocation3 + $0x8] sm:$0xff] }
 0x311   :  { %616 = vrot.lane.b32.xlu1 %v4135_v52, %s4989_s22  ;;  %v733_v3 = vld [vmem:[#allocation3] sm:$0xff]  ;;  %v742_v36 = vld [vmem:[#allocation3 + $0x48] sm:$0xff] }
 0x312   :  { %4167 = vmatprep.mubr.msk.f32.mxu1 %vm153_vm1, %v733_v3  ;;  %709 = vrot.lane.b32.xlu0 %v696_v38, %s4988_s1  ;;  %v741_v63 = vld [vmem:[#allocation3 + $0x40] sm:$0xff] }
 0x313   :  { %4168 = vmatmul.mubr.msk.f32.vlgmr.msra.gmra.mrb[6].mxu1 %vm153_vm1, %v734_v39 }
 0x314   :  { %4606 = vmatpush3.bf16.msra.mxu1 %v5145_v9 }
 0x315   :  { %624 = vrot.lane.b32.xlu1 %v4135_v52, %s4990_s23  ;;  %4608 = vmatprep.subr.bf16.mxu1 %v5160_v17 }
 0x316   :  { %717 = vrot.lane.b32.xlu0 %v696_v38, %s4989_s22 }
 0x318   :  { %4610 = vmatpush3.bf16.msra.mxu1 %v5160_v17 }
 0x319   :  { %711 = vrot.lane.b32.xlu1 %v4146_v6, %s4988_s1 }
 0x31a   :  { %725 = vrot.lane.b32.xlu0 %v696_v38, %s4990_s23 }
 0x31d   :  { %719 = vrot.lane.b32.xlu1 %v4146_v6, %s4989_s22 }
 0x321   :  { %727 = vrot.lane.b32.xlu1 %v4146_v6, %s4990_s23 }
 0x37b   :  { %v609_v40 = vpop.permute.xlu1 %608 }
 0x37c   :  { %613 = vst.msk [vmem:[#allocation3 + $0x18] sm:$0xff] %vm153_vm1, %v609_v40  ;;  %v607_v9 = vpop.permute.xlu0 %606 }
 0x37d   :  { %612 = vst.msk [vmem:[#allocation3 + $0x10] sm:$0xff] %vm153_vm1, %v607_v9 }
 0x37f   :  { %v615_v42 = vpop.permute.xlu1 %614 }
 0x380   :  { %620 = vst.msk [vmem:[#allocation3 + $0x20] sm:$0xff] %vm153_vm1, %v615_v42  ;;  %v623_v47 = vpop.permute.xlu0 %622 }
 0x381   :  { %628 = vst.msk [vmem:[#allocation3 + $0x30] sm:$0xff] %vm153_vm1, %v623_v47 }
 0x383   :  { %v617_v17 = vpop.permute.xlu1 %616  ;;  %v736_v50 = vld [vmem:[#allocation3 + $0x18] sm:$0xff] }
 0x384   :  { %621 = vst.msk [vmem:[#allocation3 + $0x28] sm:$0xff] %vm153_vm1, %v617_v17  ;;  %v710_v48 = vpop.permute.xlu0 %709  ;;  %v735_v49 = vld [vmem:[#allocation3 + $0x10] sm:$0xff] }
 0x385   :  { %715 = vst.msk [vmem:[#allocation3 + $0x50] sm:$0xff] %vm153_vm1, %v710_v48  ;;  %4170 = vmatprep.mubr.msk.f32.mxu1 %vm153_vm1, %v735_v49 }
 0x386   :  { %4171 = vmatmul.mubr.msk.f32.gmra.mrb[8].mxu1 %vm153_vm1, %v736_v50 }
 0x387   :  { %v625_v41 = vpop.permute.xlu1 %624  ;;  %v737_v54 = vld [vmem:[#allocation3 + $0x20] sm:$0xff] }
 0x388   :  { %629 = vst.msk [vmem:[#allocation3 + $0x38] sm:$0xff] %vm153_vm1, %v625_v41  ;;  %4173 = vmatprep.mubr.msk.f32.mxu1 %vm153_vm1, %v737_v54  ;;  %v718_v55 = vpop.permute.xlu0 %717  ;;  %v739_v32 = vld [vmem:[#allocation3 + $0x30] sm:$0xff] }
 0x389   :  { %723 = vst.msk [vmem:[#allocation3 + $0x60] sm:$0xff] %vm153_vm1, %v718_v55 }
 0x38b   :  { %v712_v46 = vpop.permute.xlu1 %711  ;;  %v738_v58 = vld [vmem:[#allocation3 + $0x28] sm:$0xff] }
 0x38c   :  { %716 = vst.msk [vmem:[#allocation3 + $0x58] sm:$0xff] %vm153_vm1, %v712_v46  ;;  %4174 = vmatmul.mubr.msk.f32.gmra.mrb[10].mxu1 %vm153_vm1, %v738_v58  ;;  %v726_v59 = vpop.permute.xlu0 %725  ;;  %v743_v2 = vld [vmem:[#allocation3 + $0x50] sm:$0xff] }
 0x38d   :  { %731 = vst.msk [vmem:[#allocation3 + $0x70] sm:$0xff] %vm153_vm1, %v726_v59  ;;  %4176 = vmatprep.mubr.msk.f32.mxu1 %vm153_vm1, %v739_v32 }
 0x38f   :  { %v720_v61 = vpop.permute.xlu1 %719  ;;  %v740_v62 = vld [vmem:[#allocation3 + $0x38] sm:$0xff] }
 0x390   :  { %724 = vst.msk [vmem:[#allocation3 + $0x68] sm:$0xff] %vm153_vm1, %v720_v61  ;;  %4177 = vmatmul.mubr.msk.f32.gmra.mrb[12].mxu1 %vm153_vm1, %v740_v62  ;;  %v745_v4 = vld [vmem:[#allocation3 + $0x60] sm:$0xff] }
 0x391   :  { %4179 = vmatprep.mubr.msk.f32.mxu1 %vm153_vm1, %v741_v63 }
 0x393   :  { %v728_v0 = vpop.permute.xlu1 %727  ;;  %v744_v43 = vld [vmem:[#allocation3 + $0x58] sm:$0xff] }
 0x394   :  { %732 = vst.msk [vmem:[#allocation3 + $0x78] sm:$0xff] %vm153_vm1, %v728_v0  ;;  %4180 = vmatmul.mubr.msk.f32.gmra.mrb[14].mxu1 %vm153_vm1, %v742_v36  ;;  %v747_v51 = vld [vmem:[#allocation3 + $0x70] sm:$0xff] }
 0x395   :  { %4182 = vmatprep.mubr.msk.f32.mxu1 %vm153_vm1, %v743_v2 }
 0x397   :  { %v746_v7 = vld [vmem:[#allocation3 + $0x68] sm:$0xff] }
 0x398   :  { %4183 = vmatmul.mubr.msk.f32.gmra.mrb[16].mxu1 %vm153_vm1, %v744_v43 }
 0x399   :  { %4185 = vmatprep.mubr.msk.f32.mxu1 %vm153_vm1, %v745_v4 }
 0x39b   :  { %v748_v56 = vld [vmem:[#allocation3 + $0x78] sm:$0xff] }
 0x39c   :  { %4186 = vmatmul.mubr.msk.f32.gmra.mrb[18].mxu1 %vm153_vm1, %v746_v7 }
 0x39d   :  { %4188 = vmatprep.mubr.msk.f32.mxu1 %vm153_vm1, %v747_v51 }
 0x3a0   :  { %4189 = vmatmul.mubr.msk.f32.gmra.mrb[20].mxu1 %vm153_vm1, %v748_v56 }
 0x3e6   :  { %v4169_v8 = vpop.f32.mrb[6].mxu1 }
 0x3e7   :  { %v887_v10 = vpop.f32.mrb[7].mxu1  ;;  %v970_v12 = vsel %vm966_vm3, %v4169_v8, -inf }
 0x3e8   :  { %971 = vmax.xlane.f32.xlu1 %v970_v12  ;;  %v967_v60 = vsel %vm966_vm3, %v887_v10, -inf }
 0x3e9   :  { %968 = vmax.xlane.f32.xlu0 %v967_v60 }
 0x459   :  { %v4172_v45 = vpop.f32.mrb[8].mxu1 }
 0x45a   :  { %v897_v13 = vpop.f32.mrb[9].mxu1  ;;  %v976_v14 = vsel %vm966_vm3, %v4172_v45, -inf }
 0x45b   :  { %977 = vmax.xlane.f32.xlu0 %v976_v14  ;;  %v973_v15 = vsel %vm966_vm3, %v897_v13, -inf }
 0x45f   :  { %974 = vmax.xlane.f32.xlu0 %v973_v15  ;;  %v4175_v18 = vpop.f32.mrb[10].mxu1 }
 0x460   :  { %v5319_v20 = vpop.f32.mrb[11].mxu1  ;;  %v982_v24 = vsel %vm966_vm3, %v4175_v18, -inf }
 0x461   :  { %983 = vmax.xlane.f32.xlu1 %v982_v24  ;;  %v979_v27 = vsel %vm966_vm3, %v5319_v20, -inf }
 0x463   :  { %980 = vmax.xlane.f32.xlu0 %v979_v27  ;;  %v5324_v57 = vpop.f32.mrb[12].mxu1 }
 0x464   :  { %v5326_v1 = vpop.f32.mrb[13].mxu1  ;;  %v988_v28 = vsel %vm966_vm3, %v5324_v57, -inf }
 0x465   :  { %989 = vmax.xlane.f32.xlu1 %v988_v28  ;;  %v985_v30 = vsel %vm966_vm3, %v5326_v1, -inf }
 0x467   :  { %986 = vmax.xlane.f32.xlu0 %v985_v30  ;;  %v5332_v31 = vpop.f32.mrb[14].mxu1 }
 0x468   :  { %v5334_v33 = vpop.f32.mrb[15].mxu1  ;;  %v994_v34 = vsel %vm966_vm3, %v5332_v31, -inf }
 0x469   :  { %995 = vmax.xlane.f32.xlu1 %v994_v34  ;;  %v991_v52 = vsel %vm966_vm3, %v5334_v33, -inf }
 0x46b   :  { %992 = vmax.xlane.f32.xlu0 %v991_v52  ;;  %v5340_v6 = vpop.f32.mrb[16].mxu1 }
 0x46c   :  { %v5342_v35 = vpop.f32.mrb[17].mxu1  ;;  %v1000_v38 = vsel %vm966_vm3, %v5340_v6, -inf }
 0x46d   :  { %1001 = vmax.xlane.f32.xlu1 %v1000_v38  ;;  %v997_v3 = vsel %vm966_vm3, %v5342_v35, -inf }
 0x46f   :  { %998 = vmax.xlane.f32.xlu0 %v997_v3  ;;  %v5348_v39 = vpop.f32.mrb[18].mxu1 }
 0x470   :  { %v5350_v40 = vpop.f32.mrb[19].mxu1  ;;  %v1006_v9 = vsel %vm966_vm3, %v5348_v39, -inf }
 0x471   :  { %1007 = vmax.xlane.f32.xlu1 %v1006_v9  ;;  %v1003_v42 = vsel %vm966_vm3, %v5350_v40, -inf }
 0x473   :  { %1004 = vmax.xlane.f32.xlu0 %v1003_v42  ;;  %v5356_v47 = vpop.f32.mrb[20].mxu1 }
 0x474   :  { %v5358_v17 = vpop.f32.mrb[21].mxu1  ;;  %v1012_v48 = vsel %vm966_vm3, %v5356_v47, -inf }
 0x475   :  { %v972_v49 = vpop.xlane.xlu1 %971  ;;  %1013 = vmax.xlane.f32.xlu1 %v1012_v48  ;;  %v1009_v50 = vsel %vm966_vm3, %v5358_v17, -inf }
 0x476   :  { %v1016_v41 = vsub.f32 %v4169_v8, %v972_v49  ;;  %v969_v54 = vpop.xlane.xlu0 %968 }
 0x477   :  { %v1015_v55 = vsub.f32 %v887_v10, %v969_v54  ;;  %1010 = vmax.xlane.f32.xlu0 %v1009_v50 }
 0x478   :  { %v1033_v46 = vmul.f32 1.442695, %v1016_v41 }
 0x479   :  { %v1031_v58 = vmul.f32 1.442695, %v1015_v55 }
 0x47a   :  { %4747 = vpow2.f32 %v1033_v46 }
 0x47b   :  { %4749 = vpow2.f32 %v1031_v58 }
 0x484   :  { %v5364_v59 = vpop.eup %4747 }
 0x485   :  { %v5366_v32 = vpop.eup %4749  ;;  %v1066_v61 = vsel %vm966_vm3, %v5364_v59, 0.0 }
 0x486   :  { %1067 = vadd.xlane.f32.xlu1 %v1066_v61  ;;  %v1063_v62 = vsel %vm966_vm3, %v5366_v32, 0.0 }
 0x487   :  { %1064 = vadd.xlane.f32.xlu0 %v1063_v62 }
 0x4e8   :  { %v978_v63 = vpop.xlane.xlu0 %977 }
 0x4e9   :  { %v1018_v0 = vsub.f32 %v4172_v45, %v978_v63 }
 0x4eb   :  { %v1037_v36 = vmul.f32 1.442695, %v1018_v0 }
 0x4ec   :  { %v975_v2 = vpop.xlane.xlu0 %974 }
 0x4ed   :  { %4751 = vpow2.f32 %v1037_v36  ;;  %v1017_v43 = vsub.f32 %v897_v13, %v975_v2 }
 0x4ee   :  { %v984_v4 = vpop.xlane.xlu1 %983 }
 0x4ef   :  { %v1035_v7 = vmul.f32 1.442695, %v1017_v43  ;;  %v1020_v51 = vsub.f32 %v4175_v18, %v984_v4 }
 0x4f0   :  { %v981_v56 = vpop.xlane.xlu0 %980 }
 0x4f1   :  { %4753 = vpow2.f32 %v1035_v7  ;;  %v1041_v8 = vmul.f32 1.442695, %v1020_v51  ;;  %v1019_v10 = vsub.f32 %v5319_v20, %v981_v56 }
 0x4f2   :  { %v990_v12 = vpop.xlane.xlu1 %989 }
 0x4f3   :  { %4755 = vpow2.f32 %v1041_v8  ;;  %v1039_v60 = vmul.f32 1.442695, %v1019_v10  ;;  %v1022_v14 = vsub.f32 %v5324_v57, %v990_v12 }
 0x4f4   :  { %v987_v15 = vpop.xlane.xlu0 %986 }
 0x4f5   :  { %4757 = vpow2.f32 %v1039_v60  ;;  %v1045_v45 = vmul.f32 1.442695, %v1022_v14  ;;  %v1021_v24 = vsub.f32 %v5326_v1, %v987_v15 }
 0x4f6   :  { %v996_v27 = vpop.xlane.xlu1 %995 }
 0x4f7   :  { %v5375_v13 = vpop.eup %4751  ;;  %4759 = vpow2.f32 %v1045_v45  ;;  %v1043_v18 = vmul.f32 1.442695, %v1021_v24  ;;  %v1024_v28 = vsub.f32 %v5332_v31, %v996_v27 }
 0x4f8   :  { %v993_v30 = vpop.xlane.xlu0 %992  ;;  %v1072_v20 = vsel %vm966_vm3, %v5375_v13, 0.0 }
 0x4f9   :  { %4761 = vpow2.f32 %v1043_v18  ;;  %v1049_v34 = vmul.f32 1.442695, %v1024_v28  ;;  %v1023_v57 = vsub.f32 %v5334_v33, %v993_v30  ;;  %1073 = vadd.xlane.f32.xlu1 %v1072_v20  ;;  %v5437_v20 = vld [vmem:[#allocation2 + $0x98] sm:$0xff] }
 0x4fa   :  { %v1002_v52 = vpop.xlane.xlu1 %1001 }
 0x4fb   :  { %v5381_v38 = vpop.eup %4753  ;;  %4763 = vpow2.f32 %v1049_v34  ;;  %v1047_v1 = vmul.f32 1.442695, %v1023_v57  ;;  %v1026_v3 = vsub.f32 %v5340_v6, %v1002_v52  ;;  %v5441_v52 = vld [vmem:[#allocation2 + $0x90] sm:$0xff] }
 0x4fc   :  { %v999_v9 = vpop.xlane.xlu0 %998  ;;  %v1069_v31 = vsel %vm966_vm3, %v5381_v38, 0.0 }
 0x4fd   :  { %v5386_v42 = vpop.eup %4755  ;;  %4765 = vpow2.f32 %v1047_v1  ;;  %v1053_v48 = vmul.f32 1.442695, %v1026_v3  ;;  %v1025_v49 = vsub.f32 %v5342_v35, %v999_v9  ;;  %1070 = vadd.xlane.f32.xlu0 %v1069_v31  ;;  %v251_v1 = vsel %vm153_vm1, %v5437_v20, 0.0 }
 0x4fe   :  { %v1008_v33 = vpop.xlane.xlu1 %1007  ;;  %v1078_v50 = vsel %vm966_vm3, %v5386_v42, 0.0  ;;  %v248_v3 = vsel %vm153_vm1, %v5441_v52, 0.0 }
 0x4ff   :  { %v5391_v41 = vpop.eup %4757  ;;  %4767 = vpow2.f32 %v1053_v48  ;;  %v1051_v54 = vmul.f32 1.442695, %v1025_v49  ;;  %v1028_v6 = vsub.f32 %v5348_v39, %v1008_v33  ;;  %1079 = vadd.xlane.f32.xlu1 %v1078_v50 }
 0x500   :  { %v1005_v55 = vpop.xlane.xlu0 %1004  ;;  %v1075_v46 = vsel %vm966_vm3, %v5391_v41, 0.0 }
 0x501   :  { %v5396_v58 = vpop.eup %4759  ;;  %4769 = vpow2.f32 %v1051_v54  ;;  %v1057_v35 = vmul.f32 1.442695, %v1028_v6  ;;  %v1027_v61 = vsub.f32 %v5350_v40, %v1005_v55  ;;  %1076 = vadd.xlane.f32.xlu0 %v1075_v46 }
 0x502   :  { %v1014_v62 = vpop.xlane.xlu1 %1013  ;;  %v1084_v63 = vsel %vm966_vm3, %v5396_v58, 0.0 }
 0x503   :  { %v5401_v0 = vpop.eup %4761  ;;  %4771 = vpow2.f32 %v1057_v35  ;;  %v1055_v39 = vmul.f32 1.442695, %v1027_v61  ;;  %v1030_v36 = vsub.f32 %v5356_v47, %v1014_v62  ;;  %1085 = vadd.xlane.f32.xlu1 %v1084_v63 }
 0x504   :  { %v1011_v2 = vpop.xlane.xlu0 %1010  ;;  %v1081_v43 = vsel %vm966_vm3, %v5401_v0, 0.0 }
 0x505   :  { %v5406_v4 = vpop.eup %4763  ;;  %4773 = vpow2.f32 %v1055_v39  ;;  %v1061_v40 = vmul.f32 1.442695, %v1030_v36  ;;  %v1029_v7 = vsub.f32 %v5358_v17, %v1011_v2  ;;  %1082 = vadd.xlane.f32.xlu0 %v1081_v43 }
 0x506   :  { %v1090_v51 = vsel %vm966_vm3, %v5406_v4, 0.0 }
 0x507   :  { %v5411_v56 = vpop.eup %4765  ;;  %4775 = vpow2.f32 %v1061_v40  ;;  %v1059_v8 = vmul.f32 1.442695, %v1029_v7  ;;  %1091 = vadd.xlane.f32.xlu1 %v1090_v51 }
 0x508   :  { %v1087_v47 = vsel %vm966_vm3, %v5411_v56, 0.0 }
 0x509   :  { %v5415_v10 = vpop.eup %4767  ;;  %4777 = vpow2.f32 %v1059_v8  ;;  %1088 = vadd.xlane.f32.xlu0 %v1087_v47 }
 0x50a   :  { %v1096_v12 = vsel %vm966_vm3, %v5415_v10, 0.0 }
 0x50b   :  { %v5419_v17 = vpop.eup %4769  ;;  %1097 = vadd.xlane.f32.xlu1 %v1096_v12 }
 0x50c   :  { %v1093_v60 = vsel %vm966_vm3, %v5419_v17, 0.0 }
 0x50d   :  { %v5423_v14 = vpop.eup %4771  ;;  %1094 = vadd.xlane.f32.xlu0 %v1093_v60 }
 0x50e   :  { %v1102_v15 = vsel %vm966_vm3, %v5423_v14, 0.0 }
 0x50f   :  { %v5427_v45 = vpop.eup %4773  ;;  %1103 = vadd.xlane.f32.xlu1 %v1102_v15 }
 0x510   :  { %v1099_v24 = vsel %vm966_vm3, %v5427_v45, 0.0 }
 0x511   :  { %v5431_v27 = vpop.eup %4775  ;;  %1100 = vadd.xlane.f32.xlu0 %v1099_v24 }
 0x512   :  { %v1108_v18 = vsel %vm966_vm3, %v5431_v27, 0.0 }
 0x513   :  { %v5435_v28 = vpop.eup %4777  ;;  %v1068_v30 = vpop.xlane.xlu1 %1067  ;;  %1109 = vadd.xlane.f32.xlu1 %v1108_v18 }
 0x514   :  { %4779 = vrcp.f32 %v1068_v30  ;;  %v1065_v34 = vpop.xlane.xlu0 %1064  ;;  %v1105_v57 = vsel %vm966_vm3, %v5435_v28, 0.0 }
 0x515   :  { %4781 = vrcp.f32 %v1065_v34  ;;  %1106 = vadd.xlane.f32.xlu0 %v1105_v57 }
 0x517   :  { %252 = vadd.xlane.f32.xlu1 %v251_v1 }
 0x519   :  { %249 = vadd.xlane.f32.xlu0 %v248_v3 }
 0x51e   :  { %v4780_v9 = vpop.eup %4779 }
 0x51f   :  { %v4782_v31 = vpop.eup %4781  ;;  %v1128_v49 = vmul.f32 %v4780_v9, %v5364_v59 }
 0x520   :  { %v1127_v48 = vmul.f32 %v4782_v31, %v5366_v32 }
 0x522   :  { %4211 = vmatprep.mubr.msk.f32.mxu0 %vm966_vm3, %v1127_v48 }
 0x523   :  { %4212 = vmatmul.mubr.msk.f32.vlgmr.msra.gmra.mrb[2].mxu0 %vm966_vm3, %v1128_v49 }
 0x586   :  { %v1074_v33 = vpop.xlane.xlu1 %1073 }
 0x587   :  { %4783 = vrcp.f32 %v1074_v33 }
 0x58a   :  { %v1071_v50 = vpop.xlane.xlu0 %1070 }
 0x58b   :  { %4785 = vrcp.f32 %v1071_v50 }
 0x58c   :  { %v1080_v54 = vpop.xlane.xlu1 %1079 }
 0x58d   :  { %4787 = vrcp.f32 %v1080_v54 }
 0x58e   :  { %v1077_v6 = vpop.xlane.xlu0 %1076 }
 0x58f   :  { %4789 = vrcp.f32 %v1077_v6 }
 0x590   :  { %v1086_v55 = vpop.xlane.xlu1 %1085 }
 0x591   :  { %4791 = vrcp.f32 %v1086_v55  ;;  %v4784_v35 = vpop.eup %4783 }
 0x592   :  { %v1083_v46 = vpop.xlane.xlu0 %1082  ;;  %v1130_v63 = vmul.f32 %v4784_v35, %v5375_v13  ;;  %v5507_v35 = vld [vmem:[%s6418_s0 + $0x58] sm:$0xff] }
 0x593   :  { %4793 = vrcp.f32 %v1083_v46  ;;  %v5488_v46 = vld [vmem:[%s6418_s0 + $0x40] sm:$0xff]  ;;  %167 = vst.msk [vmem:[#allocation2 + $0x68] sm:$0xff] %vm153_vm1, %v5507_v35 }
 0x594   :  { %v1092_v32 = vpop.xlane.xlu1 %1091  ;;  %164 = vst.msk [vmem:[#allocation2 + $0x50] sm:$0xff] %vm153_vm1, %v5488_v46 }
 0x595   :  { %v4786_v61 = vpop.eup %4785  ;;  %4795 = vrcp.f32 %v1092_v32  ;;  %v5516_v32 = vld [vmem:[%s6418_s0 + $0x60] sm:$0xff] }
 0x596   :  { %v1089_v59 = vpop.xlane.xlu0 %1088  ;;  %v1129_v62 = vmul.f32 %v4786_v61, %v5381_v38  ;;  %168 = vst.msk [vmem:[#allocation2 + $0x70] sm:$0xff] %vm153_vm1, %v5516_v32  ;;  %v5523_v61 = vld [vmem:[%s6418_s0 + $0x68] sm:$0xff] }
 0x597   :  { %4797 = vrcp.f32 %v1089_v59  ;;  %v4788_v39 = vpop.eup %4787  ;;  %169 = vst.msk [vmem:[#allocation2 + $0x78] sm:$0xff] %vm153_vm1, %v5523_v61  ;;  %v5530_v59 = vld [vmem:[%s6418_s0 + $0x70] sm:$0xff] }
 0x598   :  { %v1098_v36 = vpop.xlane.xlu1 %1097  ;;  %4214 = vmatprep.mubr.msk.f32.mxu0 %vm966_vm3, %v1129_v62  ;;  %v1132_v7 = vmul.f32 %v4788_v39, %v5386_v42  ;;  %170 = vst.msk [vmem:[#allocation2 + $0x80] sm:$0xff] %vm153_vm1, %v5530_v59 }
 0x599   :  { %v4790_v2 = vpop.eup %4789  ;;  %4215 = vmatmul.mubr.msk.f32.gmra.mrb[4].mxu0 %vm966_vm3, %v1130_v63  ;;  %4799 = vrcp.f32 %v1098_v36  ;;  %v5537_v36 = vld [vmem:[%s6418_s0 + $0x78] sm:$0xff] }
 0x59a   :  { %v1095_v43 = vpop.xlane.xlu0 %1094  ;;  %v1131_v40 = vmul.f32 %v4790_v2, %v5391_v41  ;;  %171 = vst.msk [vmem:[#allocation2 + $0x88] sm:$0xff] %vm153_vm1, %v5537_v36 }
 0x59b   :  { %4801 = vrcp.f32 %v1095_v43  ;;  %v4792_v51 = vpop.eup %4791 }
 0x59c   :  { %v1104_v8 = vpop.xlane.xlu1 %1103  ;;  %4217 = vmatprep.mubr.msk.f32.mxu0 %vm966_vm3, %v1131_v40  ;;  %v1134_v12 = vmul.f32 %v4792_v51, %v5396_v58 }
 0x59d   :  { %v4794_v38 = vpop.eup %4793  ;;  %4218 = vmatmul.mubr.msk.f32.gmra.mrb[6].mxu0 %vm966_vm3, %v1132_v7  ;;  %4803 = vrcp.f32 %v1104_v8 }
 0x59e   :  { %v1101_v13 = vpop.xlane.xlu0 %1100  ;;  %v1133_v47 = vmul.f32 %v4794_v38, %v5401_v0 }
 0x59f   :  { %4805 = vrcp.f32 %v1101_v13  ;;  %v4796_v60 = vpop.eup %4795 }
 0x5a0   :  { %v1110_v15 = vpop.xlane.xlu1 %1109  ;;  %4220 = vmatprep.mubr.msk.f32.mxu0 %vm966_vm3, %v1133_v47  ;;  %v1136_v18 = vmul.f32 %v4796_v60, %v5406_v4 }
 0x5a1   :  { %v4798_v41 = vpop.eup %4797  ;;  %4221 = vmatmul.mubr.msk.f32.gmra.mrb[8].mxu0 %vm966_vm3, %v1134_v12  ;;  %4807 = vrcp.f32 %v1110_v15 }
 0x5a2   :  { %v1107_v42 = vpop.xlane.xlu0 %1106  ;;  %v1135_v24 = vmul.f32 %v4798_v41, %v5411_v56 }
 0x5a3   :  { %4809 = vrcp.f32 %v1107_v42  ;;  %v4800_v30 = vpop.eup %4799 }
 0x5a4   :  { %v253_v34 = vpop.xlane.xlu1 %252  ;;  %4223 = vmatprep.mubr.msk.f32.mxu0 %vm966_vm3, %v1135_v24  ;;  %v1138_v31 = vmul.f32 %v4800_v30, %v5415_v10  ;;  %v517_v24 = vld [vmem:[#allocation6 + $0x70] sm:$0xff] }
 0x5a5   :  { %v4802_v0 = vpop.eup %4801  ;;  %v274_v58 = vmul.f32 0.03125, %v253_v34  ;;  %4224 = vmatmul.mubr.msk.f32.gmra.mrb[10].mxu0 %vm966_vm3, %v1136_v18  ;;  %v518_v18 = vld [vmem:[#allocation6 + $0x78] sm:$0xff] }
 0x5a6   :  { %v250_v57 = vpop.xlane.xlu0 %249  ;;  %v1137_v1 = vmul.f32 %v4802_v0, %v5419_v17  ;;  %v5553_v34 = vpack.c.bf16 %v518_v18, %v517_v24  ;;  %v515_v18 = vld [vmem:[#allocation6 + $0x60] sm:$0xff] }
 0x5a7   :  { %v294_v3 = vsub.f32 %v5437_v20, %v274_v58  ;;  %v273_v9 = vmul.f32 0.03125, %v250_v57  ;;  %v4804_v56 = vpop.eup %4803  ;;  %v519_v58 = vld [vmem:[#allocation6 + $0x80] sm:$0xff]  ;;  %v520_v57 = vld [vmem:[#allocation6 + $0x88] sm:$0xff] }
 0x5a8   :  { %4226 = vmatprep.mubr.msk.f32.mxu0 %vm966_vm3, %v1137_v1  ;;  %v1140_v17 = vmul.f32 %v4804_v56, %v5423_v14  ;;  %4588 = vmatprep.subr.bf16.mxu0 %v5553_v34 }
 0x5a9   :  { %v4806_v4 = vpop.eup %4805  ;;  %v293_v48 = vsub.f32 %v5441_v52, %v273_v9  ;;  %4227 = vmatmul.mubr.msk.f32.gmra.mrb[12].mxu0 %vm966_vm3, %v1138_v31  ;;  %v314_v49 = vmul.f32 %v294_v3, %v294_v3 }
 0x5aa   :  { %v1139_v33 = vmul.f32 %v4806_v4, %v5427_v45  ;;  %4590 = vmatpush3.bf16.xpose.msra.mxu0 %v5553_v34  ;;  %v513_v4 = vld [vmem:[#allocation6 + $0x50] sm:$0xff] }
 0x5ab   :  { %v372_v50 = vsel %vm153_vm1, %v314_v49, 0.0  ;;  %v313_v54 = vmul.f32 %v293_v48, %v293_v48  ;;  %v4808_v20 = vpop.eup %4807 }
 0x5ac   :  { %373 = vadd.xlane.f32.xlu1 %v372_v50  ;;  %4229 = vmatprep.mubr.msk.f32.mxu0 %vm966_vm3, %v1139_v33  ;;  %v1142_v55 = vmul.f32 %v4808_v20, %v5431_v27  ;;  %v5495_v27 = vld [vmem:[%s6418_s0 + $0x50] sm:$0xff] }
 0x5ad   :  { %v4810_v10 = vpop.eup %4809  ;;  %4230 = vmatmul.mubr.msk.f32.gmra.mrb[14].mxu0 %vm966_vm3, %v1140_v17  ;;  %v369_v6 = vsel %vm153_vm1, %v313_v54, 0.0  ;;  %166 = vst.msk [vmem:[#allocation2 + $0x60] sm:$0xff] %vm153_vm1, %v5495_v27  ;;  %v5578_v54 = vld [vmem:[#allocation2 + $0x50] sm:$0xff] }
 0x5ae   :  { %370 = vadd.xlane.f32.xlu0 %v369_v6  ;;  %v1141_v52 = vmul.f32 %v4810_v10, %v5435_v28  ;;  %v5502_v28 = vld [vmem:[%s6418_s0 + $0x48] sm:$0xff]  ;;  %v224_v20 = vsel %vm153_vm1, %v5578_v54, 0.0 }
 0x5af   :  { %165 = vst.msk [vmem:[#allocation2 + $0x58] sm:$0xff] %vm153_vm1, %v5502_v28 }
 0x5b0   :  { %4232 = vmatprep.mubr.msk.f32.mxu0 %vm966_vm3, %v1141_v52 }
 0x5b1   :  { %4233 = vmatmul.mubr.msk.f32.gmra.mrb[16].mxu0 %vm966_vm3, %v1142_v55  ;;  %v5588_v55 = vld [vmem:[#allocation2 + $0x68] sm:$0xff] }
 0x5b4   :  { %v5582_v10 = vld [vmem:[#allocation2 + $0x60] sm:$0xff] }
 0x5b5   :  { %v230_v6 = vsel %vm153_vm1, %v5582_v10, 0.0 }
 0x5b6   :  { %v5586_v52 = vld [vmem:[#allocation2 + $0x58] sm:$0xff] }
 0x5f6   :  { %v4213_v14 = vpop.f32.mrb[2].mxu0 }
 0x5f7   :  { %1337 = vst.msk [vmem:[#allocation4 + $0x10] sm:$0xff] %vm153_vm1, %v4213_v14  ;;  %v1257_v45 = vpop.f32.mrb[3].mxu0  ;;  %v227_v14 = vsel %vm153_vm1, %v5586_v52, 0.0 }
 0x5f8   :  { %1336 = vst.msk [vmem:[#allocation4] sm:$0xff] %vm153_vm1, %v1257_v45  ;;  %v233_v45 = vsel %vm153_vm1, %v5588_v55, 0.0 }
 0x639   :  { %v374_v62 = vpop.xlane.xlu1 %373 }
 0x63a   :  { %v394_v63 = vmul.f32 0.03125, %v374_v62  ;;  %v5594_v62 = vld [vmem:[#allocation2 + $0x70] sm:$0xff] }
 0x63b   :  { %v371_v39 = vpop.xlane.xlu0 %370 }
 0x63c   :  { %v414_v2 = vadd.f32 1e-05, %v394_v63  ;;  %v393_v43 = vmul.f32 0.03125, %v371_v39  ;;  %v5596_v63 = vld [vmem:[#allocation2 + $0x78] sm:$0xff]  ;;  %v236_v39 = vsel %vm153_vm1, %v5594_v62, 0.0 }
 0x63e   :  { %4811 = vrsqrt.f32 %v414_v2  ;;  %v413_v40 = vadd.f32 1e-05, %v393_v43  ;;  %v239_v2 = vsel %vm153_vm1, %v5596_v63, 0.0  ;;  %v5602_v43 = vld [vmem:[#allocation2 + $0x80] sm:$0xff] }
 0x640   :  { %4813 = vrsqrt.f32 %v413_v40  ;;  %v5604_v40 = vld [vmem:[#allocation2 + $0x88] sm:$0xff] }
 0x648   :  { %v4812_v7 = vpop.eup %4811 }
 0x649   :  { %v454_v51 = vmul.f32 %v4812_v7, %v294_v3  ;;  %v5558_v3 = vpack.c.bf16 %v520_v57, %v519_v58  ;;  %v242_v7 = vsel %vm153_vm1, %v5602_v43, 0.0 }
 0x64a   :  { %v4814_v8 = vpop.eup %4813 }
 0x64b   :  { %v453_v38 = vmul.f32 %v4814_v8, %v293_v48  ;;  %v479_v13 = vmul.f32 %v5174_v44, %v454_v51  ;;  %4592 = vmatprep.subr.bf16.mxu0 %v5558_v3  ;;  %v514_v48 = vld [vmem:[#allocation6 + $0x58] sm:$0xff]  ;;  %v245_v51 = vsel %vm153_vm1, %v5604_v40, 0.0 }
 0x64c   :  { %4594 = vmatpush3.bf16.xpose.msra.mxu0 %v5558_v3  ;;  %v5566_v33 = vpack.c.bf16 %v514_v48, %v513_v4 }
 0x64d   :  { %v478_v47 = vmul.f32 %v5174_v44, %v453_v38  ;;  %v5547_v60 = vadd.f32 %v5183_v53, %v479_v13 }
 0x64e   :  { %4596 = vmatprep.subr.bf16.mxu0 %v5566_v33 }
 0x64f   :  { %v5544_v12 = vadd.f32 %v5183_v53, %v478_v47 }
 0x651   :  { %4265 = vmatprep.mubr.msk.f32.mxu1 %vm153_vm1, %v5544_v12 }
 0x652   :  { %4266 = vmatmul.mubr.msk.f32.vlgmr.msra.gmra.mrb[22].mxu1 %vm153_vm1, %v5547_v60 }
 0x66c   :  { %v4216_v15 = vpop.f32.mrb[4].mxu0 }
 0x66d   :  { %v1267_v41 = vpop.f32.mrb[5].mxu0 }
 0x670   :  { %v4219_v42 = vpop.f32.mrb[6].mxu0 }
 0x671   :  { %v1277_v30 = vpop.f32.mrb[7].mxu0 }
 0x674   :  { %v4222_v44 = vpop.f32.mrb[8].mxu0 }
 0x675   :  { %v1287_v53 = vpop.f32.mrb[9].mxu0 }
 0x678   :  { %v4225_v0 = vpop.f32.mrb[10].mxu0 }
 0x679   :  { %1372 = vst.msk [vmem:[#allocation4 + $0x18] sm:$0xff] %vm153_vm1, %v4225_v0  ;;  %v1297_v1 = vpop.f32.mrb[11].mxu0 }
 0x67a   :  { %1371 = vst.msk [vmem:[#allocation4 + $0x8] sm:$0xff] %vm153_vm1, %v1297_v1 }
 0x67c   :  { %v4228_v9 = vpop.f32.mrb[12].mxu0 }
 0x67d   :  { %1377 = vrot.lane.b32.xlu1 %v4228_v9, %s4990_s23  ;;  %v1307_v31 = vpop.f32.mrb[13].mxu0 }
 0x67e   :  { %1375 = vrot.lane.b32.xlu0 %v1307_v31, %s4990_s23 }
 0x680   :  { %v4231_v56 = vpop.f32.mrb[14].mxu0 }
 0x681   :  { %1387 = vrot.lane.b32.xlu1 %v4231_v56, %s4989_s22  ;;  %v1317_v49 = vpop.f32.mrb[15].mxu0 }
 0x684   :  { %v4234_v50 = vpop.f32.mrb[16].mxu0 }
 0x685   :  { %1385 = vrot.lane.b32.xlu1 %v1317_v49, %s4989_s22  ;;  %v1327_v17 = vpop.f32.mrb[17].mxu0 }
 0x686   :  { %1395 = vrot.lane.b32.xlu0 %v1327_v17, %s4988_s1 }
 0x689   :  { %1397 = vrot.lane.b32.xlu1 %v4234_v50, %s4988_s1 }
 0x68a   :  { %1340 = vrot.lane.b32.xlu0 %v1267_v41, %s4990_s23 }
 0x68d   :  { %1342 = vrot.lane.b32.xlu1 %v4216_v15, %s4990_s23 }
 0x68e   :  { %1351 = vrot.lane.b32.xlu0 %v1277_v30, %s4989_s22  ;;  %v516_v30 = vld [vmem:[#allocation6 + $0x68] sm:$0xff] }
 0x68f   :  { %v5619_v0 = vpack.c.bf16 %v516_v30, %v515_v18 }
 0x691   :  { %1353 = vrot.lane.b32.xlu1 %v4219_v42, %s4989_s22 }
 0x692   :  { %1362 = vrot.lane.b32.xlu0 %v1287_v53, %s4988_s1 }
 0x695   :  { %1364 = vrot.lane.b32.xlu1 %v4222_v44, %s4988_s1 }
 0x6b1   :  { %225 = vadd.xlane.f32.xlu0 %v224_v20 }
 0x6b5   :  { %231 = vadd.xlane.f32.xlu0 %v230_v6 }
 0x6b9   :  { %228 = vadd.xlane.f32.xlu1 %v227_v14  ;;  %234 = vadd.xlane.f32.xlu0 %v233_v45 }
 0x6bd   :  { %237 = vadd.xlane.f32.xlu0 %v236_v39  ;;  %240 = vadd.xlane.f32.xlu1 %v239_v2 }
 0x6c1   :  { %243 = vadd.xlane.f32.xlu0 %v242_v7  ;;  %246 = vadd.xlane.f32.xlu1 %v245_v51 }
 0x6ef   :  { %v1378_v8 = vpop.permute.xlu1 %1377 }
 0x6f0   :  { %1382 = vst.msk [vmem:[#allocation4 + $0x18] sm:$0xff] %vm1346_vm4, %v1378_v8  ;;  %v1376_v38 = vpop.permute.xlu0 %1375 }
 0x6f1   :  { %1381 = vst.msk [vmem:[#allocation4 + $0x8] sm:$0xff] %vm1346_vm4, %v1376_v38 }
 0x6f3   :  { %v1388_v13 = vpop.permute.xlu1 %1387 }
 0x6f4   :  { %1392 = vst.msk [vmem:[#allocation4 + $0x18] sm:$0xff] %vm1357_vm5, %v1388_v13 }
 0x6f7   :  { %v1386_v47 = vpop.permute.xlu1 %1385 }
 0x6f8   :  { %1391 = vst.msk [vmem:[#allocation4 + $0x8] sm:$0xff] %vm1357_vm5, %v1386_v47  ;;  %v1396_v15 = vpop.permute.xlu0 %1395 }
 0x6f9   :  { %1401 = vst.msk [vmem:[#allocation4 + $0x8] sm:$0xff] %vm1368_vm6, %v1396_v15 }
 0x6fb   :  { %v1398_v41 = vpop.permute.xlu1 %1397 }
 0x6fc   :  { %1402 = vst.msk [vmem:[#allocation4 + $0x18] sm:$0xff] %vm1368_vm6, %v1398_v41  ;;  %v1341_v42 = vpop.permute.xlu0 %1340 }
 0x6fd   :  { %1347 = vst.msk [vmem:[#allocation4] sm:$0xff] %vm1346_vm4, %v1341_v42 }
 0x6ff   :  { %v1343_v24 = vpop.permute.xlu1 %1342 }
 0x700   :  { %1348 = vst.msk [vmem:[#allocation4 + $0x10] sm:$0xff] %vm1346_vm4, %v1343_v24  ;;  %v1352_v44 = vpop.permute.xlu0 %1351  ;;  %v1404_v53 = vld [vmem:[#allocation4 + $0x8] sm:$0xff] }
 0x701   :  { %1358 = vst.msk [vmem:[#allocation4] sm:$0xff] %vm1357_vm5, %v1352_v44  ;;  %4243 = vmatprep.mubr.f32.mxu0 %v1404_v53 }
 0x703   :  { %v1354_v58 = vpop.permute.xlu1 %1353  ;;  %v1406_v57 = vld [vmem:[#allocation4 + $0x18] sm:$0xff] }
 0x704   :  { %1359 = vst.msk [vmem:[#allocation4 + $0x10] sm:$0xff] %vm1357_vm5, %v1354_v58  ;;  %4244 = vmatmul.mubr.f32.vlgmr.msra.gmra.mrb[18].mxu0 %v1406_v57  ;;  %v1363_v1 = vpop.permute.xlu0 %1362 }
 0x705   :  { %4598 = vmatpush3.bf16.xpose.msra.mxu0 %v5566_v33  ;;  %1369 = vst.msk [vmem:[#allocation4] sm:$0xff] %vm1368_vm6, %v1363_v1 }
 0x706   :  { %4600 = vmatprep.subr.bf16.mxu0 %v5619_v0 }
 0x707   :  { %v1365_v9 = vpop.permute.xlu1 %1364 }
 0x708   :  { %1370 = vst.msk [vmem:[#allocation4 + $0x10] sm:$0xff] %vm1368_vm6, %v1365_v9 }
 0x70c   :  { %v1403_v31 = vld [vmem:[#allocation4] sm:$0xff] }
 0x70d   :  { %4602 = vmatpush3.bf16.xpose.msra.mxu0 %v5619_v0  ;;  %4254 = vmatprep.mubr.f32.mxu0 %v1403_v31 }
 0x70e   :  { %4612 = vmatprep.subr.bf16.mxu0 %v5147_v11 }
 0x70f   :  { %v1405_v56 = vld [vmem:[#allocation4 + $0x10] sm:$0xff] }
 0x714   :  { %4255 = vmatmul.mubr.f32.vlgmr.msra.gmra.mrb[18].mxu0 %v1405_v56 }
 0x715   :  { %4614 = vmatpush3.bf16.msra.mxu0 %v5147_v11  ;;  %4276 = vmatprep.mubr.msk.f32.mxu0 %vm153_vm1, %v5544_v12 }
 0x716   :  { %4616 = vmatprep.subr.bf16.mxu0 %v5164_v22 }
 0x719   :  { %4618 = vmatpush3.bf16.msra.mxu0 %v5164_v22 }
 0x71c   :  { %4277 = vmatmul.mubr.msk.f32.vlgmr.msra.gmra.mrb[20].mxu0 %vm153_vm1, %v5547_v60 }
 0x725   :  { %v4267_v4 = vpop.f32.mrb[22].mxu1 }
 0x726   :  { %1641 = vst.msk [vmem:[#allocation3 + $0x8] sm:$0xff] %vm153_vm1, %v4267_v4  ;;  %v1631_v48 = vpop.f32.mrb[23].mxu1 }
 0x727   :  { %1640 = vst.msk [vmem:[#allocation3] sm:$0xff] %vm153_vm1, %v1631_v48 }
 0x72e   :  { %v1771_v49 = vld [vmem:[#allocation3] sm:$0xff] }
 0x72f   :  { %4299 = vmatprep.mubr.msk.f32.mxu1 %vm153_vm1, %v1771_v49 }
 0x73e   :  { %v226_v11 = vpop.xlane.xlu0 %225 }
 0x73f   :  { %v265_v50 = vmul.f32 0.03125, %v226_v11 }
 0x741   :  { %v5639_v17 = vsub.f32 %v5578_v54, %v265_v50 }
 0x742   :  { %v232_v20 = vpop.xlane.xlu0 %231 }
 0x743   :  { %v267_v6 = vmul.f32 0.03125, %v232_v20  ;;  %v305_v22 = vmul.f32 %v5639_v17, %v5639_v17 }
 0x745   :  { %v5644_v14 = vsub.f32 %v5582_v10, %v267_v6  ;;  %v345_v45 = vsel %vm153_vm1, %v305_v22, 0.0 }
 0x746   :  { %v229_v39 = vpop.xlane.xlu1 %228  ;;  %346 = vadd.xlane.f32.xlu0 %v345_v45  ;;  %v235_v2 = vpop.xlane.xlu0 %234 }
 0x747   :  { %v266_v7 = vmul.f32 0.03125, %v229_v39  ;;  %v268_v51 = vmul.f32 0.03125, %v235_v2  ;;  %v307_v8 = vmul.f32 %v5644_v14, %v5644_v14 }
 0x749   :  { %v5650_v54 = vsub.f32 %v5586_v52, %v266_v7  ;;  %v5653_v38 = vsub.f32 %v5588_v55, %v268_v51  ;;  %v351_v13 = vsel %vm153_vm1, %v307_v8, 0.0 }
 0x74a   :  { %352 = vadd.xlane.f32.xlu0 %v351_v13  ;;  %v238_v10 = vpop.xlane.xlu0 %237  ;;  %v241_v47 = vpop.xlane.xlu1 %240 }
 0x74b   :  { %v269_v15 = vmul.f32 0.03125, %v238_v10  ;;  %v306_v41 = vmul.f32 %v5650_v54, %v5650_v54  ;;  %v270_v42 = vmul.f32 0.03125, %v241_v47  ;;  %v308_v24 = vmul.f32 %v5653_v38, %v5653_v38 }
 0x74d   :  { %v5661_v18 = vsub.f32 %v5594_v62, %v269_v15  ;;  %v348_v52 = vsel %vm153_vm1, %v306_v41, 0.0  ;;  %v5665_v55 = vsub.f32 %v5596_v63, %v270_v42  ;;  %v354_v53 = vsel %vm153_vm1, %v308_v24, 0.0 }
 0x74e   :  { %349 = vadd.xlane.f32.xlu1 %v348_v52  ;;  %v244_v30 = vpop.xlane.xlu0 %243  ;;  %v247_v44 = vpop.xlane.xlu1 %246 }
 0x74f   :  { %v271_v58 = vmul.f32 0.03125, %v244_v30  ;;  %v272_v57 = vmul.f32 0.03125, %v247_v44  ;;  %v309_v1 = vmul.f32 %v5661_v18, %v5661_v18  ;;  %v310_v9 = vmul.f32 %v5665_v55, %v5665_v55 }
 0x751   :  { %v5673_v62 = vsub.f32 %v5602_v43, %v271_v58  ;;  %v5676_v31 = vsub.f32 %v5604_v40, %v272_v57  ;;  %v357_v63 = vsel %vm153_vm1, %v309_v1, 0.0  ;;  %v360_v56 = vsel %vm153_vm1, %v310_v9, 0.0 }
 0x752   :  { %355 = vadd.xlane.f32.xlu1 %v354_v53  ;;  %358 = vadd.xlane.f32.xlu0 %v357_v63 }
 0x753   :  { %v311_v49 = vmul.f32 %v5673_v62, %v5673_v62  ;;  %v312_v11 = vmul.f32 %v5676_v31, %v5676_v31 }
 0x755   :  { %v363_v50 = vsel %vm153_vm1, %v311_v49, 0.0  ;;  %v366_v43 = vsel %vm153_vm1, %v312_v11, 0.0 }
 0x756   :  { %361 = vadd.xlane.f32.xlu1 %v360_v56  ;;  %364 = vadd.xlane.f32.xlu0 %v363_v50 }
 0x75a   :  { %367 = vadd.xlane.f32.xlu1 %v366_v43 }
 0x76b   :  { %1646 = vrot.lane.b32.xlu1 %v4267_v4, %s4988_s1 }
 0x76c   :  { %1644 = vrot.lane.b32.xlu0 %v1631_v48, %s4988_s1 }
 0x76f   :  { %1652 = vrot.lane.b32.xlu1 %v1631_v48, %s4989_s22 }
 0x770   :  { %1660 = vrot.lane.b32.xlu0 %v1631_v48, %s4990_s23 }
 0x773   :  { %1654 = vrot.lane.b32.xlu1 %v4267_v4, %s4989_s22 }
 0x777   :  { %1662 = vrot.lane.b32.xlu1 %v4267_v4, %s4990_s23 }
 0x7d3   :  { %v347_v40 = vpop.xlane.xlu0 %346 }
 0x7d4   :  { %v385_v20 = vmul.f32 0.03125, %v347_v40  ;;  %v4959_v40 = vld [vmem:[#allocation6 + $0x171] ss:$0 sm:$0xff] }
 0x7d6   :  { %v405_v6 = vadd.f32 1e-05, %v385_v20 }
 0x7d7   :  { %v353_v22 = vpop.xlane.xlu0 %352 }
 0x7d8   :  { %v387_v45 = vmul.f32 0.03125, %v353_v22  ;;  %4815 = vrsqrt.f32 %v405_v6 }
 0x7da   :  { %v407_v39 = vadd.f32 1e-05, %v387_v45 }
 0x7db   :  { %v350_v2 = vpop.xlane.xlu1 %349 }
 0x7dc   :  { %v386_v7 = vmul.f32 0.03125, %v350_v2  ;;  %4817 = vrsqrt.f32 %v407_v39 }
 0x7de   :  { %v406_v51 = vadd.f32 1e-05, %v386_v7 }
 0x7df   :  { %v356_v8 = vpop.xlane.xlu1 %355  ;;  %v359_v13 = vpop.xlane.xlu0 %358 }
 0x7e0   :  { %4819 = vrsqrt.f32 %v406_v51  ;;  %v388_v10 = vmul.f32 0.03125, %v356_v8  ;;  %v389_v48 = vmul.f32 0.03125, %v359_v13  ;;  %v4960_v8 = vld [vmem:[#allocation6 + $0x172] ss:$0 sm:$0xff] }
 0x7e2   :  { %v408_v47 = vadd.f32 1e-05, %v388_v10  ;;  %v409_v15 = vadd.f32 1e-05, %v389_v48  ;;  %v4816_v42 = vpop.eup %4815 }
 0x7e3   :  { %v362_v41 = vpop.xlane.xlu1 %361  ;;  %v365_v4 = vpop.xlane.xlu0 %364  ;;  %v445_v53 = vmul.f32 %v4816_v42, %v5639_v17 }
 0x7e4   :  { %4821 = vrsqrt.f32 %v408_v47  ;;  %v390_v24 = vmul.f32 0.03125, %v362_v41  ;;  %v391_v52 = vmul.f32 0.03125, %v365_v4 }
 0x7e5   :  { %4823 = vrsqrt.f32 %v409_v15  ;;  %v470_v20 = vmul.f32 %v4959_v40, %v445_v53 }
 0x7e6   :  { %v410_v30 = vadd.f32 1e-05, %v390_v24  ;;  %v411_v44 = vadd.f32 1e-05, %v391_v52  ;;  %v4818_v1 = vpop.eup %4817 }
 0x7e7   :  { %v4256_v58 = vpop.f32.mrb[18].mxu0  ;;  %v368_v57 = vpop.xlane.xlu1 %367  ;;  %v447_v50 = vmul.f32 %v4818_v1, %v5644_v14  ;;  %v495_v14 = vadd.f32 %v4960_v8, %v470_v20 }
 0x7e8   :  { %4825 = vrsqrt.f32 %v410_v30  ;;  %1558 = vst.msk [vmem:[#allocation5 + $0x8] sm:$0xff] %vm153_vm1, %v4256_v58  ;;  %v1548_v9 = vpop.f32.mrb[19].mxu0  ;;  %v392_v63 = vmul.f32 0.03125, %v368_v57  ;;  %v1645_v56 = vpop.permute.xlu0 %1644 }
 0x7e9   :  { %4827 = vrsqrt.f32 %v411_v44  ;;  %1557 = vst.msk [vmem:[#allocation5] sm:$0xff] %vm153_vm1, %v1548_v9  ;;  %1650 = vst.msk [vmem:[#allocation3 + $0x10] sm:$0xff] %vm153_vm1, %v1645_v56 }
 0x7ea   :  { %v4820_v49 = vpop.eup %4819  ;;  %v412_v11 = vadd.f32 1e-05, %v392_v63 }
 0x7eb   :  { %v446_v17 = vmul.f32 %v4820_v49, %v5650_v54  ;;  %v1647_v43 = vpop.permute.xlu1 %1646  ;;  %v472_v54 = vmul.f32 %v4959_v40, %v447_v50  ;;  %v4643_v50 = vpack.c.bf16 %v5547_v60, %v5544_v12 }
 0x7ec   :  { %4829 = vrsqrt.f32 %v412_v11  ;;  %1651 = vst.msk [vmem:[#allocation3 + $0x18] sm:$0xff] %vm153_vm1, %v1647_v43  ;;  %v1661_v6 = vpop.permute.xlu0 %1660 }
 0x7ed   :  { %1666 = vst.msk [vmem:[#allocation3 + $0x30] sm:$0xff] %vm153_vm1, %v1661_v6  ;;  %v471_v22 = vmul.f32 %v4959_v40, %v446_v17  ;;  %v1772_v6 = vld [vmem:[#allocation3 + $0x8] sm:$0xff] }
 0x7ee   :  { %v4822_v45 = vpop.eup %4821 }
 0x7ef   :  { %v4824_v39 = vpop.eup %4823  ;;  %v448_v2 = vmul.f32 %v4822_v45, %v5653_v38  ;;  %v4278_v7 = vpop.f32.mrb[20].mxu0  ;;  %v496_v13 = vadd.f32 %v4960_v8, %v471_v22  ;;  %v2594_v43 = vld [vmem:[#allocation5 + $0x8] sm:$0xff] }
 0x7f0   :  { %v1653_v51 = vpop.permute.xlu1 %1652  ;;  %v449_v10 = vmul.f32 %v4824_v39, %v5661_v18  ;;  %1744 = vst.msk [vmem:[#allocation3 + $0x48] sm:$0xff] %vm153_vm1, %v4278_v7  ;;  %v1734_v48 = vpop.f32.mrb[21].mxu0  ;;  %1749 = vrot.lane.b32.xlu1 %v4278_v7, %s4988_s1  ;;  %v497_v18 = vadd.f32 %v4960_v8, %v472_v54  ;;  %v2593_v17 = vld [vmem:[#allocation5] sm:$0xff]  ;;  %v1773_v22 = vld [vmem:[#allocation3 + $0x10] sm:$0xff] }
 0x7f1   :  { %1658 = vst.msk [vmem:[#allocation3 + $0x20] sm:$0xff] %vm153_vm1, %v1653_v51  ;;  %1743 = vst.msk [vmem:[#allocation3 + $0x40] sm:$0xff] %vm153_vm1, %v1734_v48  ;;  %1747 = vrot.lane.b32.xlu0 %v1734_v48, %s4988_s1  ;;  %v4619_v38 = vpack.c.bf16 %v496_v13, %v495_v14  ;;  %v473_v47 = vmul.f32 %v4959_v40, %v448_v2 }
 0x7f2   :  { %v4826_v15 = vpop.eup %4825  ;;  %v474_v41 = vmul.f32 %v4959_v40, %v449_v10 }
 0x7f3   :  { %v4828_v4 = vpop.eup %4827  ;;  %v450_v42 = vmul.f32 %v4826_v15, %v5665_v55  ;;  %4621 = vmatprep.subr.msk.bf16.mxu1 %vm5225_vm2, %v4619_v38  ;;  %4650 = vmatprep.subr.bf16.mxu0 %v4619_v38  ;;  %v498_v52 = vadd.f32 %v4960_v8, %v473_v47  ;;  %v1774_v45 = vld [vmem:[#allocation3 + $0x18] sm:$0xff] }
 0x7f4   :  { %v1655_v24 = vpop.permute.xlu1 %1654  ;;  %v451_v30 = vmul.f32 %v4828_v4, %v5673_v62  ;;  %1757 = vrot.lane.b32.xlu1 %v4278_v7, %s4989_s22  ;;  %4624 = vmatpush3.bf16.xpose.msk.msra.mxu1 %vm5225_vm2, %v4619_v38  ;;  %v499_v58 = vadd.f32 %v4960_v8, %v474_v41 }
 0x7f5   :  { %1659 = vst.msk [vmem:[#allocation3 + $0x28] sm:$0xff] %vm153_vm1, %v1655_v24  ;;  %1755 = vrot.lane.b32.xlu0 %v1734_v48, %s4989_s22  ;;  %4652 = vmatpush3.bf16.msra.mxu0 %v4619_v38  ;;  %v4625_v55 = vpack.c.bf16 %v498_v52, %v497_v18  ;;  %v475_v44 = vmul.f32 %v4959_v40, %v450_v42 }
 0x7f6   :  { %v4830_v53 = vpop.eup %4829  ;;  %v476_v9 = vmul.f32 %v4959_v40, %v451_v30 }
 0x7f7   :  { %v452_v57 = vmul.f32 %v4830_v53, %v5676_v31  ;;  %4627 = vmatprep.subr.msk.bf16.mxu1 %vm5225_vm2, %v4625_v55  ;;  %4654 = vmatprep.subr.bf16.mxu0 %v4625_v55  ;;  %v500_v62 = vadd.f32 %v4960_v8, %v475_v44 }
 0x7f8   :  { %v1663_v1 = vpop.permute.xlu1 %1662  ;;  %1765 = vrot.lane.b32.xlu1 %v4278_v7, %s4990_s23  ;;  %v501_v49 = vadd.f32 %v4960_v8, %v476_v9  ;;  %v1775_v39 = vld [vmem:[#allocation3 + $0x20] sm:$0xff]  ;;  %v1777_v7 = vld [vmem:[#allocation3 + $0x30] sm:$0xff] }
 0x7f9   :  { %1667 = vst.msk [vmem:[#allocation3 + $0x38] sm:$0xff] %vm153_vm1, %v1663_v1  ;;  %1763 = vrot.lane.b32.xlu0 %v1734_v48, %s4990_s23  ;;  %4656 = vmatpush3.bf16.msra.mxu0 %v4625_v55  ;;  %v4631_v63 = vpack.c.bf16 %v500_v62, %v499_v58  ;;  %v477_v56 = vmul.f32 %v4959_v40, %v452_v57  ;;  %v5735_v40 = vld [vmem:[#allocation6 + $0x173] ss:$0 sm:$0xff]  ;;  %v1779_v51 = vld [vmem:[#allocation3 + $0x40] sm:$0xff] }
 0x7fa   :  { %v2602_v12 = vadd.f32 %v5735_v40, %v2593_v17  ;;  %v2603_v60 = vadd.f32 %v5735_v40, %v2594_v43 }
 0x7fb   :  { %4658 = vmatprep.subr.bf16.mxu0 %v4631_v63  ;;  %v502_v11 = vadd.f32 %v4960_v8, %v477_v56  ;;  %v1780_v8 = vld [vmem:[#allocation3 + $0x48] sm:$0xff] }
 0x7fc   :  { %4630 = vmatpush3.bf16.xpose.msk.msra.mxu1 %vm5225_vm2, %v4625_v55  ;;  %v4685_v20 = vpack.c.bf16 %v2603_v60, %v2602_v12  ;;  %v1776_v2 = vld [vmem:[#allocation3 + $0x28] sm:$0xff] }
 0x7fd   :  { %4660 = vmatpush3.bf16.msra.mxu0 %v4631_v63  ;;  %4633 = vmatprep.subr.msk.bf16.mxu1 %vm5225_vm2, %v4631_v63  ;;  %v4637_v31 = vpack.c.bf16 %v502_v11, %v501_v49 }
 0x7ff   :  { %4662 = vmatprep.subr.bf16.mxu0 %v4637_v31 }
 0x800   :  { %v1778_v37 = vld [vmem:[#allocation3 + $0x38] sm:$0xff] }
 0x801   :  { %4664 = vmatpush3.bf16.msra.mxu0 %v4637_v31 }
 0x802   :  { %4666 = vmatprep.subr.bf16.mxu0 %v4643_v50 }
 0x804   :  { %4636 = vmatpush3.bf16.xpose.msk.msra.mxu1 %vm5225_vm2, %v4631_v63 }
 0x805   :  { %4668 = vmatpush3.bf16.msra.mxu0 %v4643_v50  ;;  %4639 = vmatprep.subr.msk.bf16.mxu1 %vm5225_vm2, %v4637_v31 }
 0x806   :  { %4670 = vmatprep.subr.bf16.mxu0 %v5553_v34 }
 0x80c   :  { %4642 = vmatpush3.bf16.xpose.msk.msra.mxu1 %vm5225_vm2, %v4637_v31 }
 0x80d   :  { %4645 = vmatprep.subr.msk.bf16.mxu1 %vm5225_vm2, %v4643_v50 }
 0x814   :  { %4648 = vmatpush3.bf16.xpose.msk.msra.mxu1 %vm5225_vm2, %v4643_v50 }
 0x815   :  { %4686 = vmatprep.subr.bf16.mxu1 %v4685_v20 }
 0x81b   :  { %4300 = vmatmul.mubr.msk.f32.vlgmr.msra.gmra.mrb[24].mxu1 %vm153_vm1, %v1772_v6 }
 0x81c   :  { %4302 = vmatprep.mubr.msk.f32.mxu1 %vm153_vm1, %v1773_v22  ;;  %4688 = vmatpush3.bf16.msra.mxu1 %v4685_v20 }
 0x81f   :  { %4303 = vmatmul.mubr.msk.f32.gmra.mrb[26].mxu1 %vm153_vm1, %v1774_v45 }
 0x820   :  { %4305 = vmatprep.mubr.msk.f32.mxu1 %vm153_vm1, %v1775_v39 }
 0x823   :  { %4306 = vmatmul.mubr.msk.f32.gmra.mrb[28].mxu1 %vm153_vm1, %v1776_v2 }
 0x824   :  { %4308 = vmatprep.mubr.msk.f32.mxu1 %vm153_vm1, %v1777_v7 }
 0x827   :  { %4309 = vmatmul.mubr.msk.f32.gmra.mrb[30].mxu1 %vm153_vm1, %v1778_v37 }
 0x828   :  { %4311 = vmatprep.mubr.msk.f32.mxu1 %vm153_vm1, %v1779_v51 }
 0x82b   :  { %4312 = vmatmul.mubr.msk.f32.gmra.mrb[32].mxu1 %vm153_vm1, %v1780_v8 }
 0x862   :  { %v1750_v14 = vpop.permute.xlu1 %1749 }
 0x863   :  { %1754 = vst.msk [vmem:[#allocation3 + $0x58] sm:$0xff] %vm153_vm1, %v1750_v14  ;;  %v1748_v13 = vpop.permute.xlu0 %1747 }
 0x864   :  { %1753 = vst.msk [vmem:[#allocation3 + $0x50] sm:$0xff] %vm153_vm1, %v1748_v13 }
 0x866   :  { %v1758_v54 = vpop.permute.xlu1 %1757 }
 0x867   :  { %1762 = vst.msk [vmem:[#allocation3 + $0x68] sm:$0xff] %vm153_vm1, %v1758_v54  ;;  %v1756_v10 = vpop.permute.xlu0 %1755 }
 0x868   :  { %1761 = vst.msk [vmem:[#allocation3 + $0x60] sm:$0xff] %vm153_vm1, %v1756_v10 }
 0x86a   :  { %v1766_v48 = vpop.permute.xlu1 %1765  ;;  %v1782_v15 = vld [vmem:[#allocation3 + $0x58] sm:$0xff] }
 0x86b   :  { %1770 = vst.msk [vmem:[#allocation3 + $0x78] sm:$0xff] %vm153_vm1, %v1766_v48  ;;  %v1764_v38 = vpop.permute.xlu0 %1763  ;;  %v1781_v47 = vld [vmem:[#allocation3 + $0x50] sm:$0xff] }
 0x86c   :  { %1769 = vst.msk [vmem:[#allocation3 + $0x70] sm:$0xff] %vm153_vm1, %v1764_v38  ;;  %4314 = vmatprep.mubr.msk.f32.mxu1 %vm153_vm1, %v1781_v47 }
 0x86d   :  { %4315 = vmatmul.mubr.msk.f32.gmra.mrb[34].mxu1 %vm153_vm1, %v1782_v15 }
 0x86e   :  { %v1784_v4 = vld [vmem:[#allocation3 + $0x68] sm:$0xff] }
 0x86f   :  { %v1783_v41 = vld [vmem:[#allocation3 + $0x60] sm:$0xff] }
 0x870   :  { %4317 = vmatprep.mubr.msk.f32.mxu1 %vm153_vm1, %v1783_v41 }
 0x871   :  { %4318 = vmatmul.mubr.msk.f32.gmra.mrb[36].mxu1 %vm153_vm1, %v1784_v4 }
 0x872   :  { %v1786_v24 = vld [vmem:[#allocation3 + $0x78] sm:$0xff] }
 0x873   :  { %v1785_v42 = vld [vmem:[#allocation3 + $0x70] sm:$0xff] }
 0x874   :  { %4320 = vmatprep.mubr.msk.f32.mxu1 %vm153_vm1, %v1785_v42 }
 0x875   :  { %4321 = vmatmul.mubr.msk.f32.gmra.mrb[38].mxu1 %vm153_vm1, %v1786_v24 }
 0x8ee   :  { %v4301_v18 = vpop.f32.mrb[24].mxu1 }
 0x8ef   :  { %v1925_v52 = vpop.f32.mrb[25].mxu1  ;;  %v2007_v30 = vsel %vm966_vm3, %v4301_v18, -inf }
 0x8f0   :  { %2008 = vmax.xlane.f32.xlu1 %v2007_v30  ;;  %v2004_v55 = vsel %vm966_vm3, %v1925_v52, -inf }
 0x8f1   :  { %2005 = vmax.xlane.f32.xlu0 %v2004_v55 }
 0x8f2   :  { %v4304_v44 = vpop.f32.mrb[26].mxu1 }
 0x8f3   :  { %v1935_v53 = vpop.f32.mrb[27].mxu1  ;;  %v2013_v9 = vsel %vm966_vm3, %v4304_v44, -inf }
 0x8f4   :  { %v2010_v58 = vsel %vm966_vm3, %v1935_v53, -inf }
 0x8f5   :  { %2011 = vmax.xlane.f32.xlu0 %v2010_v58 }
 0x8f6   :  { %v4307_v57 = vpop.f32.mrb[28].mxu1 }
 0x8f7   :  { %v5767_v1 = vpop.f32.mrb[29].mxu1  ;;  %v2019_v62 = vsel %vm966_vm3, %v4307_v57, -inf }
 0x8f8   :  { %2020 = vmax.xlane.f32.xlu1 %v2019_v62  ;;  %v2016_v11 = vsel %vm966_vm3, %v5767_v1, -inf }
 0x8f9   :  { %2014 = vmax.xlane.f32.xlu0 %v2013_v9 }
 0x8fa   :  { %v4310_v63 = vpop.f32.mrb[30].mxu1 }
 0x8fb   :  { %v5771_v56 = vpop.f32.mrb[31].mxu1  ;;  %v2025_v49 = vsel %vm966_vm3, %v4310_v63, -inf }
 0x8fc   :  { %2026 = vmax.xlane.f32.xlu1 %v2025_v49  ;;  %v2022_v43 = vsel %vm966_vm3, %v5771_v56, -inf }
 0x8fd   :  { %2017 = vmax.xlane.f32.xlu0 %v2016_v11 }
 0x8fe   :  { %v5776_v31 = vpop.f32.mrb[32].mxu1 }
 0x8ff   :  { %v5778_v50 = vpop.f32.mrb[33].mxu1  ;;  %v2031_v17 = vsel %vm966_vm3, %v5776_v31, -inf }
 0x900   :  { %2032 = vmax.xlane.f32.xlu1 %v2031_v17  ;;  %v2028_v12 = vsel %vm966_vm3, %v5778_v50, -inf }
 0x901   :  { %2023 = vmax.xlane.f32.xlu0 %v2022_v43 }
 0x905   :  { %2029 = vmax.xlane.f32.xlu0 %v2028_v12 }
 0x940   :  { %v5786_v60 = vpop.f32.mrb[34].mxu1 }
 0x941   :  { %v5788_v20 = vpop.f32.mrb[35].mxu1  ;;  %v2037_v6 = vsel %vm966_vm3, %v5786_v60, -inf }
 0x942   :  { %2038 = vmax.xlane.f32.xlu1 %v2037_v6  ;;  %v2034_v22 = vsel %vm966_vm3, %v5788_v20, -inf }
 0x943   :  { %2035 = vmax.xlane.f32.xlu0 %v2034_v22 }
 0x944   :  { %v5794_v45 = vpop.f32.mrb[36].mxu1 }
 0x945   :  { %v5796_v39 = vpop.f32.mrb[37].mxu1  ;;  %v2043_v2 = vsel %vm966_vm3, %v5794_v45, -inf }
 0x946   :  { %2044 = vmax.xlane.f32.xlu1 %v2043_v2  ;;  %v2040_v7 = vsel %vm966_vm3, %v5796_v39, -inf }
 0x947   :  { %2041 = vmax.xlane.f32.xlu0 %v2040_v7 }
 0x948   :  { %v5802_v37 = vpop.f32.mrb[38].mxu1 }
 0x949   :  { %v5804_v51 = vpop.f32.mrb[39].mxu1  ;;  %v2049_v8 = vsel %vm966_vm3, %v5802_v37, -inf }
 0x94a   :  { %2050 = vmax.xlane.f32.xlu1 %v2049_v8  ;;  %v2046_v14 = vsel %vm966_vm3, %v5804_v51, -inf }
 0x94b   :  { %2047 = vmax.xlane.f32.xlu0 %v2046_v14 }
 0x97d   :  { %v2009_v13 = vpop.xlane.xlu1 %2008 }
 0x97e   :  { %v2053_v54 = vsub.f32 %v4301_v18, %v2009_v13  ;;  %v2006_v10 = vpop.xlane.xlu0 %2005 }
 0x97f   :  { %v2052_v48 = vsub.f32 %v1925_v52, %v2006_v10 }
 0x980   :  { %v2070_v38 = vmul.f32 1.442695, %v2053_v54 }
 0x981   :  { %v2068_v47 = vmul.f32 1.442695, %v2052_v48 }
 0x982   :  { %4831 = vpow2.f32 %v2070_v38  ;;  %v2012_v15 = vpop.xlane.xlu0 %2011 }
 0x983   :  { %4833 = vpow2.f32 %v2068_v47  ;;  %v2054_v41 = vsub.f32 %v1935_v53, %v2012_v15 }
 0x985   :  { %v2072_v4 = vmul.f32 1.442695, %v2054_v41  ;;  %v2021_v42 = vpop.xlane.xlu1 %2020 }
 0x986   :  { %v2057_v24 = vsub.f32 %v4307_v57, %v2021_v42  ;;  %v2015_v30 = vpop.xlane.xlu0 %2014 }
 0x987   :  { %4835 = vpow2.f32 %v2072_v4  ;;  %v2055_v55 = vsub.f32 %v4304_v44, %v2015_v30 }
 0x988   :  { %v2078_v58 = vmul.f32 1.442695, %v2057_v24 }
 0x989   :  { %v2074_v62 = vmul.f32 1.442695, %v2055_v55  ;;  %v2027_v9 = vpop.xlane.xlu1 %2026 }
 0x98a   :  { %v2059_v49 = vsub.f32 %v4310_v63, %v2027_v9  ;;  %v2018_v11 = vpop.xlane.xlu0 %2017 }
 0x98b   :  { %4837 = vpow2.f32 %v2074_v62  ;;  %v2056_v18 = vsub.f32 %v5767_v1, %v2018_v11 }
 0x98c   :  { %v5811_v52 = vpop.eup %4831  ;;  %4839 = vpow2.f32 %v2078_v58  ;;  %v2082_v53 = vmul.f32 1.442695, %v2059_v49 }
 0x98d   :  { %v5813_v17 = vpop.eup %4833  ;;  %v2076_v43 = vmul.f32 1.442695, %v2056_v18  ;;  %v2033_v12 = vpop.xlane.xlu1 %2032  ;;  %v2103_v57 = vsel %vm966_vm3, %v5811_v52, 0.0 }
 0x98e   :  { %v2061_v44 = vsub.f32 %v5776_v31, %v2033_v12  ;;  %2104 = vadd.xlane.f32.xlu1 %v2103_v57  ;;  %v2024_v6 = vpop.xlane.xlu0 %2023  ;;  %v2100_v63 = vsel %vm966_vm3, %v5813_v17, 0.0 }
 0x98f   :  { %4841 = vpow2.f32 %v2076_v43  ;;  %v2058_v1 = vsub.f32 %v5771_v56, %v2024_v6  ;;  %2101 = vadd.xlane.f32.xlu0 %v2100_v63 }
 0x990   :  { %4843 = vpow2.f32 %v2082_v53  ;;  %v2086_v2 = vmul.f32 1.442695, %v2061_v44 }
 0x991   :  { %v5821_v22 = vpop.eup %4835  ;;  %v2080_v7 = vmul.f32 1.442695, %v2058_v1 }
 0x992   :  { %v2030_v8 = vpop.xlane.xlu0 %2029  ;;  %v2106_v14 = vsel %vm966_vm3, %v5821_v22, 0.0 }
 0x993   :  { %4845 = vpow2.f32 %v2080_v7  ;;  %v2060_v31 = vsub.f32 %v5778_v50, %v2030_v8  ;;  %2107 = vadd.xlane.f32.xlu0 %v2106_v14 }
 0x994   :  { %4847 = vpow2.f32 %v2086_v2 }
 0x995   :  { %v5826_v13 = vpop.eup %4837  ;;  %v2084_v54 = vmul.f32 1.442695, %v2060_v31 }
 0x996   :  { %v2109_v56 = vsel %vm966_vm3, %v5826_v13, 0.0  ;;  %v5830_v10 = vpop.eup %4839 }
 0x997   :  { %4849 = vpow2.f32 %v2084_v54  ;;  %2110 = vadd.xlane.f32.xlu1 %v2109_v56  ;;  %v2115_v38 = vsel %vm966_vm3, %v5830_v10, 0.0 }
 0x999   :  { %v5832_v48 = vpop.eup %4841 }
 0x99a   :  { %v2112_v50 = vsel %vm966_vm3, %v5832_v48, 0.0  ;;  %v5838_v47 = vpop.eup %4843 }
 0x99b   :  { %2116 = vadd.xlane.f32.xlu1 %v2115_v38  ;;  %2113 = vadd.xlane.f32.xlu0 %v2112_v50  ;;  %v2121_v41 = vsel %vm966_vm3, %v5838_v47, 0.0 }
 0x99d   :  { %v5840_v15 = vpop.eup %4845 }
 0x99e   :  { %v2118_v4 = vsel %vm966_vm3, %v5840_v15, 0.0  ;;  %v5846_v42 = vpop.eup %4847 }
 0x99f   :  { %2122 = vadd.xlane.f32.xlu1 %v2121_v41  ;;  %2119 = vadd.xlane.f32.xlu0 %v2118_v4  ;;  %v2127_v30 = vsel %vm966_vm3, %v5846_v42, 0.0 }
 0x9a1   :  { %v5848_v24 = vpop.eup %4849 }
 0x9a2   :  { %v2124_v55 = vsel %vm966_vm3, %v5848_v24, 0.0 }
 0x9a3   :  { %2128 = vadd.xlane.f32.xlu1 %v2127_v30  ;;  %2125 = vadd.xlane.f32.xlu0 %v2124_v55 }
 0x9cf   :  { %v2039_v58 = vpop.xlane.xlu1 %2038 }
 0x9d0   :  { %v2063_v62 = vsub.f32 %v5786_v60, %v2039_v58  ;;  %v2036_v9 = vpop.xlane.xlu0 %2035 }
 0x9d1   :  { %v2062_v49 = vsub.f32 %v5788_v20, %v2036_v9 }
 0x9d2   :  { %v2090_v11 = vmul.f32 1.442695, %v2063_v62 }
 0x9d3   :  { %v2088_v18 = vmul.f32 1.442695, %v2062_v49  ;;  %v2045_v53 = vpop.xlane.xlu1 %2044 }
 0x9d4   :  { %4851 = vpow2.f32 %v2090_v11  ;;  %v2065_v43 = vsub.f32 %v5794_v45, %v2045_v53  ;;  %v2042_v12 = vpop.xlane.xlu0 %2041 }
 0x9d5   :  { %4853 = vpow2.f32 %v2088_v18  ;;  %v2064_v57 = vsub.f32 %v5796_v39, %v2042_v12 }
 0x9d6   :  { %v2094_v44 = vmul.f32 1.442695, %v2065_v43 }
 0x9d7   :  { %v2092_v6 = vmul.f32 1.442695, %v2064_v57  ;;  %v2051_v63 = vpop.xlane.xlu1 %2050 }
 0x9d8   :  { %4855 = vpow2.f32 %v2094_v44  ;;  %v2067_v1 = vsub.f32 %v5802_v37, %v2051_v63  ;;  %v2048_v60 = vpop.xlane.xlu0 %2047 }
 0x9d9   :  { %4857 = vpow2.f32 %v2092_v6  ;;  %v2066_v20 = vsub.f32 %v5804_v51, %v2048_v60 }
 0x9da   :  { %v2098_v2 = vmul.f32 1.442695, %v2067_v1 }
 0x9db   :  { %v2096_v7 = vmul.f32 1.442695, %v2066_v20 }
 0x9dc   :  { %4859 = vpow2.f32 %v2098_v2 }
 0x9dd   :  { %4861 = vpow2.f32 %v2096_v7 }
 0x9de   :  { %v5860_v8 = vpop.eup %4851 }
 0x9df   :  { %v5862_v45 = vpop.eup %4853  ;;  %v2133_v39 = vsel %vm966_vm3, %v5860_v8, 0.0 }
 0x9e0   :  { %2134 = vadd.xlane.f32.xlu1 %v2133_v39  ;;  %v2130_v14 = vsel %vm966_vm3, %v5862_v45, 0.0 }
 0x9e1   :  { %2131 = vadd.xlane.f32.xlu0 %v2130_v14 }
 0x9e2   :  { %v5868_v37 = vpop.eup %4855 }
 0x9e3   :  { %v5870_v31 = vpop.eup %4857  ;;  %v2139_v51 = vsel %vm966_vm3, %v5868_v37, 0.0 }
 0x9e4   :  { %2140 = vadd.xlane.f32.xlu1 %v2139_v51  ;;  %v2136_v54 = vsel %vm966_vm3, %v5870_v31, 0.0 }
 0x9e5   :  { %2137 = vadd.xlane.f32.xlu0 %v2136_v54 }
 0x9e6   :  { %v5876_v56 = vpop.eup %4859 }
 0x9e7   :  { %v5878_v38 = vpop.eup %4861  ;;  %v2145_v50 = vsel %vm966_vm3, %v5876_v56, 0.0 }
 0x9e8   :  { %2146 = vadd.xlane.f32.xlu1 %v2145_v50  ;;  %v2142_v41 = vsel %vm966_vm3, %v5878_v38, 0.0 }
 0x9e9   :  { %2143 = vadd.xlane.f32.xlu0 %v2142_v41 }
 0xa1b   :  { %v2105_v4 = vpop.xlane.xlu1 %2104 }
 0xa1c   :  { %4863 = vrcp.f32 %v2105_v4  ;;  %v2102_v30 = vpop.xlane.xlu0 %2101 }
 0xa1d   :  { %4865 = vrcp.f32 %v2102_v30 }
 0xa20   :  { %v2108_v55 = vpop.xlane.xlu0 %2107 }
 0xa21   :  { %4867 = vrcp.f32 %v2108_v55 }
 0xa24   :  { %v2111_v58 = vpop.xlane.xlu1 %2110 }
 0xa25   :  { %4869 = vrcp.f32 %v2111_v58 }
 0xa26   :  { %v4864_v62 = vpop.eup %4863 }
 0xa27   :  { %v4866_v9 = vpop.eup %4865  ;;  %v2165_v53 = vmul.f32 %v4864_v62, %v5811_v52 }
 0xa28   :  { %v2117_v49 = vpop.xlane.xlu1 %2116  ;;  %v2114_v11 = vpop.xlane.xlu0 %2113  ;;  %v2164_v18 = vmul.f32 %v4866_v9, %v5813_v17 }
 0xa29   :  { %4871 = vrcp.f32 %v2117_v49 }
 0xa2a   :  { %4873 = vrcp.f32 %v2114_v11  ;;  %4343 = vmatprep.mubr.msk.f32.mxu0 %vm966_vm3, %v2164_v18 }
 0xa2b   :  { %v4868_v43 = vpop.eup %4867  ;;  %4344 = vmatmul.mubr.msk.f32.vlgmr.msra.gmra.mrb[22].mxu0 %vm966_vm3, %v2165_v53 }
 0xa2c   :  { %v2123_v12 = vpop.xlane.xlu1 %2122  ;;  %v2120_v57 = vpop.xlane.xlu0 %2119  ;;  %v2166_v44 = vmul.f32 %v4868_v43, %v5821_v22  ;;  %4672 = vmatpush3.bf16.xpose.msra.mxu0 %v5553_v34 }
 0xa2d   :  { %4875 = vrcp.f32 %v2123_v12  ;;  %4674 = vmatprep.subr.bf16.mxu0 %v5558_v3 }
 0xa2e   :  { %4877 = vrcp.f32 %v2120_v57  ;;  %4346 = vmatprep.mubr.msk.f32.mxu0 %vm966_vm3, %v2166_v44 }
 0xa2f   :  { %v4870_v52 = vpop.eup %4869 }
 0xa30   :  { %v2129_v17 = vpop.xlane.xlu1 %2128  ;;  %v2126_v6 = vpop.xlane.xlu0 %2125  ;;  %v2167_v63 = vmul.f32 %v4870_v52, %v5826_v13 }
 0xa31   :  { %4879 = vrcp.f32 %v2129_v17 }
 0xa32   :  { %4881 = vrcp.f32 %v2126_v6  ;;  %4347 = vmatmul.mubr.msk.f32.gmra.mrb[24].mxu0 %vm966_vm3, %v2167_v63 }
 0xa33   :  { %v4872_v1 = vpop.eup %4871 }
 0xa34   :  { %v4874_v60 = vpop.eup %4873  ;;  %v2169_v22 = vmul.f32 %v4872_v1, %v5830_v10  ;;  %4676 = vmatpush3.bf16.xpose.msra.mxu0 %v5558_v3 }
 0xa35   :  { %v2168_v34 = vmul.f32 %v4874_v60, %v5832_v48  ;;  %4678 = vmatprep.subr.bf16.mxu0 %v5566_v33 }
 0xa37   :  { %v4876_v20 = vpop.eup %4875  ;;  %4349 = vmatprep.mubr.msk.f32.mxu0 %vm966_vm3, %v2168_v34 }
 0xa38   :  { %v4878_v2 = vpop.eup %4877  ;;  %4350 = vmatmul.mubr.msk.f32.gmra.mrb[26].mxu0 %vm966_vm3, %v2169_v22  ;;  %v2171_v13 = vmul.f32 %v4876_v20, %v5838_v47 }
 0xa39   :  { %v2170_v7 = vmul.f32 %v4878_v2, %v5840_v15 }
 0xa3b   :  { %v4880_v39 = vpop.eup %4879  ;;  %4352 = vmatprep.mubr.msk.f32.mxu0 %vm966_vm3, %v2170_v7 }
 0xa3c   :  { %v4882_v10 = vpop.eup %4881  ;;  %4353 = vmatmul.mubr.msk.f32.gmra.mrb[28].mxu0 %vm966_vm3, %v2171_v13  ;;  %v2173_v3 = vmul.f32 %v4880_v39, %v5846_v42 }
 0xa3d   :  { %v2172_v48 = vmul.f32 %v4882_v10, %v5848_v24 }
 0xa3f   :  { %4355 = vmatprep.mubr.msk.f32.mxu0 %vm966_vm3, %v2172_v48 }
 0xa40   :  { %4356 = vmatmul.mubr.msk.f32.gmra.mrb[30].mxu0 %vm966_vm3, %v2173_v3 }
 0xa6d   :  { %v2135_v14 = vpop.xlane.xlu1 %2134 }
 0xa6e   :  { %4883 = vrcp.f32 %v2135_v14  ;;  %v2132_v51 = vpop.xlane.xlu0 %2131 }
 0xa6f   :  { %4885 = vrcp.f32 %v2132_v51 }
 0xa71   :  { %v2141_v47 = vpop.xlane.xlu1 %2140 }
 0xa72   :  { %4887 = vrcp.f32 %v2141_v47  ;;  %v2138_v15 = vpop.xlane.xlu0 %2137 }
 0xa73   :  { %4889 = vrcp.f32 %v2138_v15 }
 0xa75   :  { %v2147_v54 = vpop.xlane.xlu1 %2146 }
 0xa76   :  { %4891 = vrcp.f32 %v2147_v54  ;;  %v2144_v50 = vpop.xlane.xlu0 %2143 }
 0xa77   :  { %4893 = vrcp.f32 %v2144_v50  ;;  %v2606_v50 = vld [vmem:[#allocation6 + $0x90] sm:$0xff] }
 0xa78   :  { %v4884_v41 = vpop.eup %4883  ;;  %4397 = vmatprep.mubr.msk.f32.mxu1 %vm153_vm1, %v2606_v50 }
 0xa79   :  { %v4886_v42 = vpop.eup %4885  ;;  %v2175_v4 = vmul.f32 %v4884_v41, %v5860_v8 }
 0xa7a   :  { %v2174_v24 = vmul.f32 %v4886_v42, %v5862_v45 }
 0xa7c   :  { %v4888_v30 = vpop.eup %4887  ;;  %4358 = vmatprep.mubr.msk.f32.mxu0 %vm966_vm3, %v2174_v24 }
 0xa7d   :  { %v4890_v55 = vpop.eup %4889  ;;  %4359 = vmatmul.mubr.msk.f32.gmra.mrb[32].mxu0 %vm966_vm3, %v2175_v4  ;;  %v2177_v62 = vmul.f32 %v4888_v30, %v5868_v37 }
 0xa7e   :  { %v2176_v58 = vmul.f32 %v4890_v55, %v5870_v31 }
 0xa80   :  { %v4892_v9 = vpop.eup %4891  ;;  %4361 = vmatprep.mubr.msk.f32.mxu0 %vm966_vm3, %v2176_v58  ;;  %v2608_v58 = vld [vmem:[#allocation6 + $0xa0] sm:$0xff] }
 0xa81   :  { %v4894_v49 = vpop.eup %4893  ;;  %4362 = vmatmul.mubr.msk.f32.gmra.mrb[34].mxu0 %vm966_vm3, %v2177_v62  ;;  %v2179_v8 = vmul.f32 %v4892_v9, %v5876_v56  ;;  %v2609_v62 = vld [vmem:[#allocation6 + $0xa8] sm:$0xff]  ;;  %v2610_v9 = vld [vmem:[#allocation6 + $0xb0] sm:$0xff] }
 0xa82   :  { %v2178_v45 = vmul.f32 %v4894_v49, %v5878_v38  ;;  %v2611_v49 = vld [vmem:[#allocation6 + $0xb8] sm:$0xff] }
 0xa84   :  { %4364 = vmatprep.mubr.msk.f32.mxu0 %vm966_vm3, %v2178_v45  ;;  %v2612_v45 = vld [vmem:[#allocation6 + $0xc0] sm:$0xff] }
 0xa85   :  { %4365 = vmatmul.mubr.msk.f32.gmra.mrb[36].mxu0 %vm966_vm3, %v2179_v8  ;;  %v2614_v8 = vld [vmem:[#allocation6 + $0xd0] sm:$0xff] }
 0xafe   :  { %v4345_v11 = vpop.f32.mrb[22].mxu0 }
 0xaff   :  { %2374 = vst.msk [vmem:[#allocation4 + $0x10] sm:$0xff] %vm153_vm1, %v4345_v11  ;;  %v2294_v31 = vpop.f32.mrb[23].mxu0  ;;  %v2615_v11 = vld [vmem:[#allocation6 + $0xd8] sm:$0xff] }
 0xb00   :  { %2373 = vst.msk [vmem:[#allocation4] sm:$0xff] %vm153_vm1, %v2294_v31  ;;  %v2616_v31 = vld [vmem:[#allocation6 + $0xe0] sm:$0xff] }
 0xb05   :  { %v4348_v37 = vpop.f32.mrb[24].mxu0 }
 0xb06   :  { %v2304_v18 = vpop.f32.mrb[25].mxu0 }
 0xb0b   :  { %v4351_v53 = vpop.f32.mrb[26].mxu0 }
 0xb0c   :  { %v2314_v43 = vpop.f32.mrb[27].mxu0 }
 0xb0f   :  { %v4354_v12 = vpop.f32.mrb[28].mxu0 }
 0xb10   :  { %v2324_v57 = vpop.f32.mrb[29].mxu0 }
 0xb13   :  { %v4357_v44 = vpop.f32.mrb[30].mxu0 }
 0xb14   :  { %2406 = vst.msk [vmem:[#allocation4 + $0x18] sm:$0xff] %vm153_vm1, %v4357_v44  ;;  %v2334_v56 = vpop.f32.mrb[31].mxu0 }
 0xb15   :  { %2405 = vst.msk [vmem:[#allocation4 + $0x8] sm:$0xff] %vm153_vm1, %v2334_v56 }
 0xb50   :  { %v4360_v38 = vpop.f32.mrb[32].mxu0 }
 0xb51   :  { %2411 = vrot.lane.b32.xlu1 %v4360_v38, %s4990_s23  ;;  %v2344_v52 = vpop.f32.mrb[33].mxu0 }
 0xb52   :  { %2409 = vrot.lane.b32.xlu0 %v2344_v52, %s4990_s23 }
 0xb54   :  { %v4363_v17 = vpop.f32.mrb[34].mxu0 }
 0xb55   :  { %2421 = vrot.lane.b32.xlu1 %v4363_v17, %s4989_s22  ;;  %v2354_v6 = vpop.f32.mrb[35].mxu0 }
 0xb58   :  { %v4366_v63 = vpop.f32.mrb[36].mxu0 }
 0xb59   :  { %2419 = vrot.lane.b32.xlu1 %v2354_v6, %s4989_s22  ;;  %v2364_v1 = vpop.f32.mrb[37].mxu0 }
 0xb5a   :  { %2429 = vrot.lane.b32.xlu0 %v2364_v1, %s4988_s1 }
 0xb5d   :  { %2431 = vrot.lane.b32.xlu1 %v4366_v63, %s4988_s1 }
 0xb5e   :  { %2377 = vrot.lane.b32.xlu0 %v2304_v18, %s4990_s23  ;;  %v2618_v18 = vld [vmem:[#allocation6 + $0xf0] sm:$0xff] }
 0xb61   :  { %2379 = vrot.lane.b32.xlu1 %v4348_v37, %s4990_s23  ;;  %v2617_v37 = vld [vmem:[#allocation6 + $0xe8] sm:$0xff] }
 0xb62   :  { %2387 = vrot.lane.b32.xlu0 %v2314_v43, %s4989_s22  ;;  %v2620_v43 = vld [vmem:[#allocation6 + $0x100] sm:$0xff] }
 0xb65   :  { %2389 = vrot.lane.b32.xlu1 %v4351_v53, %s4989_s22  ;;  %v2619_v53 = vld [vmem:[#allocation6 + $0xf8] sm:$0xff] }
 0xb66   :  { %2397 = vrot.lane.b32.xlu0 %v2324_v57, %s4988_s1 }
 0xb69   :  { %2399 = vrot.lane.b32.xlu1 %v4354_v12, %s4988_s1  ;;  %v2621_v12 = vld [vmem:[#allocation6 + $0x108] sm:$0xff] }
 0xbc3   :  { %v2412_v60 = vpop.permute.xlu1 %2411 }
 0xbc4   :  { %2416 = vst.msk [vmem:[#allocation4 + $0x18] sm:$0xff] %vm1346_vm4, %v2412_v60  ;;  %v2410_v22 = vpop.permute.xlu0 %2409 }
 0xbc5   :  { %2415 = vst.msk [vmem:[#allocation4 + $0x8] sm:$0xff] %vm1346_vm4, %v2410_v22 }
 0xbc7   :  { %v2422_v34 = vpop.permute.xlu1 %2421 }
 0xbc8   :  { %2426 = vst.msk [vmem:[#allocation4 + $0x18] sm:$0xff] %vm1357_vm5, %v2422_v34 }
 0xbcb   :  { %v2420_v20 = vpop.permute.xlu1 %2419 }
 0xbcc   :  { %2425 = vst.msk [vmem:[#allocation4 + $0x8] sm:$0xff] %vm1357_vm5, %v2420_v20  ;;  %v2430_v2 = vpop.permute.xlu0 %2429 }
 0xbcd   :  { %2435 = vst.msk [vmem:[#allocation4 + $0x8] sm:$0xff] %vm1368_vm6, %v2430_v2 }
 0xbcf   :  { %v2432_v13 = vpop.permute.xlu1 %2431 }
 0xbd0   :  { %2436 = vst.msk [vmem:[#allocation4 + $0x18] sm:$0xff] %vm1368_vm6, %v2432_v13  ;;  %v2378_v7 = vpop.permute.xlu0 %2377 }
 0xbd1   :  { %2383 = vst.msk [vmem:[#allocation4] sm:$0xff] %vm1346_vm4, %v2378_v7 }
 0xbd3   :  { %v2380_v39 = vpop.permute.xlu1 %2379 }
 0xbd4   :  { %2384 = vst.msk [vmem:[#allocation4 + $0x10] sm:$0xff] %vm1346_vm4, %v2380_v39  ;;  %v2388_v10 = vpop.permute.xlu0 %2387  ;;  %v2438_v3 = vld [vmem:[#allocation4 + $0x8] sm:$0xff] }
 0xbd5   :  { %2393 = vst.msk [vmem:[#allocation4] sm:$0xff] %vm1357_vm5, %v2388_v10  ;;  %4375 = vmatprep.mubr.f32.mxu0 %v2438_v3 }
 0xbd7   :  { %v2390_v48 = vpop.permute.xlu1 %2389  ;;  %v2440_v14 = vld [vmem:[#allocation4 + $0x18] sm:$0xff] }
 0xbd8   :  { %2394 = vst.msk [vmem:[#allocation4 + $0x10] sm:$0xff] %vm1357_vm5, %v2390_v48  ;;  %4376 = vmatmul.mubr.f32.vlgmr.msra.gmra.mrb[38].mxu0 %v2440_v14  ;;  %v2398_v51 = vpop.permute.xlu0 %2397 }
 0xbd9   :  { %4680 = vmatpush3.bf16.xpose.msra.mxu0 %v5566_v33  ;;  %2403 = vst.msk [vmem:[#allocation4] sm:$0xff] %vm1368_vm6, %v2398_v51 }
 0xbda   :  { %4682 = vmatprep.subr.bf16.mxu0 %v5619_v0 }
 0xbdb   :  { %v2400_v47 = vpop.permute.xlu1 %2399 }
 0xbdc   :  { %2404 = vst.msk [vmem:[#allocation4 + $0x10] sm:$0xff] %vm1368_vm6, %v2400_v47 }
 0xbe0   :  { %v2437_v15 = vld [vmem:[#allocation4] sm:$0xff] }
 0xbe1   :  { %4684 = vmatpush3.bf16.xpose.msra.mxu0 %v5619_v0  ;;  %4386 = vmatprep.mubr.f32.mxu0 %v2437_v15  ;;  %v2607_v0 = vld [vmem:[#allocation6 + $0x98] sm:$0xff] }
 0xbe3   :  { %v2439_v54 = vld [vmem:[#allocation4 + $0x10] sm:$0xff] }
 0xbe8   :  { %4387 = vmatmul.mubr.f32.vlgmr.msra.gmra.mrb[38].mxu0 %v2439_v54 }
 0xcbb   :  { %v4388_v41 = vpop.f32.mrb[38].mxu0 }
 0xcbc   :  { %2592 = vst.msk [vmem:[#allocation5 + $0x18] sm:$0xff] %vm153_vm1, %v4388_v41  ;;  %v2582_v33 = vpop.f32.mrb[39].mxu0 }
 0xcbd   :  { %2591 = vst.msk [vmem:[#allocation5 + $0x10] sm:$0xff] %vm153_vm1, %v2582_v33 }
 0xcc3   :  { %v2596_v42 = vld [vmem:[#allocation5 + $0x18] sm:$0xff] }
 0xcc4   :  { %v2595_v24 = vld [vmem:[#allocation5 + $0x10] sm:$0xff]  ;;  %v2605_v4 = vadd.f32 %v5735_v40, %v2596_v42 }
 0xcc5   :  { %v2604_v30 = vadd.f32 %v5735_v40, %v2595_v24  ;;  %v2613_v40 = vld [vmem:[#allocation6 + $0xc8] sm:$0xff] }
 0xcc7   :  { %v4689_v55 = vpack.c.bf16 %v2605_v4, %v2604_v30 }
 0xcc9   :  { %4690 = vmatprep.subr.bf16.mxu1 %v4689_v55 }
 0xcca   :  { %4692 = vmatpush3.bf16.msra.mxu1 %v4689_v55 }
 0xccd   :  { %4398 = vmatmul.mubr.msk.f32.vlgmr.msra.gmra.mrb[40].mxu1 %vm153_vm1, %v2607_v0 }
 0xcce   :  { %4400 = vmatprep.mubr.msk.f32.mxu1 %vm153_vm1, %v2608_v58 }
 0xcd1   :  { %4401 = vmatmul.mubr.msk.f32.gmra.mrb[42].mxu1 %vm153_vm1, %v2609_v62 }
 0xcd2   :  { %4403 = vmatprep.mubr.msk.f32.mxu1 %vm153_vm1, %v2610_v9 }
 0xcd5   :  { %4404 = vmatmul.mubr.msk.f32.gmra.mrb[44].mxu1 %vm153_vm1, %v2611_v49 }
 0xcd6   :  { %4406 = vmatprep.mubr.msk.f32.mxu1 %vm153_vm1, %v2612_v45 }
 0xcd9   :  { %4407 = vmatmul.mubr.msk.f32.gmra.mrb[46].mxu1 %vm153_vm1, %v2613_v40 }
 0xcda   :  { %4409 = vmatprep.mubr.msk.f32.mxu1 %vm153_vm1, %v2614_v8 }
 0xcdd   :  { %4410 = vmatmul.mubr.msk.f32.gmra.mrb[48].mxu1 %vm153_vm1, %v2615_v11 }
 0xcde   :  { %4412 = vmatprep.mubr.msk.f32.mxu1 %vm153_vm1, %v2616_v31 }
 0xce1   :  { %4413 = vmatmul.mubr.msk.f32.gmra.mrb[50].mxu1 %vm153_vm1, %v2617_v37 }
 0xce2   :  { %4415 = vmatprep.mubr.msk.f32.mxu1 %vm153_vm1, %v2618_v18 }
 0xce5   :  { %4416 = vmatmul.mubr.msk.f32.gmra.mrb[52].mxu1 %vm153_vm1, %v2619_v53 }
 0xce6   :  { %4418 = vmatprep.mubr.msk.f32.mxu1 %vm153_vm1, %v2620_v43 }
 0xce9   :  { %4419 = vmatmul.mubr.msk.f32.gmra.mrb[54].mxu1 %vm153_vm1, %v2621_v12 }
 0xda0   :  { %v4399_v57 = vpop.f32.mrb[40].mxu1 }
 0xda1   :  { %v5972_v44 = vadd.f32 %v4399_v57, %v5065_v21  ;;  %v2736_v56 = vpop.f32.mrb[41].mxu1 }
 0xda2   :  { %v5975_v38 = vadd.f32 %v2736_v56, %v5034_v5 }
 0xda3   :  { %v2834_v52 = vsel %vm153_vm1, %v5972_v44, 0.0 }
 0xda4   :  { %2835 = vadd.xlane.f32.xlu1 %v2834_v52  ;;  %v2831_v17 = vsel %vm153_vm1, %v5975_v38, 0.0  ;;  %v4402_v6 = vpop.f32.mrb[42].mxu1 }
 0xda5   :  { %2832 = vadd.xlane.f32.xlu0 %v2831_v17  ;;  %v5982_v63 = vadd.f32 %v4402_v6, %v5080_v25  ;;  %v2746_v1 = vpop.f32.mrb[43].mxu1 }
 0xda6   :  { %v5987_v60 = vadd.f32 %v2746_v1, %v5049_v16 }
 0xda7   :  { %v2840_v21 = vsel %vm153_vm1, %v5982_v63, 0.0 }
 0xda8   :  { %v4405_v5 = vpop.f32.mrb[44].mxu1  ;;  %v2837_v13 = vsel %vm153_vm1, %v5987_v60, 0.0 }
 0xda9   :  { %v5990_v22 = vadd.f32 %v4405_v5, %v5087_v26  ;;  %2841 = vadd.xlane.f32.xlu0 %v2840_v21  ;;  %v2756_v34 = vpop.f32.mrb[45].mxu1 }
 0xdaa   :  { %v5993_v20 = vadd.f32 %v2756_v34, %v5057_v19 }
 0xdab   :  { %v2846_v25 = vsel %vm153_vm1, %v5990_v22, 0.0 }
 0xdac   :  { %2847 = vadd.xlane.f32.xlu1 %v2846_v25  ;;  %v4408_v2 = vpop.f32.mrb[46].mxu1  ;;  %v2843_v19 = vsel %vm153_vm1, %v5993_v20, 0.0 }
 0xdad   :  { %v6000_v16 = vadd.f32 %v4408_v2, %v5095_v29  ;;  %2838 = vadd.xlane.f32.xlu0 %v2837_v13  ;;  %v2766_v7 = vpop.f32.mrb[47].mxu1 }
 0xdae   :  { %v6003_v26 = vadd.f32 %v2766_v7, %v5072_v23 }
 0xdaf   :  { %v2852_v39 = vsel %vm153_vm1, %v6000_v16, 0.0 }
 0xdb0   :  { %2853 = vadd.xlane.f32.xlu1 %v2852_v39  ;;  %v4411_v10 = vpop.f32.mrb[48].mxu1  ;;  %v2849_v23 = vsel %vm153_vm1, %v6003_v26, 0.0 }
 0xdb1   :  { %v6010_v3 = vadd.f32 %v4411_v10, %v5502_v28  ;;  %2844 = vadd.xlane.f32.xlu0 %v2843_v19  ;;  %v2776_v48 = vpop.f32.mrb[49].mxu1 }
 0xdb2   :  { %v6013_v29 = vadd.f32 %v2776_v48, %v5488_v46 }
 0xdb3   :  { %v2858_v14 = vsel %vm153_vm1, %v6010_v3, 0.0 }
 0xdb4   :  { %2859 = vadd.xlane.f32.xlu1 %v2858_v14  ;;  %v4414_v51 = vpop.f32.mrb[50].mxu1  ;;  %v2855_v46 = vsel %vm153_vm1, %v6013_v29, 0.0 }
 0xdb5   :  { %v6020_v47 = vadd.f32 %v4414_v51, %v5507_v35  ;;  %2850 = vadd.xlane.f32.xlu0 %v2849_v23  ;;  %v2786_v15 = vpop.f32.mrb[51].mxu1 }
 0xdb6   :  { %v6023_v28 = vadd.f32 %v2786_v15, %v5495_v27 }
 0xdb7   :  { %v2864_v54 = vsel %vm153_vm1, %v6020_v47, 0.0 }
 0xdb8   :  { %2865 = vadd.xlane.f32.xlu1 %v2864_v54  ;;  %v4417_v50 = vpop.f32.mrb[52].mxu1  ;;  %v2861_v27 = vsel %vm153_vm1, %v6023_v28, 0.0 }
 0xdb9   :  { %v6030_v41 = vadd.f32 %v4417_v50, %v5523_v61  ;;  %2856 = vadd.xlane.f32.xlu0 %v2855_v46  ;;  %v2796_v33 = vpop.f32.mrb[53].mxu1 }
 0xdba   :  { %v6033_v35 = vadd.f32 %v2796_v33, %v5516_v32 }
 0xdbb   :  { %v2870_v42 = vsel %vm153_vm1, %v6030_v41, 0.0 }
 0xdbc   :  { %2871 = vadd.xlane.f32.xlu1 %v2870_v42  ;;  %v4420_v24 = vpop.f32.mrb[54].mxu1  ;;  %v2867_v61 = vsel %vm153_vm1, %v6033_v35, 0.0 }
 0xdbd   :  { %v6040_v4 = vadd.f32 %v4420_v24, %v5537_v36  ;;  %2862 = vadd.xlane.f32.xlu0 %v2861_v27  ;;  %v2806_v30 = vpop.f32.mrb[55].mxu1 }
 0xdbe   :  { %v6045_v55 = vadd.f32 %v2806_v30, %v5530_v59 }
 0xdbf   :  { %v2876_v32 = vsel %vm153_vm1, %v6040_v4, 0.0 }
 0xdc0   :  { %2877 = vadd.xlane.f32.xlu1 %v2876_v32  ;;  %v2873_v0 = vsel %vm153_vm1, %v6045_v55, 0.0 }
 0xdc1   :  { %2868 = vadd.xlane.f32.xlu0 %v2867_v61 }
 0xdc5   :  { %2874 = vadd.xlane.f32.xlu0 %v2873_v0 }
 0xe31   :  { %v2836_v58 = vpop.xlane.xlu1 %2835 }
 0xe32   :  { %v2880_v36 = vmul.f32 0.03125, %v2836_v58  ;;  %v2833_v62 = vpop.xlane.xlu0 %2832 }
 0xe33   :  { %v2879_v9 = vmul.f32 0.03125, %v2833_v62 }
 0xe34   :  { %v6052_v49 = vsub.f32 %v5972_v44, %v2880_v36 }
 0xe35   :  { %v6055_v45 = vsub.f32 %v5975_v38, %v2879_v9 }
 0xe36   :  { %v2842_v59 = vpop.xlane.xlu0 %2841  ;;  %v2912_v40 = vmul.f32 %v6052_v49, %v6052_v49 }
 0xe37   :  { %v2882_v8 = vmul.f32 0.03125, %v2842_v59  ;;  %v2911_v11 = vmul.f32 %v6055_v45, %v6055_v45 }
 0xe38   :  { %v2930_v31 = vsel %vm153_vm1, %v2912_v40, 0.0 }
 0xe39   :  { %v6063_v37 = vsub.f32 %v5982_v63, %v2882_v8  ;;  %v2848_v18 = vpop.xlane.xlu1 %2847  ;;  %2931 = vadd.xlane.f32.xlu1 %v2930_v31  ;;  %v2927_v53 = vsel %vm153_vm1, %v2911_v11, 0.0 }
 0xe3a   :  { %v2884_v43 = vmul.f32 0.03125, %v2848_v18  ;;  %v2839_v12 = vpop.xlane.xlu0 %2838  ;;  %2928 = vadd.xlane.f32.xlu0 %v2927_v53 }
 0xe3b   :  { %v2881_v57 = vmul.f32 0.03125, %v2839_v12  ;;  %v2914_v56 = vmul.f32 %v6063_v37, %v6063_v37 }
 0xe3c   :  { %v6069_v52 = vsub.f32 %v5990_v22, %v2884_v43 }
 0xe3d   :  { %v6072_v17 = vsub.f32 %v5987_v60, %v2881_v57  ;;  %v2854_v6 = vpop.xlane.xlu1 %2853  ;;  %v2936_v1 = vsel %vm153_vm1, %v2914_v56, 0.0 }
 0xe3e   :  { %v2886_v21 = vmul.f32 0.03125, %v2854_v6  ;;  %v2845_v5 = vpop.xlane.xlu0 %2844  ;;  %2937 = vadd.xlane.f32.xlu1 %v2936_v1  ;;  %v2916_v34 = vmul.f32 %v6069_v52, %v6069_v52 }
 0xe3f   :  { %v2883_v25 = vmul.f32 0.03125, %v2845_v5  ;;  %v2913_v2 = vmul.f32 %v6072_v17, %v6072_v17 }
 0xe40   :  { %v6080_v13 = vsub.f32 %v6000_v16, %v2886_v21  ;;  %v2942_v7 = vsel %vm153_vm1, %v2916_v34, 0.0 }
 0xe41   :  { %v6084_v19 = vsub.f32 %v5993_v20, %v2883_v25  ;;  %v2860_v39 = vpop.xlane.xlu1 %2859  ;;  %v2933_v10 = vsel %vm153_vm1, %v2913_v2, 0.0 }
 0xe42   :  { %v2888_v48 = vmul.f32 0.03125, %v2860_v39  ;;  %v2851_v23 = vpop.xlane.xlu0 %2850  ;;  %2943 = vadd.xlane.f32.xlu1 %v2942_v7  ;;  %2934 = vadd.xlane.f32.xlu0 %v2933_v10  ;;  %v2918_v14 = vmul.f32 %v6080_v13, %v6080_v13 }
 0xe43   :  { %v2885_v51 = vmul.f32 0.03125, %v2851_v23  ;;  %v2915_v15 = vmul.f32 %v6084_v19, %v6084_v19 }
 0xe44   :  { %v6092_v46 = vsub.f32 %v6010_v3, %v2888_v48  ;;  %v2948_v54 = vsel %vm153_vm1, %v2918_v14, 0.0  ;;  %v3283_v14 = vld [vmem:[#allocation6 + $0x130] sm:$0xff] }
 0xe45   :  { %v6096_v50 = vsub.f32 %v6003_v26, %v2885_v51  ;;  %v2866_v33 = vpop.xlane.xlu1 %2865  ;;  %v2939_v27 = vsel %vm153_vm1, %v2915_v15, 0.0  ;;  %v3284_v51 = vld [vmem:[#allocation6 + $0x138] sm:$0xff] }
 0xe46   :  { %v2890_v42 = vmul.f32 0.03125, %v2866_v33  ;;  %v2857_v24 = vpop.xlane.xlu0 %2856  ;;  %2949 = vadd.xlane.f32.xlu1 %v2948_v54  ;;  %2940 = vadd.xlane.f32.xlu0 %v2939_v27  ;;  %v2920_v30 = vmul.f32 %v6092_v46, %v6092_v46  ;;  %v4701_v54 = vpack.c.bf16 %v3284_v51, %v3283_v14  ;;  %v3081_v33 = vld [vmem:[#allocation6 + $0x110] sm:$0xff]  ;;  %v3082_v27 = vld [vmem:[#allocation6 + $0x118] sm:$0xff] }
 0xe47   :  { %v2887_v61 = vmul.f32 0.03125, %v2857_v24  ;;  %v2917_v32 = vmul.f32 %v6096_v50, %v6096_v50 }
 0xe48   :  { %v6104_v0 = vsub.f32 %v6020_v47, %v2890_v42  ;;  %v2954_v58 = vsel %vm153_vm1, %v2920_v30, 0.0  ;;  %v4693_v30 = vpack.c.bf16 %v3082_v27, %v3081_v33  ;;  %4702 = vmatprep.subr.bf16.mxu1 %v4701_v54  ;;  %v6147_v33 = vld [vmem:[#allocation6 + $0x174] ss:$0 sm:$0xff] }
 0xe49   :  { %v6108_v36 = vsub.f32 %v6013_v29, %v2887_v61  ;;  %v2872_v62 = vpop.xlane.xlu1 %2871  ;;  %v2945_v9 = vsel %vm153_vm1, %v2917_v32, 0.0  ;;  %4704 = vmatpush3.bf16.msra.mxu1 %v4701_v54  ;;  %v3083_v32 = vld [vmem:[#allocation6 + $0x120] sm:$0xff] }
 0xe4a   :  { %v2892_v59 = vmul.f32 0.03125, %v2872_v62  ;;  %v2863_v40 = vpop.xlane.xlu0 %2862  ;;  %2955 = vadd.xlane.f32.xlu1 %v2954_v58  ;;  %2946 = vadd.xlane.f32.xlu0 %v2945_v9  ;;  %v2922_v8 = vmul.f32 %v6104_v0, %v6104_v0  ;;  %v3084_v58 = vld [vmem:[#allocation6 + $0x128] sm:$0xff]  ;;  %v3285_v62 = vld [vmem:[#allocation6 + $0x140] sm:$0xff] }
 0xe4b   :  { %v2889_v11 = vmul.f32 0.03125, %v2863_v40  ;;  %v2919_v31 = vmul.f32 %v6108_v36, %v6108_v36  ;;  %4694 = vmatprep.subr.bf16.mxu0 %v4693_v30  ;;  %v3286_v40 = vld [vmem:[#allocation6 + $0x148] sm:$0xff] }
 0xe4c   :  { %v6116_v18 = vsub.f32 %v6030_v41, %v2892_v59  ;;  %v2960_v53 = vsel %vm153_vm1, %v2922_v8, 0.0  ;;  %4696 = vmatpush3.bf16.msra.mxu0 %v4693_v30  ;;  %v4697_v59 = vpack.c.bf16 %v3084_v58, %v3083_v32  ;;  %v4705_v8 = vpack.c.bf16 %v3286_v40, %v3285_v62  ;;  %v6151_v40 = vld [vmem:[#allocation6 + $0x175] ss:$0 sm:$0xff] }
 0xe4d   :  { %v6120_v43 = vsub.f32 %v6023_v28, %v2889_v11  ;;  %v2878_v12 = vpop.xlane.xlu1 %2877  ;;  %v2951_v57 = vsel %vm153_vm1, %v2919_v31, 0.0 }
 0xe4e   :  { %v2894_v56 = vmul.f32 0.03125, %v2878_v12  ;;  %v2869_v6 = vpop.xlane.xlu0 %2868  ;;  %2961 = vadd.xlane.f32.xlu1 %v2960_v53  ;;  %2952 = vadd.xlane.f32.xlu0 %v2951_v57  ;;  %v2924_v1 = vmul.f32 %v6116_v18, %v6116_v18 }
 0xe4f   :  { %v2891_v21 = vmul.f32 0.03125, %v2869_v6  ;;  %v2921_v5 = vmul.f32 %v6120_v43, %v6120_v43  ;;  %4698 = vmatprep.subr.bf16.mxu0 %v4697_v59  ;;  %4706 = vmatprep.subr.bf16.mxu1 %v4705_v8 }
 0xe50   :  { %v6128_v34 = vsub.f32 %v6040_v4, %v2894_v56  ;;  %v2966_v25 = vsel %vm153_vm1, %v2924_v1, 0.0  ;;  %4700 = vmatpush3.bf16.msra.mxu0 %v4697_v59  ;;  %4708 = vmatpush3.bf16.msra.mxu1 %v4705_v8 }
 0xe51   :  { %v6132_v2 = vsub.f32 %v6033_v35, %v2891_v21  ;;  %v2957_v7 = vsel %vm153_vm1, %v2921_v5, 0.0 }
 0xe52   :  { %2967 = vadd.xlane.f32.xlu1 %v2966_v25  ;;  %2958 = vadd.xlane.f32.xlu0 %v2957_v7  ;;  %v2875_v39 = vpop.xlane.xlu0 %2874  ;;  %v2926_v10 = vmul.f32 %v6128_v34, %v6128_v34 }
 0xe53   :  { %v2893_v48 = vmul.f32 0.03125, %v2875_v39  ;;  %v2923_v23 = vmul.f32 %v6132_v2, %v6132_v2 }
 0xe54   :  { %v2972_v15 = vsel %vm153_vm1, %v2926_v10, 0.0 }
 0xe55   :  { %v6141_v42 = vsub.f32 %v6045_v55, %v2893_v48  ;;  %v2963_v24 = vsel %vm153_vm1, %v2923_v23, 0.0 }
 0xe56   :  { %2973 = vadd.xlane.f32.xlu1 %v2972_v15  ;;  %2964 = vadd.xlane.f32.xlu0 %v2963_v24 }
 0xe57   :  { %v2925_v61 = vmul.f32 %v6141_v42, %v6141_v42 }
 0xe59   :  { %v2969_v9 = vsel %vm153_vm1, %v2925_v61, 0.0 }
 0xe5a   :  { %2970 = vadd.xlane.f32.xlu0 %v2969_v9 }
 0xec6   :  { %v2932_v11 = vpop.xlane.xlu1 %2931 }
 0xec7   :  { %v2976_v31 = vmul.f32 0.03125, %v2932_v11  ;;  %v2929_v53 = vpop.xlane.xlu0 %2928 }
 0xec8   :  { %v2975_v12 = vmul.f32 0.03125, %v2929_v53 }
 0xec9   :  { %v2992_v57 = vadd.f32 1e-05, %v2976_v31 }
 0xeca   :  { %v2991_v56 = vadd.f32 1e-05, %v2975_v12 }
 0xecb   :  { %4895 = vrsqrt.f32 %v2992_v57  ;;  %v2938_v6 = vpop.xlane.xlu1 %2937 }
 0xecc   :  { %4897 = vrsqrt.f32 %v2991_v56  ;;  %v2978_v1 = vmul.f32 0.03125, %v2938_v6 }
 0xece   :  { %v2994_v21 = vadd.f32 1e-05, %v2978_v1 }
 0xecf   :  { %v2944_v5 = vpop.xlane.xlu1 %2943  ;;  %v2935_v25 = vpop.xlane.xlu0 %2934 }
 0xed0   :  { %4899 = vrsqrt.f32 %v2994_v21  ;;  %v2980_v7 = vmul.f32 0.03125, %v2944_v5  ;;  %v2977_v39 = vmul.f32 0.03125, %v2935_v25 }
 0xed2   :  { %v2996_v10 = vadd.f32 1e-05, %v2980_v7  ;;  %v2993_v48 = vadd.f32 1e-05, %v2977_v39 }
 0xed3   :  { %v2950_v23 = vpop.xlane.xlu1 %2949  ;;  %v2941_v14 = vpop.xlane.xlu0 %2940 }
 0xed4   :  { %4901 = vrsqrt.f32 %v2996_v10  ;;  %v2982_v51 = vmul.f32 0.03125, %v2950_v23  ;;  %v2979_v15 = vmul.f32 0.03125, %v2941_v14 }
 0xed5   :  { %v4896_v54 = vpop.eup %4895  ;;  %4903 = vrsqrt.f32 %v2993_v48 }
 0xed6   :  { %v4898_v27 = vpop.eup %4897  ;;  %v3024_v24 = vmul.f32 %v4896_v54, %v6052_v49  ;;  %v2998_v30 = vadd.f32 1e-05, %v2982_v51  ;;  %v2995_v61 = vadd.f32 1e-05, %v2979_v15 }
 0xed7   :  { %v2956_v32 = vpop.xlane.xlu1 %2955  ;;  %v2947_v58 = vpop.xlane.xlu0 %2946  ;;  %v3023_v62 = vmul.f32 %v4898_v27, %v6055_v45 }
 0xed8   :  { %4905 = vrsqrt.f32 %v2998_v30  ;;  %v2984_v9 = vmul.f32 0.03125, %v2956_v32  ;;  %v2981_v59 = vmul.f32 0.03125, %v2947_v58  ;;  %v3045_v8 = vmul.f32 %v6147_v33, %v3024_v24 }
 0xed9   :  { %4907 = vrsqrt.f32 %v2995_v61  ;;  %v3044_v11 = vmul.f32 %v6147_v33, %v3023_v62 }
 0xeda   :  { %v4900_v31 = vpop.eup %4899  ;;  %v3000_v53 = vadd.f32 1e-05, %v2984_v9  ;;  %v2997_v12 = vadd.f32 1e-05, %v2981_v59  ;;  %v3066_v1 = vadd.f32 %v6151_v40, %v3045_v8 }
 0xedb   :  { %v2962_v49 = vpop.xlane.xlu1 %2961  ;;  %v2953_v57 = vpop.xlane.xlu0 %2952  ;;  %v3065_v56 = vadd.f32 %v6151_v40, %v3044_v11  ;;  %v3026_v21 = vmul.f32 %v4900_v31, %v6063_v37 }
 0xedc   :  { %4909 = vrsqrt.f32 %v3000_v53  ;;  %v2986_v6 = vmul.f32 0.03125, %v2962_v49  ;;  %v2983_v45 = vmul.f32 0.03125, %v2953_v57 }
 0xedd   :  { %4911 = vrsqrt.f32 %v2997_v12  ;;  %4429 = vmatprep.mubr.msk.f32.mxu0 %vm153_vm1, %v3065_v56  ;;  %4461 = vmatprep.mubr.msk.f32.mxu1 %vm153_vm1, %v3065_v56  ;;  %v3047_v15 = vmul.f32 %v6147_v33, %v3026_v21 }
 0xede   :  { %v4902_v5 = vpop.eup %4901  ;;  %v3002_v25 = vadd.f32 1e-05, %v2986_v6  ;;  %v2999_v7 = vadd.f32 1e-05, %v2983_v45  ;;  %4430 = vmatmul.mubr.msk.f32.vlgmr.msra.gmra.mrb[40].mxu0 %vm153_vm1, %v3066_v1  ;;  %4462 = vmatmul.mubr.msk.f32.vlgmr.msra.gmra.mrb[56].mxu1 %vm153_vm1, %v3066_v1 }
 0xedf   :  { %v4904_v39 = vpop.eup %4903  ;;  %v2968_v10 = vpop.xlane.xlu1 %2967  ;;  %v3028_v37 = vmul.f32 %v4902_v5, %v6069_v52 }
 0xee0   :  { %v2959_v48 = vpop.xlane.xlu0 %2958  ;;  %4913 = vrsqrt.f32 %v3002_v25  ;;  %v2988_v23 = vmul.f32 0.03125, %v2968_v10  ;;  %v3025_v51 = vmul.f32 %v4904_v39, %v6072_v17  ;;  %v3068_v17 = vadd.f32 %v6151_v40, %v3047_v15 }
 0xee1   :  { %v2985_v14 = vmul.f32 0.03125, %v2959_v48  ;;  %4915 = vrsqrt.f32 %v2999_v7  ;;  %v3049_v52 = vmul.f32 %v6147_v33, %v3028_v37 }
 0xee2   :  { %v4906_v54 = vpop.eup %4905  ;;  %v3004_v27 = vadd.f32 1e-05, %v2988_v23  ;;  %v3046_v30 = vmul.f32 %v6147_v33, %v3025_v51 }
 0xee3   :  { %v3001_v24 = vadd.f32 1e-05, %v2985_v14  ;;  %v4908_v61 = vpop.eup %4907  ;;  %v2974_v32 = vpop.xlane.xlu1 %2973  ;;  %v3030_v12 = vmul.f32 %v4906_v54, %v6080_v13  ;;  %v3070_v1 = vadd.f32 %v6151_v40, %v3049_v52 }
 0xee4   :  { %v2965_v58 = vpop.xlane.xlu0 %2964  ;;  %4917 = vrsqrt.f32 %v3004_v27  ;;  %v2990_v62 = vmul.f32 0.03125, %v2974_v32  ;;  %v3067_v59 = vadd.f32 %v6151_v40, %v3046_v30  ;;  %v3027_v8 = vmul.f32 %v4908_v61, %v6084_v19 }
 0xee5   :  { %v2987_v9 = vmul.f32 0.03125, %v2965_v58  ;;  %4919 = vrsqrt.f32 %v3001_v24  ;;  %v3051_v25 = vmul.f32 %v6147_v33, %v3030_v12 }
 0xee6   :  { %v4910_v11 = vpop.eup %4909  ;;  %v3006_v31 = vadd.f32 1e-05, %v2990_v62  ;;  %4432 = vmatprep.mubr.msk.f32.mxu0 %vm153_vm1, %v3067_v59  ;;  %4464 = vmatprep.mubr.msk.f32.mxu1 %vm153_vm1, %v3067_v59  ;;  %v3048_v56 = vmul.f32 %v6147_v33, %v3027_v8 }
 0xee7   :  { %v3003_v53 = vadd.f32 1e-05, %v2987_v9  ;;  %v4912_v49 = vpop.eup %4911  ;;  %4433 = vmatmul.mubr.msk.f32.gmra.mrb[42].mxu0 %vm153_vm1, %v3068_v17  ;;  %4465 = vmatmul.mubr.msk.f32.gmra.mrb[58].mxu1 %vm153_vm1, %v3068_v17  ;;  %v3032_v7 = vmul.f32 %v4910_v11, %v6092_v46  ;;  %v3072_v46 = vadd.f32 %v6151_v40, %v3051_v25 }
 0xee8   :  { %v2971_v57 = vpop.xlane.xlu0 %2970  ;;  %4921 = vrsqrt.f32 %v3006_v31  ;;  %v3029_v6 = vmul.f32 %v4912_v49, %v6096_v50  ;;  %v3069_v45 = vadd.f32 %v6151_v40, %v3048_v56  ;;  %v3533_v31 = vld [vmem:[#allocation6 + $0x150] sm:$0xff]  ;;  %v3536_v49 = vld [vmem:[#allocation6 + $0x168] sm:$0xff] }
 0xee9   :  { %v2989_v19 = vmul.f32 0.03125, %v2971_v57  ;;  %4923 = vrsqrt.f32 %v3003_v53  ;;  %v3053_v51 = vmul.f32 %v6147_v33, %v3032_v7  ;;  %v3534_v53 = vld [vmem:[#allocation6 + $0x158] sm:$0xff]  ;;  %v6231_v56 = vld [vmem:[#allocation6 + $0x177] ss:$0 sm:$0xff] }
 0xeea   :  { %v4914_v21 = vpop.eup %4913  ;;  %v3050_v13 = vmul.f32 %v6147_v33, %v3029_v6  ;;  %4435 = vmatprep.mubr.msk.f32.mxu0 %vm153_vm1, %v3069_v45  ;;  %4467 = vmatprep.mubr.msk.f32.mxu1 %vm153_vm1, %v3069_v45  ;;  %v4709_v12 = vpack.c.bf16 %v3534_v53, %v3533_v31 }
 0xeeb   :  { %v3005_v5 = vadd.f32 1e-05, %v2989_v19  ;;  %v4916_v39 = vpop.eup %4915  ;;  %4436 = vmatmul.mubr.msk.f32.gmra.mrb[44].mxu0 %vm153_vm1, %v3070_v1  ;;  %4468 = vmatmul.mubr.msk.f32.gmra.mrb[60].mxu1 %vm153_vm1, %v3070_v1  ;;  %v3034_v48 = vmul.f32 %v4914_v21, %v6104_v0  ;;  %v3074_v27 = vadd.f32 %v6151_v40, %v3053_v51 }
 0xeec   :  { %v3071_v50 = vadd.f32 %v6151_v40, %v3050_v13  ;;  %v3031_v10 = vmul.f32 %v4916_v39, %v6108_v36  ;;  %4710 = vmatprep.subr.bf16.mxu0 %v4709_v12 }
 0xeed   :  { %4925 = vrsqrt.f32 %v3005_v5  ;;  %v3055_v37 = vmul.f32 %v6147_v33, %v3034_v48  ;;  %4712 = vmatpush3.bf16.xpose.msra.mxu0 %v4709_v12 }
 0xeee   :  { %v4918_v23 = vpop.eup %4917  ;;  %4438 = vmatprep.mubr.msk.f32.mxu0 %vm153_vm1, %v3071_v50  ;;  %4470 = vmatprep.mubr.msk.f32.mxu1 %vm153_vm1, %v3071_v50  ;;  %v3052_v14 = vmul.f32 %v6147_v33, %v3031_v10 }
 0xeef   :  { %v4920_v15 = vpop.eup %4919  ;;  %4439 = vmatmul.mubr.msk.f32.gmra.mrb[46].mxu0 %vm153_vm1, %v3072_v46  ;;  %4471 = vmatmul.mubr.msk.f32.gmra.mrb[62].mxu1 %vm153_vm1, %v3072_v46  ;;  %v3036_v30 = vmul.f32 %v4918_v23, %v6116_v18  ;;  %v3076_v58 = vadd.f32 %v6151_v40, %v3055_v37 }
 0xef0   :  { %v3073_v36 = vadd.f32 %v6151_v40, %v3052_v14  ;;  %v3033_v0 = vmul.f32 %v4920_v15, %v6120_v43 }
 0xef1   :  { %v3057_v18 = vmul.f32 %v6147_v33, %v3036_v30 }
 0xef2   :  { %v4922_v54 = vpop.eup %4921  ;;  %4441 = vmatprep.mubr.msk.f32.mxu0 %vm153_vm1, %v3073_v36  ;;  %4473 = vmatprep.mubr.msk.f32.mxu1 %vm153_vm1, %v3073_v36  ;;  %v3054_v24 = vmul.f32 %v6147_v33, %v3033_v0  ;;  %v6241_v36 = vld [vmem:[#allocation6 + $0x176] ss:$0 sm:$0xff] }
 0xef3   :  { %v4924_v61 = vpop.eup %4923  ;;  %4442 = vmatmul.mubr.msk.f32.gmra.mrb[48].mxu0 %vm153_vm1, %v3074_v27  ;;  %4474 = vmatmul.mubr.msk.f32.gmra.mrb[64].mxu1 %vm153_vm1, %v3074_v27  ;;  %v3038_v59 = vmul.f32 %v4922_v54, %v6128_v34  ;;  %v3078_v52 = vadd.f32 %v6151_v40, %v3057_v18 }
 0xef4   :  { %v3075_v43 = vadd.f32 %v6151_v40, %v3054_v24  ;;  %v3035_v32 = vmul.f32 %v4924_v61, %v6132_v2 }
 0xef5   :  { %v3059_v11 = vmul.f32 %v6147_v33, %v3038_v59 }
 0xef6   :  { %4444 = vmatprep.mubr.msk.f32.mxu0 %vm153_vm1, %v3075_v43  ;;  %4476 = vmatprep.mubr.msk.f32.mxu1 %vm153_vm1, %v3075_v43  ;;  %v3056_v9 = vmul.f32 %v6147_v33, %v3035_v32 }
 0xef7   :  { %v4926_v62 = vpop.eup %4925  ;;  %4445 = vmatmul.mubr.msk.f32.gmra.mrb[50].mxu0 %vm153_vm1, %v3076_v58  ;;  %4477 = vmatmul.mubr.msk.f32.gmra.mrb[66].mxu1 %vm153_vm1, %v3076_v58 }
 0xef8   :  { %v3037_v17 = vmul.f32 %v4926_v62, %v6141_v42  ;;  %v3077_v2 = vadd.f32 %v6151_v40, %v3056_v9  ;;  %v3080_v42 = vadd.f32 %v6151_v40, %v3059_v11 }
 0xefa   :  { %v3058_v8 = vmul.f32 %v6147_v33, %v3037_v17  ;;  %4447 = vmatprep.mubr.msk.f32.mxu0 %vm153_vm1, %v3077_v2  ;;  %4479 = vmatprep.mubr.msk.f32.mxu1 %vm153_vm1, %v3077_v2  ;;  %v3535_v33 = vld [vmem:[#allocation6 + $0x160] sm:$0xff] }
 0xefb   :  { %4448 = vmatmul.mubr.msk.f32.gmra.mrb[52].mxu0 %vm153_vm1, %v3078_v52  ;;  %4480 = vmatmul.mubr.msk.f32.gmra.mrb[68].mxu1 %vm153_vm1, %v3078_v52  ;;  %v4713_v57 = vpack.c.bf16 %v3536_v49, %v3535_v33 }
 0xefc   :  { %v3079_v34 = vadd.f32 %v6151_v40, %v3058_v8 }
 0xefd   :  { %4714 = vmatprep.subr.bf16.mxu0 %v4713_v57 }
 0xefe   :  { %4450 = vmatprep.mubr.msk.f32.mxu0 %vm153_vm1, %v3079_v34  ;;  %4482 = vmatprep.mubr.msk.f32.mxu1 %vm153_vm1, %v3079_v34 }
 0xeff   :  { %4451 = vmatmul.mubr.msk.f32.gmra.mrb[54].mxu0 %vm153_vm1, %v3080_v42  ;;  %4483 = vmatmul.mubr.msk.f32.gmra.mrb[70].mxu1 %vm153_vm1, %v3080_v42 }
 0xf00   :  { %4716 = vmatpush3.bf16.xpose.msra.mxu0 %v4713_v57 }
 0xfb1   :  { %v4431_v19 = vpop.f32.mrb[40].mxu0  ;;  %v4463_v6 = vpop.f32.mrb[56].mxu1 }
 0xfb2   :  { %v3364_v40 = vadd.f32 %v4463_v6, %v6231_v56  ;;  %v3204_v45 = vpop.f32.mrb[41].mxu0  ;;  %v3358_v1 = vpop.f32.mrb[57].mxu1  ;;  %v3210_v62 = vadd.f32 %v4431_v19, %v6241_v36 }
 0xfb3   :  { %v3359_v21 = vadd.f32 %v6231_v56, %v3358_v1  ;;  %v3205_v2 = vadd.f32 %v6241_v36, %v3204_v45 }
 0xfb4   :  { %v3454_v5 = vmul.f32 0.70710677, %v3364_v40  ;;  %v3438_v24 = vmul.f32 0.5, %v3364_v40 }
 0xfb5   :  { %v3453_v13 = vmul.f32 0.70710677, %v3359_v21  ;;  %v3437_v43 = vmul.f32 0.5, %v3359_v21 }
 0xfb6   :  { %4927 = verf.f32 %v3454_v5 }
 0xfb7   :  { %4929 = verf.f32 %v3453_v13 }
 0xfba   :  { %v4434_v25 = vpop.f32.mrb[42].mxu0  ;;  %v4466_v7 = vpop.f32.mrb[58].mxu1 }
 0xfbb   :  { %v3374_v39 = vadd.f32 %v4466_v7, %v6231_v56  ;;  %v6236_v50 = vpop.f32.mrb[43].mxu0  ;;  %v3368_v10 = vpop.f32.mrb[59].mxu1 }
 0xfbc   :  { %v3369_v48 = vadd.f32 %v6231_v56, %v3368_v10 }
 0xfbd   :  { %v3456_v23 = vmul.f32 0.70710677, %v3374_v39  ;;  %v3440_v5 = vmul.f32 0.5, %v3374_v39 }
 0xfbe   :  { %v3455_v46 = vmul.f32 0.70710677, %v3369_v48  ;;  %v6239_v14 = vpop.f32.mrb[44].mxu0  ;;  %v4469_v51 = vpop.f32.mrb[60].mxu1  ;;  %v3439_v10 = vmul.f32 0.5, %v3369_v48 }
 0xfbf   :  { %4931 = verf.f32 %v3456_v23  ;;  %v3384_v0 = vadd.f32 %v4469_v51, %v6231_v56  ;;  %v6244_v37 = vpop.f32.mrb[45].mxu0  ;;  %v3378_v54 = vpop.f32.mrb[61].mxu1 }
 0xfc0   :  { %v4928_v15 = vpop.eup %4927  ;;  %4933 = verf.f32 %v3455_v46  ;;  %v3379_v61 = vadd.f32 %v6231_v56, %v3378_v54  ;;  %v3220_v54 = vadd.f32 %v4434_v25, %v6241_v36 }
 0xfc1   :  { %v4930_v27 = vpop.eup %4929  ;;  %v3486_v30 = vadd.f32 1.0, %v4928_v15  ;;  %v3458_v58 = vmul.f32 0.70710677, %v3384_v0 }
 0xfc2   :  { %v3485_v32 = vadd.f32 1.0, %v4930_v27  ;;  %v3457_v18 = vmul.f32 0.70710677, %v3379_v61  ;;  %v6248_v59 = vpop.f32.mrb[46].mxu0  ;;  %v4472_v17 = vpop.f32.mrb[62].mxu1 }
 0xfc3   :  { %v3502_v9 = vmul.f32 %v3486_v30, %v3438_v24  ;;  %4935 = verf.f32 %v3458_v58  ;;  %v6252_v52 = vadd.f32 %v4472_v17, %v6231_v56  ;;  %v6254_v11 = vpop.f32.mrb[47].mxu0  ;;  %v3388_v34 = vpop.f32.mrb[63].mxu1 }
 0xfc4   :  { %v3501_v8 = vmul.f32 %v3485_v32, %v3437_v43  ;;  %4937 = verf.f32 %v3457_v18  ;;  %v6257_v31 = vadd.f32 %v6231_v56, %v3388_v34  ;;  %v3215_v43 = vadd.f32 %v6241_v36, %v6236_v50 }
 0xfc5   :  { %v3518_v42 = vmul.f32 %v3502_v9, %v3210_v62  ;;  %v3460_v53 = vmul.f32 0.70710677, %v6252_v52  ;;  %v3442_v18 = vmul.f32 0.5, %v3384_v0 }
 0xfc6   :  { %v3517_v12 = vmul.f32 %v3501_v8, %v3205_v2  ;;  %v3459_v33 = vmul.f32 0.70710677, %v6257_v31  ;;  %v6261_v49 = vpop.f32.mrb[48].mxu0  ;;  %v4475_v57 = vpop.f32.mrb[64].mxu1 }
 0xfc7   :  { %4939 = verf.f32 %v3460_v53  ;;  %v6264_v19 = vadd.f32 %v4475_v57, %v6231_v56  ;;  %v6266_v6 = vpop.f32.mrb[49].mxu0  ;;  %v3398_v40 = vpop.f32.mrb[65].mxu1  ;;  %v3441_v53 = vmul.f32 0.5, %v3379_v61  ;;  %v3225_v61 = vadd.f32 %v6241_v36, %v6244_v37 }
 0xfc8   :  { %4493 = vmatprep.mubr.f32.mxu0 %v3517_v12  ;;  %4941 = verf.f32 %v3459_v33  ;;  %v6269_v1 = vadd.f32 %v6231_v56, %v3398_v40  ;;  %v3230_v40 = vadd.f32 %v6239_v14, %v6241_v36 }
 0xfc9   :  { %v4932_v45 = vpop.eup %4931  ;;  %4494 = vmatmul.mubr.f32.vlgmr.msra.gmra.mrb[56].mxu0 %v3518_v42  ;;  %v3462_v7 = vmul.f32 0.70710677, %v6264_v19 }
 0xfca   :  { %v4934_v21 = vpop.eup %4933  ;;  %v3488_v13 = vadd.f32 1.0, %v4932_v45  ;;  %v3461_v46 = vmul.f32 0.70710677, %v6269_v1  ;;  %v6273_v51 = vpop.f32.mrb[50].mxu0 }
 0xfcb   :  { %v3487_v23 = vadd.f32 1.0, %v4934_v21  ;;  %v4478_v15 = vpop.f32.mrb[66].mxu1  ;;  %4943 = verf.f32 %v3462_v7  ;;  %v6279_v30 = vpop.f32.mrb[51].mxu0 }
 0xfcc   :  { %v3504_v27 = vmul.f32 %v3488_v13, %v3440_v5  ;;  %v6277_v24 = vadd.f32 %v4478_v15, %v6231_v56  ;;  %v3408_v39 = vpop.f32.mrb[67].mxu1  ;;  %4945 = verf.f32 %v3461_v46 }
 0xfcd   :  { %v3503_v48 = vmul.f32 %v3487_v23, %v3439_v10  ;;  %v6284_v32 = vadd.f32 %v6231_v56, %v3408_v39  ;;  %v4936_v58 = vpop.eup %4935  ;;  %v3444_v10 = vmul.f32 0.5, %v6252_v52 }
 0xfce   :  { %v3464_v62 = vmul.f32 0.70710677, %v6277_v24  ;;  %v3520_v25 = vmul.f32 %v3504_v27, %v3220_v54  ;;  %v4938_v9 = vpop.eup %4937  ;;  %v3490_v17 = vadd.f32 1.0, %v4936_v58  ;;  %v6288_v8 = vpop.f32.mrb[52].mxu0  ;;  %v3443_v27 = vmul.f32 0.5, %v6257_v31 }
 0xfcf   :  { %v3463_v2 = vmul.f32 0.70710677, %v6284_v32  ;;  %v4481_v34 = vpop.f32.mrb[68].mxu1  ;;  %v3519_v42 = vmul.f32 %v3503_v48, %v3215_v43  ;;  %v3489_v50 = vadd.f32 1.0, %v4938_v9  ;;  %v6293_v33 = vpop.f32.mrb[53].mxu0  ;;  %v3240_v58 = vadd.f32 %v6248_v59, %v6241_v36 }
 0xfd0   :  { %4947 = verf.f32 %v3464_v62  ;;  %v6291_v12 = vadd.f32 %v4481_v34, %v6231_v56  ;;  %v3418_v57 = vpop.f32.mrb[69].mxu1  ;;  %v3506_v0 = vmul.f32 %v3490_v17, %v3442_v18  ;;  %v3235_v9 = vadd.f32 %v6241_v36, %v6254_v11 }
 0xfd1   :  { %4949 = verf.f32 %v3463_v2  ;;  %v6298_v45 = vadd.f32 %v6231_v56, %v3418_v57  ;;  %4496 = vmatprep.mubr.f32.mxu0 %v3519_v42  ;;  %v4940_v21 = vpop.eup %4939  ;;  %v3505_v5 = vmul.f32 %v3489_v50, %v3441_v53  ;;  %v3446_v34 = vmul.f32 0.5, %v6264_v19 }
 0xfd2   :  { %v3466_v13 = vmul.f32 0.70710677, %v6291_v12  ;;  %4497 = vmatmul.mubr.f32.gmra.mrb[58].mxu0 %v3520_v25  ;;  %v4942_v7 = vpop.eup %4941  ;;  %v3492_v23 = vadd.f32 1.0, %v4940_v21  ;;  %v6305_v46 = vpop.f32.mrb[54].mxu0  ;;  %v3522_v54 = vmul.f32 %v3506_v0, %v3230_v40  ;;  %v3445_v57 = vmul.f32 0.5, %v6269_v1 }
 0xfd3   :  { %v3465_v14 = vmul.f32 0.70710677, %v6298_v45  ;;  %v4484_v15 = vpop.f32.mrb[70].mxu1  ;;  %v3491_v39 = vadd.f32 1.0, %v4942_v7  ;;  %v6309_v43 = vpop.f32.mrb[55].mxu0  ;;  %v3521_v17 = vmul.f32 %v3505_v5, %v3225_v61  ;;  %v3245_v21 = vadd.f32 %v6241_v36, %v6266_v6 }
 0xfd4   :  { %4951 = verf.f32 %v3466_v13  ;;  %v3434_v37 = vadd.f32 %v4484_v15, %v6231_v56  ;;  %v3428_v48 = vpop.f32.mrb[71].mxu1  ;;  %v3508_v52 = vmul.f32 %v3492_v23, %v3444_v10  ;;  %v3448_v5 = vmul.f32 0.5, %v6277_v24 }
 0xfd5   :  { %4953 = verf.f32 %v3465_v14  ;;  %v3429_v62 = vadd.f32 %v6231_v56, %v3428_v48  ;;  %v4944_v25 = vpop.eup %4943  ;;  %v3507_v18 = vmul.f32 %v3491_v39, %v3443_v27  ;;  %4499 = vmatprep.mubr.f32.mxu0 %v3521_v17  ;;  %v3250_v56 = vadd.f32 %v6261_v49, %v6241_v36 }
 0xfd6   :  { %v3468_v31 = vmul.f32 0.70710677, %v3434_v37  ;;  %v4946_v2 = vpop.eup %4945  ;;  %v3494_v42 = vadd.f32 1.0, %v4944_v25  ;;  %v3524_v50 = vmul.f32 %v3508_v52, %v3240_v58  ;;  %4500 = vmatmul.mubr.f32.gmra.mrb[60].mxu0 %v3522_v54  ;;  %v3447_v7 = vmul.f32 0.5, %v6284_v32 }
 0xfd7   :  { %v3467_v53 = vmul.f32 0.70710677, %v3429_v62  ;;  %v3493_v59 = vadd.f32 1.0, %v4946_v2  ;;  %v3523_v40 = vmul.f32 %v3507_v18, %v3235_v9  ;;  %v3260_v49 = vadd.f32 %v6273_v51, %v6241_v36 }
 0xfd8   :  { %4955 = verf.f32 %v3468_v31  ;;  %v3510_v0 = vmul.f32 %v3494_v42, %v3446_v34  ;;  %v3255_v6 = vadd.f32 %v6241_v36, %v6279_v30  ;;  %v3450_v24 = vmul.f32 0.5, %v6291_v12 }
 0xfd9   :  { %4957 = verf.f32 %v3467_v53  ;;  %v3509_v19 = vmul.f32 %v3493_v59, %v3445_v57  ;;  %4502 = vmatprep.mubr.f32.mxu0 %v3523_v40  ;;  %v3449_v32 = vmul.f32 0.5, %v6298_v45  ;;  %v3270_v51 = vadd.f32 %v6288_v8, %v6241_v36 }
 0xfda   :  { %v4948_v11 = vpop.eup %4947  ;;  %v3526_v13 = vmul.f32 %v3510_v0, %v3250_v56  ;;  %4503 = vmatmul.mubr.f32.gmra.mrb[62].mxu0 %v3524_v50  ;;  %v3265_v30 = vadd.f32 %v6241_v36, %v6293_v33  ;;  %v3452_v17 = vmul.f32 0.5, %v3434_v37  ;;  %v3451_v34 = vmul.f32 0.5, %v3429_v62  ;;  %v3876_v37 = vld [vmem:[#allocation6 + $0x178] ss:$0 sm:$0xff] }
 0xfdb   :  { %v4950_v61 = vpop.eup %4949  ;;  %v3496_v1 = vadd.f32 1.0, %v4948_v11  ;;  %v3525_v23 = vmul.f32 %v3509_v19, %v3245_v21  ;;  %v3280_v53 = vadd.f32 %v6305_v46, %v6241_v36  ;;  %v3275_v8 = vadd.f32 %v6241_v36, %v6309_v43 }
 0xfdc   :  { %v3495_v10 = vadd.f32 1.0, %v4950_v61 }
 0xfdd   :  { %v3512_v14 = vmul.f32 %v3496_v1, %v3448_v5  ;;  %4505 = vmatprep.mubr.f32.mxu0 %v3525_v23 }
 0xfde   :  { %v4952_v15 = vpop.eup %4951  ;;  %v3511_v54 = vmul.f32 %v3495_v10, %v3447_v7  ;;  %4506 = vmatmul.mubr.f32.gmra.mrb[64].mxu0 %v3526_v13 }
 0xfdf   :  { %v4954_v27 = vpop.eup %4953  ;;  %v3498_v39 = vadd.f32 1.0, %v4952_v15  ;;  %v3528_v48 = vmul.f32 %v3512_v14, %v3260_v49 }
 0xfe0   :  { %v3497_v58 = vadd.f32 1.0, %v4954_v27  ;;  %v3527_v52 = vmul.f32 %v3511_v54, %v3255_v6 }
 0xfe1   :  { %v3514_v25 = vmul.f32 %v3498_v39, %v3450_v24 }
 0xfe2   :  { %v4956_v9 = vpop.eup %4955  ;;  %v3513_v18 = vmul.f32 %v3497_v58, %v3449_v32  ;;  %4508 = vmatprep.mubr.f32.mxu0 %v3527_v52 }
 0xfe3   :  { %v4958_v31 = vpop.eup %4957  ;;  %v3500_v12 = vadd.f32 1.0, %v4956_v9  ;;  %v3530_v2 = vmul.f32 %v3514_v25, %v3270_v51  ;;  %4509 = vmatmul.mubr.f32.gmra.mrb[66].mxu0 %v3528_v48 }
 0xfe4   :  { %v3499_v42 = vadd.f32 1.0, %v4958_v31  ;;  %v3529_v45 = vmul.f32 %v3513_v18, %v3265_v30 }
 0xfe5   :  { %v3516_v50 = vmul.f32 %v3500_v12, %v3452_v17 }
 0xfe6   :  { %v3515_v57 = vmul.f32 %v3499_v42, %v3451_v34  ;;  %4511 = vmatprep.mubr.f32.mxu0 %v3529_v45 }
 0xfe7   :  { %v3532_v33 = vmul.f32 %v3516_v50, %v3280_v53  ;;  %4512 = vmatmul.mubr.f32.gmra.mrb[68].mxu0 %v3530_v2 }
 0xfe8   :  { %v3531_v59 = vmul.f32 %v3515_v57, %v3275_v8 }
 0xfea   :  { %4514 = vmatprep.mubr.f32.mxu0 %v3531_v59 }
 0xfeb   :  { %4515 = vmatmul.mubr.f32.gmra.mrb[70].mxu0 %v3532_v33 }
0x109c   :  { %v4495_v40 = vpop.f32.mrb[56].mxu0 }
0x109d   :  { %v3614_v62 = vadd.f32 %v4495_v40, %v3876_v37  ;;  %v3608_v56 = vpop.f32.mrb[57].mxu0 }
0x109e   :  { %v3609_v0 = vadd.f32 %v3876_v37, %v3608_v56 }
0x109f   :  { %v3688_v11 = vadd.f32 %v3614_v62, %v5972_v44 }
0x10a0   :  { %v3687_v46 = vadd.f32 %v3609_v0, %v5975_v38 }
0x10a1   :  { %3704 = vst.msk [vmem:[%s6421_s3 + $0x8] sm:$0xff] %vm153_vm1, %v3688_v11 }
0x10a2   :  { %3703 = vst.msk [vmem:[%s6421_s3] sm:$0xff] %vm153_vm1, %v3687_v46 }
0x10a5   :  { %v4498_v36 = vpop.f32.mrb[58].mxu0 }
0x10a6   :  { %v3624_v43 = vadd.f32 %v4498_v36, %v3876_v37  ;;  %v3618_v21 = vpop.f32.mrb[59].mxu0 }
0x10a7   :  { %v3619_v19 = vadd.f32 %v3876_v37, %v3618_v21 }
0x10a8   :  { %v3690_v61 = vadd.f32 %v3624_v43, %v5982_v63 }
0x10a9   :  { %v3689_v44 = vadd.f32 %v3619_v19, %v5987_v60  ;;  %v4501_v38 = vpop.f32.mrb[60].mxu0 }
0x10aa   :  { %3706 = vst.msk [vmem:[%s6421_s3 + $0x18] sm:$0xff] %vm153_vm1, %v3690_v61  ;;  %v3634_v5 = vadd.f32 %v4501_v38, %v3876_v37  ;;  %v3628_v1 = vpop.f32.mrb[61].mxu0 }
0x10ab   :  { %3705 = vst.msk [vmem:[%s6421_s3 + $0x10] sm:$0xff] %vm153_vm1, %v3689_v44  ;;  %v3629_v13 = vadd.f32 %v3876_v37, %v3628_v1 }
0x10ac   :  { %v3692_v7 = vadd.f32 %v3634_v5, %v5990_v22 }
0x10ad   :  { %v3691_v63 = vadd.f32 %v3629_v13, %v5993_v20  ;;  %v4504_v10 = vpop.f32.mrb[62].mxu0 }
0x10ae   :  { %3708 = vst.msk [vmem:[%s6421_s3 + $0x28] sm:$0xff] %vm153_vm1, %v3692_v7  ;;  %v3644_v60 = vadd.f32 %v4504_v10, %v3876_v37  ;;  %v3638_v23 = vpop.f32.mrb[63].mxu0 }
0x10af   :  { %3707 = vst.msk [vmem:[%s6421_s3 + $0x20] sm:$0xff] %vm153_vm1, %v3691_v63  ;;  %v3639_v49 = vadd.f32 %v3876_v37, %v3638_v23 }
0x10b0   :  { %v3694_v14 = vadd.f32 %v3644_v60, %v6000_v16 }
0x10b1   :  { %v3693_v22 = vadd.f32 %v3639_v49, %v6003_v26  ;;  %v4507_v15 = vpop.f32.mrb[64].mxu0 }
0x10b2   :  { %3710 = vst.msk [vmem:[%s6421_s3 + $0x38] sm:$0xff] %vm153_vm1, %v3694_v14  ;;  %v3654_v20 = vadd.f32 %v4507_v15, %v3876_v37  ;;  %v3648_v6 = vpop.f32.mrb[65].mxu0 }
0x10b3   :  { %3709 = vst.msk [vmem:[%s6421_s3 + $0x30] sm:$0xff] %vm153_vm1, %v3693_v22  ;;  %v3649_v54 = vadd.f32 %v3876_v37, %v3648_v6 }
0x10b4   :  { %v3696_v27 = vadd.f32 %v3654_v20, %v6010_v3 }
0x10b5   :  { %v3695_v16 = vadd.f32 %v3649_v54, %v6013_v29 }
0x10b6   :  { %v4510_v24 = vpop.f32.mrb[66].mxu0  ;;  %3712 = vst.msk [vmem:[%s6421_s3 + $0x48] sm:$0xff] %vm153_vm1, %v3696_v27 }
0x10b7   :  { %v3664_v26 = vadd.f32 %v4510_v24, %v3876_v37  ;;  %v3658_v39 = vpop.f32.mrb[67].mxu0  ;;  %3711 = vst.msk [vmem:[%s6421_s3 + $0x40] sm:$0xff] %vm153_vm1, %v3695_v16 }
0x10b8   :  { %v3659_v48 = vadd.f32 %v3876_v37, %v3658_v39 }
0x10b9   :  { %v3698_v32 = vadd.f32 %v3664_v26, %v6020_v47 }
0x10ba   :  { %v3697_v3 = vadd.f32 %v3659_v48, %v6023_v28  ;;  %v4513_v58 = vpop.f32.mrb[68].mxu0 }
0x10bb   :  { %3714 = vst.msk [vmem:[%s6421_s3 + $0x58] sm:$0xff] %vm153_vm1, %v3698_v32  ;;  %v3674_v29 = vadd.f32 %v4513_v58, %v3876_v37  ;;  %v3668_v52 = vpop.f32.mrb[69].mxu0 }
0x10bc   :  { %3713 = vst.msk [vmem:[%s6421_s3 + $0x50] sm:$0xff] %vm153_vm1, %v3697_v3  ;;  %v3669_v51 = vadd.f32 %v3876_v37, %v3668_v52 }
0x10bd   :  { %v3700_v25 = vadd.f32 %v3674_v29, %v6030_v41 }
0x10be   :  { %v3699_v47 = vadd.f32 %v3669_v51, %v6033_v35  ;;  %v4516_v9 = vpop.f32.mrb[70].mxu0 }
0x10bf   :  { %3716 = vst.msk [vmem:[%s6421_s3 + $0x68] sm:$0xff] %vm153_vm1, %v3700_v25  ;;  %v3684_v28 = vadd.f32 %v4516_v9, %v3876_v37  ;;  %v3678_v30 = vpop.f32.mrb[71].mxu0 }
0x10c0   :  { %3715 = vst.msk [vmem:[%s6421_s3 + $0x60] sm:$0xff] %vm153_vm1, %v3699_v47  ;;  %v3679_v18 = vadd.f32 %v3876_v37, %v3678_v30 }
0x10c1   :  { %v3702_v31 = vadd.f32 %v3684_v28, %v6040_v4 }
0x10c2   :  { %v3701_v41 = vadd.f32 %v3679_v18, %v6045_v55 }
0x10c3   :  { %3718 = vst.msk [vmem:[%s6421_s3 + $0x78] sm:$0xff] %vm153_vm1, %v3702_v31 }
0x10c4   :  { %3717 = vst.msk [vmem:[%s6421_s3 + $0x70] sm:$0xff] %vm153_vm1, %v3701_v41 }
0x10c5   :  { %3723 = vsyncpa [#allocation7], 1 }

</bundles_post_ra>
